<compile_context>
chip_gen: v6e
topology: v6e:2x2x1
jax: 0.10.0
libtpu: 0.0.40
codegen_flags: <defaults>
</compile_context>

<pallas_src>
import functools
import math

import jax
import jax.numpy as jnp
from jax.experimental import pallas as pl
from jax.experimental.pallas import tpu as pltpu


# ------------------------------ kernel ------------------------------------- #

def _sigmoid(x):
    # exp goes to the EUP slot; explicit form is known to lower cleanly in Mosaic.
    return 1.0 / (1.0 + jnp.exp(-x))


def _bigru_fc_kernel(x_ref, *refs, num_layers, hidden_dim, batch, seq_len):
    """Entire BaseRNN forward: all bi-GRU layers + final fc, one program.

    x_ref : (S*B, input_dim) seq-major, pre-flattened on the host.
    refs  : layer 0 -> [wi (D,6H), bi (1,6H), wh_blockdiag (2H,6H), bh (1,6H)]
            layers >0 -> [wi_fwd_rows (H,6H), wi_bwd_rows (H,6H), bi, wh_blockdiag, bh]
            then wfc (2H,O), bfc (1,O), out (B,O), scratch out_f/out_b (S*B,H).
    Gate columns are packed [fwd r|z|n | bwd r|z|n] (each H wide).
    """
    H, B, S = hidden_dim, batch, seq_len
    out_f_ref, out_b_ref = refs[-2], refs[-1]     # VMEM scratch: per-layer seq outputs
    out_ref = refs[-3]                            # (B, O)
    wfc_ref, bfc_ref = refs[-5], refs[-4]
    params = refs[:-5]

    def run_layer(gi_all, wh_ref, bh_ref, store_seq):
        """Fused fwd+bwd recurrence.  gi_all (S*B, 6H) is the hoisted input
        projection; one block-diagonal (B,2H)@(2H,6H) MXU push per time step
        serves both directions."""
        wh = wh_ref[...]                                         # (2H, 6H), hoisted
        bh = jnp.broadcast_to(bh_ref[...], (B, 6 * H))           # hoisted broadcast
        h = jnp.zeros((B, 2 * H), jnp.float32)                   # [h_fwd | h_bwd]
        for s in range(S):                                       # short, fully unrolled
            gh = jnp.dot(h, wh, preferred_element_type=jnp.float32) + bh   # (B, 6H)
            a_f = gi_all[s * B:(s + 1) * B, :]                   # fwd gates, time s
            a_b = gi_all[(S - 1 - s) * B:(S - s) * B, :]         # bwd gates, time S-1-s
            # forward direction (PyTorch gate order r, z, n)
            rz_f = _sigmoid(a_f[:, :2 * H] + gh[:, :2 * H])
            n_f = jnp.tanh(a_f[:, 2 * H:3 * H] + rz_f[:, :H] * gh[:, 2 * H:3 * H])
            h_f = (1.0 - rz_f[:, H:]) * n_f + rz_f[:, H:] * h[:, :H]
            # backward direction
            rz_b = _sigmoid(a_b[:, 3 * H:5 * H] + gh[:, 3 * H:5 * H])
            n_b = jnp.tanh(a_b[:, 5 * H:] + rz_b[:, :H] * gh[:, 5 * H:])
            h_b = (1.0 - rz_b[:, H:]) * n_b + rz_b[:, H:] * h[:, H:]
            if store_seq:                                        # skipped on last layer
                out_f_ref[pl.ds(s * B, B), :] = h_f
                out_b_ref[pl.ds((S - 1 - s) * B, B), :] = h_b
            h = jnp.concatenate([h_f, h_b], axis=-1)
        return h

    # ---- layer 0: one batched input projection over the whole (S*B, D) slab ----
    wi0, bi0, wh0, bh0 = params[0], params[1], params[2], params[3]
    gi_all = jnp.dot(x_ref[...], wi0[...], preferred_element_type=jnp.float32) + bi0[...]
    h = run_layer(gi_all, wh0, bh0, store_seq=(num_layers > 1))

    # ---- deeper layers: read previous seq outputs from scratch, project in bulk ----
    for l in range(1, num_layers):
        base = 4 + 5 * (l - 1)
        wi_f, wi_b, bi, wh, bh = (params[base + k] for k in range(5))
        gi_all = (jnp.dot(out_f_ref[...], wi_f[...], preferred_element_type=jnp.float32)
                  + jnp.dot(out_b_ref[...], wi_b[...], preferred_element_type=jnp.float32)
                  + bi[...])
        h = run_layer(gi_all, wh, bh, store_seq=(l < num_layers - 1))

    # fc on [h_fwd_final | h_bwd_final] == cat(hidden[-2], hidden[-1]); one matmul.
    out_ref[...] = (jnp.dot(h, wfc_ref[...], preferred_element_type=jnp.float32)
                    + bfc_ref[...])


# ------------------------------ wrapper ------------------------------------- #

def _prep_kernel_params(layers, fc_w, fc_b, hidden_dim):
    """Host-side re-layout so the kernel never transposes, slices packed gates,
    or concatenates weights:
      * W_i packed to (in, 6H) = [fwd r|z|n | bwd r|z|n]; for layers > 0 the rows
        are pre-split into the halves that multiply the fwd / bwd feature slabs.
      * W_h packed block-diagonally to (2H, 6H) so one matmul drives both chains.
      * fc weight transposed once to (2H, O)."""
    H = hidden_dim
    packed = []
    for l, (fwd, bwd) in enumerate(layers):
        w_ih_f, w_hh_f, b_ih_f, b_hh_f = fwd
        w_ih_b, w_hh_b, b_ih_b, b_hh_b = bwd
        wi = jnp.concatenate([w_ih_f.T, w_ih_b.T], axis=1)            # (in, 6H)
        bi = jnp.concatenate([b_ih_f, b_ih_b])[None, :]               # (1, 6H)
        wh = jnp.zeros((2 * H, 6 * H), jnp.float32)
        wh = wh.at[:H, :3 * H].set(w_hh_f.T)
        wh = wh.at[H:, 3 * H:].set(w_hh_b.T)                          # block-diagonal
        bh = jnp.concatenate([b_hh_f, b_hh_b])[None, :]               # (1, 6H)
        if l == 0:
            packed += [wi, bi, wh, bh]
        else:
            packed += [wi[:H, :], wi[H:, :], bi, wh, bh]              # fwd/bwd row halves
    return packed, fc_w.T, fc_b[None, :]


def base_rnn_forward(x, layers, fc_w, fc_b, hidden_dim, rnn_type="GRU"):
    # TODO(synk): only the 'GRU' branch of the original forward is functional (the
    # 'LSTM' branch tensor-indexes the (h_n, c_n) tuple); num_layers == 1 hits
    # `assert True == False` in the original module.
    assert rnn_type == "GRU"
    assert len(layers) > 1, "num_layers == 1 asserts False in the original module"
    if x.ndim == 2:                       # mirrors x.unsqueeze(1)
        x = x[:, None, :]
    B, S, D = x.shape
    O = fc_w.shape[0]
    H = hidden_dim

    packed, wfc, bfc = _prep_kernel_params(layers, fc_w, fc_b, hidden_dim)
    # seq-major and pre-flattened so the kernel's batched input projection needs
    # no in-kernel reshape/transpose.
    x_flat = jnp.transpose(x, (1, 0, 2)).reshape(S * B, D)

    kernel = functools.partial(_bigru_fc_kernel, num_layers=len(layers),
                               hidden_dim=H, batch=B, seq_len=S)

    # TODO(synk): on v7x (2 TensorCores) add a parallel batch grid axis; on
    # v5e/v6e the single-program layout is already the right shape.  When scaling
    # H/S, set pltpu.CompilerParams(vmem_limit_bytes=...) and switch the unrolled
    # time loop to lax.fori_loop.
    return pl.pallas_call(
        kernel,
        out_shape=jax.ShapeDtypeStruct((B, O), jnp.float32),
        scratch_shapes=[pltpu.VMEM((S * B, H), jnp.float32),   # fwd seq outputs
                        pltpu.VMEM((S * B, H), jnp.float32)],  # bwd seq outputs
    )(x_flat, *packed, wfc, bfc)


# ------------------------------ params -------------------------------------- #

def init_params(key, input_dim, hidden_dim, num_layers, output_dim):
    """PyTorch-layout bidirectional GRU parameters, gate order (r, z, n)."""
    def uniform(k, shape, bound):
        return jax.random.uniform(k, shape, jnp.float32, -bound, bound)

    bound = 1.0 / math.sqrt(hidden_dim)
    keys = jax.random.split(key, num_layers * 8 + 2)
    ki = 0
    layers = []
    for l in range(num_layers):
        in_dim = input_dim if l == 0 else 2 * hidden_dim
        dirs = []
        for _ in range(2):  # forward, backward
            w_ih = uniform(keys[ki], (3 * hidden_dim, in_dim), bound); ki += 1
            w_hh = uniform(keys[ki], (3 * hidden_dim, hidden_dim), bound); ki += 1
            b_ih = uniform(keys[ki], (3 * hidden_dim,), bound); ki += 1
            b_hh = uniform(keys[ki], (3 * hidden_dim,), bound); ki += 1
            dirs.append((w_ih, w_hh, b_ih, b_hh))
        layers.append(tuple(dirs))
    fb = 1.0 / math.sqrt(2 * hidden_dim)
    fc_w = uniform(keys[ki], (output_dim, 2 * hidden_dim), fb); ki += 1
    fc_b = uniform(keys[ki], (output_dim,), fb)
    return layers, fc_w, fc_b


# ------------------------------ reference (plain JAX) ------------------------ #

_HI = jax.lax.Precision.HIGHEST


def _ref_gru_cell(x_t, h, w_ih, w_hh, b_ih, b_hh, H):
    gi = jnp.dot(x_t, w_ih.T, precision=_HI) + b_ih
    gh = jnp.dot(h, w_hh.T, precision=_HI) + b_hh
    r = 1.0 / (1.0 + jnp.exp(-(gi[:, :H] + gh[:, :H])))
    z = 1.0 / (1.0 + jnp.exp(-(gi[:, H:2 * H] + gh[:, H:2 * H])))
    n = jnp.tanh(gi[:, 2 * H:] + r * gh[:, 2 * H:])
    return (1.0 - z) * n + z * h


def reference_forward(x, layers, fc_w, fc_b, hidden_dim):
    if x.ndim == 2:
        x = x[:, None, :]
    B, S, _ = x.shape
    H = hidden_dim
    inp = x
    h_f = h_b = None
    for (fwd, bwd) in layers:
        w_ih_f, w_hh_f, b_ih_f, b_hh_f = fwd
        w_ih_b, w_hh_b, b_ih_b, b_hh_b = bwd
        h_f = jnp.zeros((B, H), jnp.float32)
        outs_f = []
        for t in range(S):
            h_f = _ref_gru_cell(inp[:, t, :], h_f, w_ih_f, w_hh_f, b_ih_f, b_hh_f, H)
            outs_f.append(h_f)
        h_b = jnp.zeros((B, H), jnp.float32)
        outs_b = [None] * S
        for t in range(S - 1, -1, -1):
            h_b = _ref_gru_cell(inp[:, t, :], h_b, w_ih_b, w_hh_b, b_ih_b, b_hh_b, H)
            outs_b[t] = h_b
        inp = jnp.concatenate([jnp.stack(outs_f, 1), jnp.stack(outs_b, 1)], axis=-1)
    hidden = jnp.concatenate([h_f, h_b], axis=1)     # (B, 2H) == cat(hidden[-2], hidden[-1])
    return jnp.dot(hidden, fc_w.T, precision=_HI) + fc_b[None, :]


# ------------------------------ main ----------------------------------------- #

if __name__ == "__main__":
    B, S = 2, 8
    input_dim, hidden_dim, output_dim, num_layers = 16, 32, 8, 2

    key = jax.random.PRNGKey(0)
    kx, kp = jax.random.split(key)
    x = jax.random.normal(kx, (B, S, input_dim), dtype=jnp.float32)
    layers, fc_w, fc_b = init_params(kp, input_dim, hidden_dim, num_layers, output_dim)

    out = base_rnn_forward(x, layers, fc_w, fc_b, hidden_dim, rnn_type="GRU")
    out = jax.block_until_ready(out)

    ref = reference_forward(x, layers, fc_w, fc_b, hidden_dim)
    assert out.shape == (B, output_dim)
    assert jnp.allclose(out, ref, rtol=1e-3, atol=1e-4), "mismatch vs JAX reference"

    print("KERNEL_OK")
</pallas_src>

<mosaic_0001>
module attributes {stable_mosaic.version = 11 : i64} {
  func.func @_bigru_fc_kernel(%arg0: memref<16x16xf32, #tpu.memory_space<vmem>>, %arg1: memref<16x192xf32, #tpu.memory_space<vmem>>, %arg2: memref<1x192xf32, #tpu.memory_space<vmem>>, %arg3: memref<64x192xf32, #tpu.memory_space<vmem>>, %arg4: memref<1x192xf32, #tpu.memory_space<vmem>>, %arg5: memref<32x192xf32, #tpu.memory_space<vmem>>, %arg6: memref<32x192xf32, #tpu.memory_space<vmem>>, %arg7: memref<1x192xf32, #tpu.memory_space<vmem>>, %arg8: memref<64x192xf32, #tpu.memory_space<vmem>>, %arg9: memref<1x192xf32, #tpu.memory_space<vmem>>, %arg10: memref<64x8xf32, #tpu.memory_space<vmem>>, %arg11: memref<1x8xf32, #tpu.memory_space<vmem>>, %arg12: memref<2x8xf32, #tpu.memory_space<vmem>>, %arg13: memref<16x32xf32, #tpu.memory_space<vmem>>, %arg14: memref<16x32xf32, #tpu.memory_space<vmem>>) attributes {dimension_semantics = [], scalar_prefetch = 0 : i64, scratch_operands = 2 : i64, tpu.core_type = #tpu.core_type<tc>} {
    %c0 = arith.constant 0 : index
    %c0_0 = arith.constant 0 : index
    %0 = vector.load %arg0[%c0, %c0_0] : memref<16x16xf32, #tpu.memory_space<vmem>>, vector<16x16xf32>
    %c0_1 = arith.constant 0 : index
    %c0_2 = arith.constant 0 : index
    %1 = vector.load %arg1[%c0_1, %c0_2] : memref<16x192xf32, #tpu.memory_space<vmem>>, vector<16x192xf32>
    %cst = arith.constant dense<0.000000e+00> : vector<16x192xf32>
    %2 = tpu.matmul %0, %1, %cst {dimension_numbers = #tpu.dot_dimension_numbers<[1], [0], [0], [1], [0, 0, 1, 1], [], []>} : vector<16x16xf32>, vector<16x192xf32>, vector<16x192xf32> -> vector<16x192xf32>
    %c0_3 = arith.constant 0 : index
    %c0_4 = arith.constant 0 : index
    %3 = vector.load %arg2[%c0_3, %c0_4] : memref<1x192xf32, #tpu.memory_space<vmem>>, vector<1x192xf32>
    %4 = vector.broadcast %3 : vector<1x192xf32> to vector<16x192xf32>
    %5 = arith.addf %2, %4 : vector<16x192xf32>
    %c0_5 = arith.constant 0 : index
    %c0_6 = arith.constant 0 : index
    %6 = vector.load %arg3[%c0_5, %c0_6] : memref<64x192xf32, #tpu.memory_space<vmem>>, vector<64x192xf32>
    %c0_7 = arith.constant 0 : index
    %c0_8 = arith.constant 0 : index
    %7 = vector.load %arg4[%c0_7, %c0_8] : memref<1x192xf32, #tpu.memory_space<vmem>>, vector<1x192xf32>
    %8 = vector.shape_cast %7 : vector<1x192xf32> to vector<1x192xf32>
    %9 = vector.broadcast %8 : vector<1x192xf32> to vector<2x192xf32>
    %cst_9 = arith.constant 0.000000e+00 : f32
    %10 = vector.broadcast %cst_9 : f32 to vector<2x64xf32>
    %cst_10 = arith.constant dense<0.000000e+00> : vector<2x192xf32>
    %11 = tpu.matmul %10, %6, %cst_10 {dimension_numbers = #tpu.dot_dimension_numbers<[1], [0], [0], [1], [0, 0, 1, 1], [], []>} : vector<2x64xf32>, vector<64x192xf32>, vector<2x192xf32> -> vector<2x192xf32>
    %12 = arith.addf %11, %9 : vector<2x192xf32>
    %13 = vector.extract_strided_slice %5 {offsets = [0, 0], sizes = [2, 192], strides = [1, 1]} : vector<16x192xf32> to vector<2x192xf32>
    %14 = vector.extract_strided_slice %5 {offsets = [14, 0], sizes = [2, 192], strides = [1, 1]} : vector<16x192xf32> to vector<2x192xf32>
    %15 = vector.extract_strided_slice %13 {offsets = [0, 0], sizes = [2, 64], strides = [1, 1]} : vector<2x192xf32> to vector<2x64xf32>
    %16 = vector.extract_strided_slice %12 {offsets = [0, 0], sizes = [2, 64], strides = [1, 1]} : vector<2x192xf32> to vector<2x64xf32>
    %17 = arith.addf %15, %16 : vector<2x64xf32>
    %cst_11 = arith.constant 0.000000e+00 : f32
    %18 = vector.broadcast %cst_11 : f32 to vector<2x64xf32>
    %19 = arith.subf %18, %17 : vector<2x64xf32>
    %20 = math.exp %19 : vector<2x64xf32>
    %cst_12 = arith.constant 1.000000e+00 : f32
    %21 = vector.broadcast %cst_12 : f32 to vector<2x64xf32>
    %22 = arith.addf %21, %20 : vector<2x64xf32>
    %cst_13 = arith.constant 1.000000e+00 : f32
    %23 = vector.broadcast %cst_13 : f32 to vector<2x64xf32>
    %24 = arith.divf %23, %22 : vector<2x64xf32>
    %25 = vector.extract_strided_slice %13 {offsets = [0, 64], sizes = [2, 32], strides = [1, 1]} : vector<2x192xf32> to vector<2x32xf32>
    %26 = vector.extract_strided_slice %24 {offsets = [0, 0], sizes = [2, 32], strides = [1, 1]} : vector<2x64xf32> to vector<2x32xf32>
    %27 = vector.extract_strided_slice %12 {offsets = [0, 64], sizes = [2, 32], strides = [1, 1]} : vector<2x192xf32> to vector<2x32xf32>
    %28 = arith.mulf %26, %27 : vector<2x32xf32>
    %29 = arith.addf %25, %28 : vector<2x32xf32>
    %30 = math.tanh %29 : vector<2x32xf32>
    %31 = vector.extract_strided_slice %24 {offsets = [0, 32], sizes = [2, 32], strides = [1, 1]} : vector<2x64xf32> to vector<2x32xf32>
    %cst_14 = arith.constant 1.000000e+00 : f32
    %32 = vector.broadcast %cst_14 : f32 to vector<2x32xf32>
    %33 = arith.subf %32, %31 : vector<2x32xf32>
    %34 = arith.mulf %33, %30 : vector<2x32xf32>
    %35 = vector.extract_strided_slice %24 {offsets = [0, 32], sizes = [2, 32], strides = [1, 1]} : vector<2x64xf32> to vector<2x32xf32>
    %36 = vector.extract_strided_slice %10 {offsets = [0, 0], sizes = [2, 32], strides = [1, 1]} : vector<2x64xf32> to vector<2x32xf32>
    %37 = arith.mulf %35, %36 : vector<2x32xf32>
    %38 = arith.addf %34, %37 : vector<2x32xf32>
    %39 = vector.extract_strided_slice %14 {offsets = [0, 96], sizes = [2, 64], strides = [1, 1]} : vector<2x192xf32> to vector<2x64xf32>
    %40 = vector.extract_strided_slice %12 {offsets = [0, 96], sizes = [2, 64], strides = [1, 1]} : vector<2x192xf32> to vector<2x64xf32>
    %41 = arith.addf %39, %40 : vector<2x64xf32>
    %cst_15 = arith.constant 0.000000e+00 : f32
    %42 = vector.broadcast %cst_15 : f32 to vector<2x64xf32>
    %43 = arith.subf %42, %41 : vector<2x64xf32>
    %44 = math.exp %43 : vector<2x64xf32>
    %cst_16 = arith.constant 1.000000e+00 : f32
    %45 = vector.broadcast %cst_16 : f32 to vector<2x64xf32>
    %46 = arith.addf %45, %44 : vector<2x64xf32>
    %cst_17 = arith.constant 1.000000e+00 : f32
    %47 = vector.broadcast %cst_17 : f32 to vector<2x64xf32>
    %48 = arith.divf %47, %46 : vector<2x64xf32>
    %49 = vector.extract_strided_slice %14 {offsets = [0, 160], sizes = [2, 32], strides = [1, 1]} : vector<2x192xf32> to vector<2x32xf32>
    %50 = vector.extract_strided_slice %48 {offsets = [0, 0], sizes = [2, 32], strides = [1, 1]} : vector<2x64xf32> to vector<2x32xf32>
    %51 = vector.extract_strided_slice %12 {offsets = [0, 160], sizes = [2, 32], strides = [1, 1]} : vector<2x192xf32> to vector<2x32xf32>
    %52 = arith.mulf %50, %51 : vector<2x32xf32>
    %53 = arith.addf %49, %52 : vector<2x32xf32>
    %54 = math.tanh %53 : vector<2x32xf32>
    %55 = vector.extract_strided_slice %48 {offsets = [0, 32], sizes = [2, 32], strides = [1, 1]} : vector<2x64xf32> to vector<2x32xf32>
    %cst_18 = arith.constant 1.000000e+00 : f32
    %56 = vector.broadcast %cst_18 : f32 to vector<2x32xf32>
    %57 = arith.subf %56, %55 : vector<2x32xf32>
    %58 = arith.mulf %57, %54 : vector<2x32xf32>
    %59 = vector.extract_strided_slice %48 {offsets = [0, 32], sizes = [2, 32], strides = [1, 1]} : vector<2x64xf32> to vector<2x32xf32>
    %60 = vector.extract_strided_slice %10 {offsets = [0, 32], sizes = [2, 32], strides = [1, 1]} : vector<2x64xf32> to vector<2x32xf32>
    %61 = arith.mulf %59, %60 : vector<2x32xf32>
    %62 = arith.addf %58, %61 : vector<2x32xf32>
    %c0_19 = arith.constant 0 : index
    %c0_20 = arith.constant 0 : index
    %63 = vector.load %arg13[%c0_19, %c0_20] : memref<16x32xf32, #tpu.memory_space<vmem>>, vector<2x32xf32>
    tpu.vector_store %arg13[%c0_19, %c0_20], %38 {strides = array<i32>} : memref<16x32xf32, #tpu.memory_space<vmem>>, vector<2x32xf32>,
    %c14 = arith.constant 14 : index
    %c0_21 = arith.constant 0 : index
    %64 = vector.load %arg14[%c14, %c0_21] : memref<16x32xf32, #tpu.memory_space<vmem>>, vector<2x32xf32>
    tpu.vector_store %arg14[%c14, %c0_21], %62 {strides = array<i32>} : memref<16x32xf32, #tpu.memory_space<vmem>>, vector<2x32xf32>,
    %65 = tpu.concatenate %38, %62 in 1 : vector<2x32xf32>, vector<2x32xf32> -> vector<2x64xf32>
    %cst_22 = arith.constant dense<0.000000e+00> : vector<2x192xf32>
    %66 = tpu.matmul %65, %6, %cst_22 {dimension_numbers = #tpu.dot_dimension_numbers<[1], [0], [0], [1], [0, 0, 1, 1], [], []>} : vector<2x64xf32>, vector<64x192xf32>, vector<2x192xf32> -> vector<2x192xf32>
    %67 = arith.addf %66, %9 : vector<2x192xf32>
    %68 = vector.extract_strided_slice %5 {offsets = [2, 0], sizes = [2, 192], strides = [1, 1]} : vector<16x192xf32> to vector<2x192xf32>
    %69 = vector.extract_strided_slice %5 {offsets = [12, 0], sizes = [2, 192], strides = [1, 1]} : vector<16x192xf32> to vector<2x192xf32>
    %70 = vector.extract_strided_slice %68 {offsets = [0, 0], sizes = [2, 64], strides = [1, 1]} : vector<2x192xf32> to vector<2x64xf32>
    %71 = vector.extract_strided_slice %67 {offsets = [0, 0], sizes = [2, 64], strides = [1, 1]} : vector<2x192xf32> to vector<2x64xf32>
    %72 = arith.addf %70, %71 : vector<2x64xf32>
    %cst_23 = arith.constant 0.000000e+00 : f32
    %73 = vector.broadcast %cst_23 : f32 to vector<2x64xf32>
    %74 = arith.subf %73, %72 : vector<2x64xf32>
    %75 = math.exp %74 : vector<2x64xf32>
    %cst_24 = arith.constant 1.000000e+00 : f32
    %76 = vector.broadcast %cst_24 : f32 to vector<2x64xf32>
    %77 = arith.addf %76, %75 : vector<2x64xf32>
    %cst_25 = arith.constant 1.000000e+00 : f32
    %78 = vector.broadcast %cst_25 : f32 to vector<2x64xf32>
    %79 = arith.divf %78, %77 : vector<2x64xf32>
    %80 = vector.extract_strided_slice %68 {offsets = [0, 64], sizes = [2, 32], strides = [1, 1]} : vector<2x192xf32> to vector<2x32xf32>
    %81 = vector.extract_strided_slice %79 {offsets = [0, 0], sizes = [2, 32], strides = [1, 1]} : vector<2x64xf32> to vector<2x32xf32>
    %82 = vector.extract_strided_slice %67 {offsets = [0, 64], sizes = [2, 32], strides = [1, 1]} : vector<2x192xf32> to vector<2x32xf32>
    %83 = arith.mulf %81, %82 : vector<2x32xf32>
    %84 = arith.addf %80, %83 : vector<2x32xf32>
    %85 = math.tanh %84 : vector<2x32xf32>
    %86 = vector.extract_strided_slice %79 {offsets = [0, 32], sizes = [2, 32], strides = [1, 1]} : vector<2x64xf32> to vector<2x32xf32>
    %cst_26 = arith.constant 1.000000e+00 : f32
    %87 = vector.broadcast %cst_26 : f32 to vector<2x32xf32>
    %88 = arith.subf %87, %86 : vector<2x32xf32>
    %89 = arith.mulf %88, %85 : vector<2x32xf32>
    %90 = vector.extract_strided_slice %79 {offsets = [0, 32], sizes = [2, 32], strides = [1, 1]} : vector<2x64xf32> to vector<2x32xf32>
    %91 = vector.extract_strided_slice %65 {offsets = [0, 0], sizes = [2, 32], strides = [1, 1]} : vector<2x64xf32> to vector<2x32xf32>
    %92 = arith.mulf %90, %91 : vector<2x32xf32>
    %93 = arith.addf %89, %92 : vector<2x32xf32>
    %94 = vector.extract_strided_slice %69 {offsets = [0, 96], sizes = [2, 64], strides = [1, 1]} : vector<2x192xf32> to vector<2x64xf32>
    %95 = vector.extract_strided_slice %67 {offsets = [0, 96], sizes = [2, 64], strides = [1, 1]} : vector<2x192xf32> to vector<2x64xf32>
    %96 = arith.addf %94, %95 : vector<2x64xf32>
    %cst_27 = arith.constant 0.000000e+00 : f32
    %97 = vector.broadcast %cst_27 : f32 to vector<2x64xf32>
    %98 = arith.subf %97, %96 : vector<2x64xf32>
    %99 = math.exp %98 : vector<2x64xf32>
    %cst_28 = arith.constant 1.000000e+00 : f32
    %100 = vector.broadcast %cst_28 : f32 to vector<2x64xf32>
    %101 = arith.addf %100, %99 : vector<2x64xf32>
    %cst_29 = arith.constant 1.000000e+00 : f32
    %102 = vector.broadcast %cst_29 : f32 to vector<2x64xf32>
    %103 = arith.divf %102, %101 : vector<2x64xf32>
    %104 = vector.extract_strided_slice %69 {offsets = [0, 160], sizes = [2, 32], strides = [1, 1]} : vector<2x192xf32> to vector<2x32xf32>
    %105 = vector.extract_strided_slice %103 {offsets = [0, 0], sizes = [2, 32], strides = [1, 1]} : vector<2x64xf32> to vector<2x32xf32>
    %106 = vector.extract_strided_slice %67 {offsets = [0, 160], sizes = [2, 32], strides = [1, 1]} : vector<2x192xf32> to vector<2x32xf32>
    %107 = arith.mulf %105, %106 : vector<2x32xf32>
    %108 = arith.addf %104, %107 : vector<2x32xf32>
    %109 = math.tanh %108 : vector<2x32xf32>
    %110 = vector.extract_strided_slice %103 {offsets = [0, 32], sizes = [2, 32], strides = [1, 1]} : vector<2x64xf32> to vector<2x32xf32>
    %cst_30 = arith.constant 1.000000e+00 : f32
    %111 = vector.broadcast %cst_30 : f32 to vector<2x32xf32>
    %112 = arith.subf %111, %110 : vector<2x32xf32>
    %113 = arith.mulf %112, %109 : vector<2x32xf32>
    %114 = vector.extract_strided_slice %103 {offsets = [0, 32], sizes = [2, 32], strides = [1, 1]} : vector<2x64xf32> to vector<2x32xf32>
    %115 = vector.extract_strided_slice %65 {offsets = [0, 32], sizes = [2, 32], strides = [1, 1]} : vector<2x64xf32> to vector<2x32xf32>
    %116 = arith.mulf %114, %115 : vector<2x32xf32>
    %117 = arith.addf %113, %116 : vector<2x32xf32>
    %c2 = arith.constant 2 : index
    %c0_31 = arith.constant 0 : index
    %118 = vector.load %arg13[%c2, %c0_31] : memref<16x32xf32, #tpu.memory_space<vmem>>, vector<2x32xf32>
    tpu.vector_store %arg13[%c2, %c0_31], %93 {strides = array<i32>} : memref<16x32xf32, #tpu.memory_space<vmem>>, vector<2x32xf32>,
    %c12 = arith.constant 12 : index
    %c0_32 = arith.constant 0 : index
    %119 = vector.load %arg14[%c12, %c0_32] : memref<16x32xf32, #tpu.memory_space<vmem>>, vector<2x32xf32>
    tpu.vector_store %arg14[%c12, %c0_32], %117 {strides = array<i32>} : memref<16x32xf32, #tpu.memory_space<vmem>>, vector<2x32xf32>,
    %120 = tpu.concatenate %93, %117 in 1 : vector<2x32xf32>, vector<2x32xf32> -> vector<2x64xf32>
    %cst_33 = arith.constant dense<0.000000e+00> : vector<2x192xf32>
    %121 = tpu.matmul %120, %6, %cst_33 {dimension_numbers = #tpu.dot_dimension_numbers<[1], [0], [0], [1], [0, 0, 1, 1], [], []>} : vector<2x64xf32>, vector<64x192xf32>, vector<2x192xf32> -> vector<2x192xf32>
    %122 = arith.addf %121, %9 : vector<2x192xf32>
    %123 = vector.extract_strided_slice %5 {offsets = [4, 0], sizes = [2, 192], strides = [1, 1]} : vector<16x192xf32> to vector<2x192xf32>
    %124 = vector.extract_strided_slice %5 {offsets = [10, 0], sizes = [2, 192], strides = [1, 1]} : vector<16x192xf32> to vector<2x192xf32>
    %125 = vector.extract_strided_slice %123 {offsets = [0, 0], sizes = [2, 64], strides = [1, 1]} : vector<2x192xf32> to vector<2x64xf32>
    %126 = vector.extract_strided_slice %122 {offsets = [0, 0], sizes = [2, 64], strides = [1, 1]} : vector<2x192xf32> to vector<2x64xf32>
    %127 = arith.addf %125, %126 : vector<2x64xf32>
    %cst_34 = arith.constant 0.000000e+00 : f32
    %128 = vector.broadcast %cst_34 : f32 to vector<2x64xf32>
    %129 = arith.subf %128, %127 : vector<2x64xf32>
    %130 = math.exp %129 : vector<2x64xf32>
    %cst_35 = arith.constant 1.000000e+00 : f32
    %131 = vector.broadcast %cst_35 : f32 to vector<2x64xf32>
    %132 = arith.addf %131, %130 : vector<2x64xf32>
    %cst_36 = arith.constant 1.000000e+00 : f32
    %133 = vector.broadcast %cst_36 : f32 to vector<2x64xf32>
    %134 = arith.divf %133, %132 : vector<2x64xf32>
    %135 = vector.extract_strided_slice %123 {offsets = [0, 64], sizes = [2, 32], strides = [1, 1]} : vector<2x192xf32> to vector<2x32xf32>
    %136 = vector.extract_strided_slice %134 {offsets = [0, 0], sizes = [2, 32], strides = [1, 1]} : vector<2x64xf32> to vector<2x32xf32>
    %137 = vector.extract_strided_slice %122 {offsets = [0, 64], sizes = [2, 32], strides = [1, 1]} : vector<2x192xf32> to vector<2x32xf32>
    %138 = arith.mulf %136, %137 : vector<2x32xf32>
    %139 = arith.addf %135, %138 : vector<2x32xf32>
    %140 = math.tanh %139 : vector<2x32xf32>
    %141 = vector.extract_strided_slice %134 {offsets = [0, 32], sizes = [2, 32], strides = [1, 1]} : vector<2x64xf32> to vector<2x32xf32>
    %cst_37 = arith.constant 1.000000e+00 : f32
    %142 = vector.broadcast %cst_37 : f32 to vector<2x32xf32>
    %143 = arith.subf %142, %141 : vector<2x32xf32>
    %144 = arith.mulf %143, %140 : vector<2x32xf32>
    %145 = vector.extract_strided_slice %134 {offsets = [0, 32], sizes = [2, 32], strides = [1, 1]} : vector<2x64xf32> to vector<2x32xf32>
    %146 = vector.extract_strided_slice %120 {offsets = [0, 0], sizes = [2, 32], strides = [1, 1]} : vector<2x64xf32> to vector<2x32xf32>
    %147 = arith.mulf %145, %146 : vector<2x32xf32>
    %148 = arith.addf %144, %147 : vector<2x32xf32>
    %149 = vector.extract_strided_slice %124 {offsets = [0, 96], sizes = [2, 64], strides = [1, 1]} : vector<2x192xf32> to vector<2x64xf32>
    %150 = vector.extract_strided_slice %122 {offsets = [0, 96], sizes = [2, 64], strides = [1, 1]} : vector<2x192xf32> to vector<2x64xf32>
    %151 = arith.addf %149, %150 : vector<2x64xf32>
    %cst_38 = arith.constant 0.000000e+00 : f32
    %152 = vector.broadcast %cst_38 : f32 to vector<2x64xf32>
    %153 = arith.subf %152, %151 : vector<2x64xf32>
    %154 = math.exp %153 : vector<2x64xf32>
    %cst_39 = arith.constant 1.000000e+00 : f32
    %155 = vector.broadcast %cst_39 : f32 to vector<2x64xf32>
    %156 = arith.addf %155, %154 : vector<2x64xf32>
    %cst_40 = arith.constant 1.000000e+00 : f32
    %157 = vector.broadcast %cst_40 : f32 to vector<2x64xf32>
    %158 = arith.divf %157, %156 : vector<2x64xf32>
    %159 = vector.extract_strided_slice %124 {offsets = [0, 160], sizes = [2, 32], strides = [1, 1]} : vector<2x192xf32> to vector<2x32xf32>
    %160 = vector.extract_strided_slice %158 {offsets = [0, 0], sizes = [2, 32], strides = [1, 1]} : vector<2x64xf32> to vector<2x32xf32>
    %161 = vector.extract_strided_slice %122 {offsets = [0, 160], sizes = [2, 32], strides = [1, 1]} : vector<2x192xf32> to vector<2x32xf32>
    %162 = arith.mulf %160, %161 : vector<2x32xf32>
    %163 = arith.addf %159, %162 : vector<2x32xf32>
    %164 = math.tanh %163 : vector<2x32xf32>
    %165 = vector.extract_strided_slice %158 {offsets = [0, 32], sizes = [2, 32], strides = [1, 1]} : vector<2x64xf32> to vector<2x32xf32>
    %cst_41 = arith.constant 1.000000e+00 : f32
    %166 = vector.broadcast %cst_41 : f32 to vector<2x32xf32>
    %167 = arith.subf %166, %165 : vector<2x32xf32>
    %168 = arith.mulf %167, %164 : vector<2x32xf32>
    %169 = vector.extract_strided_slice %158 {offsets = [0, 32], sizes = [2, 32], strides = [1, 1]} : vector<2x64xf32> to vector<2x32xf32>
    %170 = vector.extract_strided_slice %120 {offsets = [0, 32], sizes = [2, 32], strides = [1, 1]} : vector<2x64xf32> to vector<2x32xf32>
    %171 = arith.mulf %169, %170 : vector<2x32xf32>
    %172 = arith.addf %168, %171 : vector<2x32xf32>
    %c4 = arith.constant 4 : index
    %c0_42 = arith.constant 0 : index
    %173 = vector.load %arg13[%c4, %c0_42] : memref<16x32xf32, #tpu.memory_space<vmem>>, vector<2x32xf32>
    tpu.vector_store %arg13[%c4, %c0_42], %148 {strides = array<i32>} : memref<16x32xf32, #tpu.memory_space<vmem>>, vector<2x32xf32>,
    %c10 = arith.constant 10 : index
    %c0_43 = arith.constant 0 : index
    %174 = vector.load %arg14[%c10, %c0_43] : memref<16x32xf32, #tpu.memory_space<vmem>>, vector<2x32xf32>
    tpu.vector_store %arg14[%c10, %c0_43], %172 {strides = array<i32>} : memref<16x32xf32, #tpu.memory_space<vmem>>, vector<2x32xf32>,
    %175 = tpu.concatenate %148, %172 in 1 : vector<2x32xf32>, vector<2x32xf32> -> vector<2x64xf32>
    %cst_44 = arith.constant dense<0.000000e+00> : vector<2x192xf32>
    %176 = tpu.matmul %175, %6, %cst_44 {dimension_numbers = #tpu.dot_dimension_numbers<[1], [0], [0], [1], [0, 0, 1, 1], [], []>} : vector<2x64xf32>, vector<64x192xf32>, vector<2x192xf32> -> vector<2x192xf32>
    %177 = arith.addf %176, %9 : vector<2x192xf32>
    %178 = vector.extract_strided_slice %5 {offsets = [6, 0], sizes = [2, 192], strides = [1, 1]} : vector<16x192xf32> to vector<2x192xf32>
    %179 = vector.extract_strided_slice %5 {offsets = [8, 0], sizes = [2, 192], strides = [1, 1]} : vector<16x192xf32> to vector<2x192xf32>
    %180 = vector.extract_strided_slice %178 {offsets = [0, 0], sizes = [2, 64], strides = [1, 1]} : vector<2x192xf32> to vector<2x64xf32>
    %181 = vector.extract_strided_slice %177 {offsets = [0, 0], sizes = [2, 64], strides = [1, 1]} : vector<2x192xf32> to vector<2x64xf32>
    %182 = arith.addf %180, %181 : vector<2x64xf32>
    %cst_45 = arith.constant 0.000000e+00 : f32
    %183 = vector.broadcast %cst_45 : f32 to vector<2x64xf32>
    %184 = arith.subf %183, %182 : vector<2x64xf32>
    %185 = math.exp %184 : vector<2x64xf32>
    %cst_46 = arith.constant 1.000000e+00 : f32
    %186 = vector.broadcast %cst_46 : f32 to vector<2x64xf32>
    %187 = arith.addf %186, %185 : vector<2x64xf32>
    %cst_47 = arith.constant 1.000000e+00 : f32
    %188 = vector.broadcast %cst_47 : f32 to vector<2x64xf32>
    %189 = arith.divf %188, %187 : vector<2x64xf32>
    %190 = vector.extract_strided_slice %178 {offsets = [0, 64], sizes = [2, 32], strides = [1, 1]} : vector<2x192xf32> to vector<2x32xf32>
    %191 = vector.extract_strided_slice %189 {offsets = [0, 0], sizes = [2, 32], strides = [1, 1]} : vector<2x64xf32> to vector<2x32xf32>
    %192 = vector.extract_strided_slice %177 {offsets = [0, 64], sizes = [2, 32], strides = [1, 1]} : vector<2x192xf32> to vector<2x32xf32>
    %193 = arith.mulf %191, %192 : vector<2x32xf32>
    %194 = arith.addf %190, %193 : vector<2x32xf32>
    %195 = math.tanh %194 : vector<2x32xf32>
    %196 = vector.extract_strided_slice %189 {offsets = [0, 32], sizes = [2, 32], strides = [1, 1]} : vector<2x64xf32> to vector<2x32xf32>
    %cst_48 = arith.constant 1.000000e+00 : f32
    %197 = vector.broadcast %cst_48 : f32 to vector<2x32xf32>
    %198 = arith.subf %197, %196 : vector<2x32xf32>
    %199 = arith.mulf %198, %195 : vector<2x32xf32>
    %200 = vector.extract_strided_slice %189 {offsets = [0, 32], sizes = [2, 32], strides = [1, 1]} : vector<2x64xf32> to vector<2x32xf32>
    %201 = vector.extract_strided_slice %175 {offsets = [0, 0], sizes = [2, 32], strides = [1, 1]} : vector<2x64xf32> to vector<2x32xf32>
    %202 = arith.mulf %200, %201 : vector<2x32xf32>
    %203 = arith.addf %199, %202 : vector<2x32xf32>
    %204 = vector.extract_strided_slice %179 {offsets = [0, 96], sizes = [2, 64], strides = [1, 1]} : vector<2x192xf32> to vector<2x64xf32>
    %205 = vector.extract_strided_slice %177 {offsets = [0, 96], sizes = [2, 64], strides = [1, 1]} : vector<2x192xf32> to vector<2x64xf32>
    %206 = arith.addf %204, %205 : vector<2x64xf32>
    %cst_49 = arith.constant 0.000000e+00 : f32
    %207 = vector.broadcast %cst_49 : f32 to vector<2x64xf32>
    %208 = arith.subf %207, %206 : vector<2x64xf32>
    %209 = math.exp %208 : vector<2x64xf32>
    %cst_50 = arith.constant 1.000000e+00 : f32
    %210 = vector.broadcast %cst_50 : f32 to vector<2x64xf32>
    %211 = arith.addf %210, %209 : vector<2x64xf32>
    %cst_51 = arith.constant 1.000000e+00 : f32
    %212 = vector.broadcast %cst_51 : f32 to vector<2x64xf32>
    %213 = arith.divf %212, %211 : vector<2x64xf32>
    %214 = vector.extract_strided_slice %179 {offsets = [0, 160], sizes = [2, 32], strides = [1, 1]} : vector<2x192xf32> to vector<2x32xf32>
    %215 = vector.extract_strided_slice %213 {offsets = [0, 0], sizes = [2, 32], strides = [1, 1]} : vector<2x64xf32> to vector<2x32xf32>
    %216 = vector.extract_strided_slice %177 {offsets = [0, 160], sizes = [2, 32], strides = [1, 1]} : vector<2x192xf32> to vector<2x32xf32>
    %217 = arith.mulf %215, %216 : vector<2x32xf32>
    %218 = arith.addf %214, %217 : vector<2x32xf32>
    %219 = math.tanh %218 : vector<2x32xf32>
    %220 = vector.extract_strided_slice %213 {offsets = [0, 32], sizes = [2, 32], strides = [1, 1]} : vector<2x64xf32> to vector<2x32xf32>
    %cst_52 = arith.constant 1.000000e+00 : f32
    %221 = vector.broadcast %cst_52 : f32 to vector<2x32xf32>
    %222 = arith.subf %221, %220 : vector<2x32xf32>
    %223 = arith.mulf %222, %219 : vector<2x32xf32>
    %224 = vector.extract_strided_slice %213 {offsets = [0, 32], sizes = [2, 32], strides = [1, 1]} : vector<2x64xf32> to vector<2x32xf32>
    %225 = vector.extract_strided_slice %175 {offsets = [0, 32], sizes = [2, 32], strides = [1, 1]} : vector<2x64xf32> to vector<2x32xf32>
    %226 = arith.mulf %224, %225 : vector<2x32xf32>
    %227 = arith.addf %223, %226 : vector<2x32xf32>
    %c6 = arith.constant 6 : index
    %c0_53 = arith.constant 0 : index
    %228 = vector.load %arg13[%c6, %c0_53] : memref<16x32xf32, #tpu.memory_space<vmem>>, vector<2x32xf32>
    tpu.vector_store %arg13[%c6, %c0_53], %203 {strides = array<i32>} : memref<16x32xf32, #tpu.memory_space<vmem>>, vector<2x32xf32>,
    %c8 = arith.constant 8 : index
    %c0_54 = arith.constant 0 : index
    %229 = vector.load %arg14[%c8, %c0_54] : memref<16x32xf32, #tpu.memory_space<vmem>>, vector<2x32xf32>
    tpu.vector_store %arg14[%c8, %c0_54], %227 {strides = array<i32>} : memref<16x32xf32, #tpu.memory_space<vmem>>, vector<2x32xf32>,
    %230 = tpu.concatenate %203, %227 in 1 : vector<2x32xf32>, vector<2x32xf32> -> vector<2x64xf32>
    %cst_55 = arith.constant dense<0.000000e+00> : vector<2x192xf32>
    %231 = tpu.matmul %230, %6, %cst_55 {dimension_numbers = #tpu.dot_dimension_numbers<[1], [0], [0], [1], [0, 0, 1, 1], [], []>} : vector<2x64xf32>, vector<64x192xf32>, vector<2x192xf32> -> vector<2x192xf32>
    %232 = arith.addf %231, %9 : vector<2x192xf32>
    %233 = vector.extract_strided_slice %5 {offsets = [8, 0], sizes = [2, 192], strides = [1, 1]} : vector<16x192xf32> to vector<2x192xf32>
    %234 = vector.extract_strided_slice %5 {offsets = [6, 0], sizes = [2, 192], strides = [1, 1]} : vector<16x192xf32> to vector<2x192xf32>
    %235 = vector.extract_strided_slice %233 {offsets = [0, 0], sizes = [2, 64], strides = [1, 1]} : vector<2x192xf32> to vector<2x64xf32>
    %236 = vector.extract_strided_slice %232 {offsets = [0, 0], sizes = [2, 64], strides = [1, 1]} : vector<2x192xf32> to vector<2x64xf32>
    %237 = arith.addf %235, %236 : vector<2x64xf32>
    %cst_56 = arith.constant 0.000000e+00 : f32
    %238 = vector.broadcast %cst_56 : f32 to vector<2x64xf32>
    %239 = arith.subf %238, %237 : vector<2x64xf32>
    %240 = math.exp %239 : vector<2x64xf32>
    %cst_57 = arith.constant 1.000000e+00 : f32
    %241 = vector.broadcast %cst_57 : f32 to vector<2x64xf32>
    %242 = arith.addf %241, %240 : vector<2x64xf32>
    %cst_58 = arith.constant 1.000000e+00 : f32
    %243 = vector.broadcast %cst_58 : f32 to vector<2x64xf32>
    %244 = arith.divf %243, %242 : vector<2x64xf32>
    %245 = vector.extract_strided_slice %233 {offsets = [0, 64], sizes = [2, 32], strides = [1, 1]} : vector<2x192xf32> to vector<2x32xf32>
    %246 = vector.extract_strided_slice %244 {offsets = [0, 0], sizes = [2, 32], strides = [1, 1]} : vector<2x64xf32> to vector<2x32xf32>
    %247 = vector.extract_strided_slice %232 {offsets = [0, 64], sizes = [2, 32], strides = [1, 1]} : vector<2x192xf32> to vector<2x32xf32>
    %248 = arith.mulf %246, %247 : vector<2x32xf32>
    %249 = arith.addf %245, %248 : vector<2x32xf32>
    %250 = math.tanh %249 : vector<2x32xf32>
    %251 = vector.extract_strided_slice %244 {offsets = [0, 32], sizes = [2, 32], strides = [1, 1]} : vector<2x64xf32> to vector<2x32xf32>
    %cst_59 = arith.constant 1.000000e+00 : f32
    %252 = vector.broadcast %cst_59 : f32 to vector<2x32xf32>
    %253 = arith.subf %252, %251 : vector<2x32xf32>
    %254 = arith.mulf %253, %250 : vector<2x32xf32>
    %255 = vector.extract_strided_slice %244 {offsets = [0, 32], sizes = [2, 32], strides = [1, 1]} : vector<2x64xf32> to vector<2x32xf32>
    %256 = vector.extract_strided_slice %230 {offsets = [0, 0], sizes = [2, 32], strides = [1, 1]} : vector<2x64xf32> to vector<2x32xf32>
    %257 = arith.mulf %255, %256 : vector<2x32xf32>
    %258 = arith.addf %254, %257 : vector<2x32xf32>
    %259 = vector.extract_strided_slice %234 {offsets = [0, 96], sizes = [2, 64], strides = [1, 1]} : vector<2x192xf32> to vector<2x64xf32>
    %260 = vector.extract_strided_slice %232 {offsets = [0, 96], sizes = [2, 64], strides = [1, 1]} : vector<2x192xf32> to vector<2x64xf32>
    %261 = arith.addf %259, %260 : vector<2x64xf32>
    %cst_60 = arith.constant 0.000000e+00 : f32
    %262 = vector.broadcast %cst_60 : f32 to vector<2x64xf32>
    %263 = arith.subf %262, %261 : vector<2x64xf32>
    %264 = math.exp %263 : vector<2x64xf32>
    %cst_61 = arith.constant 1.000000e+00 : f32
    %265 = vector.broadcast %cst_61 : f32 to vector<2x64xf32>
    %266 = arith.addf %265, %264 : vector<2x64xf32>
    %cst_62 = arith.constant 1.000000e+00 : f32
    %267 = vector.broadcast %cst_62 : f32 to vector<2x64xf32>
    %268 = arith.divf %267, %266 : vector<2x64xf32>
    %269 = vector.extract_strided_slice %234 {offsets = [0, 160], sizes = [2, 32], strides = [1, 1]} : vector<2x192xf32> to vector<2x32xf32>
    %270 = vector.extract_strided_slice %268 {offsets = [0, 0], sizes = [2, 32], strides = [1, 1]} : vector<2x64xf32> to vector<2x32xf32>
    %271 = vector.extract_strided_slice %232 {offsets = [0, 160], sizes = [2, 32], strides = [1, 1]} : vector<2x192xf32> to vector<2x32xf32>
    %272 = arith.mulf %270, %271 : vector<2x32xf32>
    %273 = arith.addf %269, %272 : vector<2x32xf32>
    %274 = math.tanh %273 : vector<2x32xf32>
    %275 = vector.extract_strided_slice %268 {offsets = [0, 32], sizes = [2, 32], strides = [1, 1]} : vector<2x64xf32> to vector<2x32xf32>
    %cst_63 = arith.constant 1.000000e+00 : f32
    %276 = vector.broadcast %cst_63 : f32 to vector<2x32xf32>
    %277 = arith.subf %276, %275 : vector<2x32xf32>
    %278 = arith.mulf %277, %274 : vector<2x32xf32>
    %279 = vector.extract_strided_slice %268 {offsets = [0, 32], sizes = [2, 32], strides = [1, 1]} : vector<2x64xf32> to vector<2x32xf32>
    %280 = vector.extract_strided_slice %230 {offsets = [0, 32], sizes = [2, 32], strides = [1, 1]} : vector<2x64xf32> to vector<2x32xf32>
    %281 = arith.mulf %279, %280 : vector<2x32xf32>
    %282 = arith.addf %278, %281 : vector<2x32xf32>
    %c8_64 = arith.constant 8 : index
    %c0_65 = arith.constant 0 : index
    %283 = vector.load %arg13[%c8_64, %c0_65] : memref<16x32xf32, #tpu.memory_space<vmem>>, vector<2x32xf32>
    tpu.vector_store %arg13[%c8_64, %c0_65], %258 {strides = array<i32>} : memref<16x32xf32, #tpu.memory_space<vmem>>, vector<2x32xf32>,
    %c6_66 = arith.constant 6 : index
    %c0_67 = arith.constant 0 : index
    %284 = vector.load %arg14[%c6_66, %c0_67] : memref<16x32xf32, #tpu.memory_space<vmem>>, vector<2x32xf32>
    tpu.vector_store %arg14[%c6_66, %c0_67], %282 {strides = array<i32>} : memref<16x32xf32, #tpu.memory_space<vmem>>, vector<2x32xf32>,
    %285 = tpu.concatenate %258, %282 in 1 : vector<2x32xf32>, vector<2x32xf32> -> vector<2x64xf32>
    %cst_68 = arith.constant dense<0.000000e+00> : vector<2x192xf32>
    %286 = tpu.matmul %285, %6, %cst_68 {dimension_numbers = #tpu.dot_dimension_numbers<[1], [0], [0], [1], [0, 0, 1, 1], [], []>} : vector<2x64xf32>, vector<64x192xf32>, vector<2x192xf32> -> vector<2x192xf32>
    %287 = arith.addf %286, %9 : vector<2x192xf32>
    %288 = vector.extract_strided_slice %5 {offsets = [10, 0], sizes = [2, 192], strides = [1, 1]} : vector<16x192xf32> to vector<2x192xf32>
    %289 = vector.extract_strided_slice %5 {offsets = [4, 0], sizes = [2, 192], strides = [1, 1]} : vector<16x192xf32> to vector<2x192xf32>
    %290 = vector.extract_strided_slice %288 {offsets = [0, 0], sizes = [2, 64], strides = [1, 1]} : vector<2x192xf32> to vector<2x64xf32>
    %291 = vector.extract_strided_slice %287 {offsets = [0, 0], sizes = [2, 64], strides = [1, 1]} : vector<2x192xf32> to vector<2x64xf32>
    %292 = arith.addf %290, %291 : vector<2x64xf32>
    %cst_69 = arith.constant 0.000000e+00 : f32
    %293 = vector.broadcast %cst_69 : f32 to vector<2x64xf32>
    %294 = arith.subf %293, %292 : vector<2x64xf32>
    %295 = math.exp %294 : vector<2x64xf32>
    %cst_70 = arith.constant 1.000000e+00 : f32
    %296 = vector.broadcast %cst_70 : f32 to vector<2x64xf32>
    %297 = arith.addf %296, %295 : vector<2x64xf32>
    %cst_71 = arith.constant 1.000000e+00 : f32
    %298 = vector.broadcast %cst_71 : f32 to vector<2x64xf32>
    %299 = arith.divf %298, %297 : vector<2x64xf32>
    %300 = vector.extract_strided_slice %288 {offsets = [0, 64], sizes = [2, 32], strides = [1, 1]} : vector<2x192xf32> to vector<2x32xf32>
    %301 = vector.extract_strided_slice %299 {offsets = [0, 0], sizes = [2, 32], strides = [1, 1]} : vector<2x64xf32> to vector<2x32xf32>
    %302 = vector.extract_strided_slice %287 {offsets = [0, 64], sizes = [2, 32], strides = [1, 1]} : vector<2x192xf32> to vector<2x32xf32>
    %303 = arith.mulf %301, %302 : vector<2x32xf32>
    %304 = arith.addf %300, %303 : vector<2x32xf32>
    %305 = math.tanh %304 : vector<2x32xf32>
    %306 = vector.extract_strided_slice %299 {offsets = [0, 32], sizes = [2, 32], strides = [1, 1]} : vector<2x64xf32> to vector<2x32xf32>
    %cst_72 = arith.constant 1.000000e+00 : f32
    %307 = vector.broadcast %cst_72 : f32 to vector<2x32xf32>
    %308 = arith.subf %307, %306 : vector<2x32xf32>
    %309 = arith.mulf %308, %305 : vector<2x32xf32>
    %310 = vector.extract_strided_slice %299 {offsets = [0, 32], sizes = [2, 32], strides = [1, 1]} : vector<2x64xf32> to vector<2x32xf32>
    %311 = vector.extract_strided_slice %285 {offsets = [0, 0], sizes = [2, 32], strides = [1, 1]} : vector<2x64xf32> to vector<2x32xf32>
    %312 = arith.mulf %310, %311 : vector<2x32xf32>
    %313 = arith.addf %309, %312 : vector<2x32xf32>
    %314 = vector.extract_strided_slice %289 {offsets = [0, 96], sizes = [2, 64], strides = [1, 1]} : vector<2x192xf32> to vector<2x64xf32>
    %315 = vector.extract_strided_slice %287 {offsets = [0, 96], sizes = [2, 64], strides = [1, 1]} : vector<2x192xf32> to vector<2x64xf32>
    %316 = arith.addf %314, %315 : vector<2x64xf32>
    %cst_73 = arith.constant 0.000000e+00 : f32
    %317 = vector.broadcast %cst_73 : f32 to vector<2x64xf32>
    %318 = arith.subf %317, %316 : vector<2x64xf32>
    %319 = math.exp %318 : vector<2x64xf32>
    %cst_74 = arith.constant 1.000000e+00 : f32
    %320 = vector.broadcast %cst_74 : f32 to vector<2x64xf32>
    %321 = arith.addf %320, %319 : vector<2x64xf32>
    %cst_75 = arith.constant 1.000000e+00 : f32
    %322 = vector.broadcast %cst_75 : f32 to vector<2x64xf32>
    %323 = arith.divf %322, %321 : vector<2x64xf32>
    %324 = vector.extract_strided_slice %289 {offsets = [0, 160], sizes = [2, 32], strides = [1, 1]} : vector<2x192xf32> to vector<2x32xf32>
    %325 = vector.extract_strided_slice %323 {offsets = [0, 0], sizes = [2, 32], strides = [1, 1]} : vector<2x64xf32> to vector<2x32xf32>
    %326 = vector.extract_strided_slice %287 {offsets = [0, 160], sizes = [2, 32], strides = [1, 1]} : vector<2x192xf32> to vector<2x32xf32>
    %327 = arith.mulf %325, %326 : vector<2x32xf32>
    %328 = arith.addf %324, %327 : vector<2x32xf32>
    %329 = math.tanh %328 : vector<2x32xf32>
    %330 = vector.extract_strided_slice %323 {offsets = [0, 32], sizes = [2, 32], strides = [1, 1]} : vector<2x64xf32> to vector<2x32xf32>
    %cst_76 = arith.constant 1.000000e+00 : f32
    %331 = vector.broadcast %cst_76 : f32 to vector<2x32xf32>
    %332 = arith.subf %331, %330 : vector<2x32xf32>
    %333 = arith.mulf %332, %329 : vector<2x32xf32>
    %334 = vector.extract_strided_slice %323 {offsets = [0, 32], sizes = [2, 32], strides = [1, 1]} : vector<2x64xf32> to vector<2x32xf32>
    %335 = vector.extract_strided_slice %285 {offsets = [0, 32], sizes = [2, 32], strides = [1, 1]} : vector<2x64xf32> to vector<2x32xf32>
    %336 = arith.mulf %334, %335 : vector<2x32xf32>
    %337 = arith.addf %333, %336 : vector<2x32xf32>
    %c10_77 = arith.constant 10 : index
    %c0_78 = arith.constant 0 : index
    %338 = vector.load %arg13[%c10_77, %c0_78] : memref<16x32xf32, #tpu.memory_space<vmem>>, vector<2x32xf32>
    tpu.vector_store %arg13[%c10_77, %c0_78], %313 {strides = array<i32>} : memref<16x32xf32, #tpu.memory_space<vmem>>, vector<2x32xf32>,
    %c4_79 = arith.constant 4 : index
    %c0_80 = arith.constant 0 : index
    %339 = vector.load %arg14[%c4_79, %c0_80] : memref<16x32xf32, #tpu.memory_space<vmem>>, vector<2x32xf32>
    tpu.vector_store %arg14[%c4_79, %c0_80], %337 {strides = array<i32>} : memref<16x32xf32, #tpu.memory_space<vmem>>, vector<2x32xf32>,
    %340 = tpu.concatenate %313, %337 in 1 : vector<2x32xf32>, vector<2x32xf32> -> vector<2x64xf32>
    %cst_81 = arith.constant dense<0.000000e+00> : vector<2x192xf32>
    %341 = tpu.matmul %340, %6, %cst_81 {dimension_numbers = #tpu.dot_dimension_numbers<[1], [0], [0], [1], [0, 0, 1, 1], [], []>} : vector<2x64xf32>, vector<64x192xf32>, vector<2x192xf32> -> vector<2x192xf32>
    %342 = arith.addf %341, %9 : vector<2x192xf32>
    %343 = vector.extract_strided_slice %5 {offsets = [12, 0], sizes = [2, 192], strides = [1, 1]} : vector<16x192xf32> to vector<2x192xf32>
    %344 = vector.extract_strided_slice %5 {offsets = [2, 0], sizes = [2, 192], strides = [1, 1]} : vector<16x192xf32> to vector<2x192xf32>
    %345 = vector.extract_strided_slice %343 {offsets = [0, 0], sizes = [2, 64], strides = [1, 1]} : vector<2x192xf32> to vector<2x64xf32>
    %346 = vector.extract_strided_slice %342 {offsets = [0, 0], sizes = [2, 64], strides = [1, 1]} : vector<2x192xf32> to vector<2x64xf32>
    %347 = arith.addf %345, %346 : vector<2x64xf32>
    %cst_82 = arith.constant 0.000000e+00 : f32
    %348 = vector.broadcast %cst_82 : f32 to vector<2x64xf32>
    %349 = arith.subf %348, %347 : vector<2x64xf32>
    %350 = math.exp %349 : vector<2x64xf32>
    %cst_83 = arith.constant 1.000000e+00 : f32
    %351 = vector.broadcast %cst_83 : f32 to vector<2x64xf32>
    %352 = arith.addf %351, %350 : vector<2x64xf32>
    %cst_84 = arith.constant 1.000000e+00 : f32
    %353 = vector.broadcast %cst_84 : f32 to vector<2x64xf32>
    %354 = arith.divf %353, %352 : vector<2x64xf32>
    %355 = vector.extract_strided_slice %343 {offsets = [0, 64], sizes = [2, 32], strides = [1, 1]} : vector<2x192xf32> to vector<2x32xf32>
    %356 = vector.extract_strided_slice %354 {offsets = [0, 0], sizes = [2, 32], strides = [1, 1]} : vector<2x64xf32> to vector<2x32xf32>
    %357 = vector.extract_strided_slice %342 {offsets = [0, 64], sizes = [2, 32], strides = [1, 1]} : vector<2x192xf32> to vector<2x32xf32>
    %358 = arith.mulf %356, %357 : vector<2x32xf32>
    %359 = arith.addf %355, %358 : vector<2x32xf32>
    %360 = math.tanh %359 : vector<2x32xf32>
    %361 = vector.extract_strided_slice %354 {offsets = [0, 32], sizes = [2, 32], strides = [1, 1]} : vector<2x64xf32> to vector<2x32xf32>
    %cst_85 = arith.constant 1.000000e+00 : f32
    %362 = vector.broadcast %cst_85 : f32 to vector<2x32xf32>
    %363 = arith.subf %362, %361 : vector<2x32xf32>
    %364 = arith.mulf %363, %360 : vector<2x32xf32>
    %365 = vector.extract_strided_slice %354 {offsets = [0, 32], sizes = [2, 32], strides = [1, 1]} : vector<2x64xf32> to vector<2x32xf32>
    %366 = vector.extract_strided_slice %340 {offsets = [0, 0], sizes = [2, 32], strides = [1, 1]} : vector<2x64xf32> to vector<2x32xf32>
    %367 = arith.mulf %365, %366 : vector<2x32xf32>
    %368 = arith.addf %364, %367 : vector<2x32xf32>
    %369 = vector.extract_strided_slice %344 {offsets = [0, 96], sizes = [2, 64], strides = [1, 1]} : vector<2x192xf32> to vector<2x64xf32>
    %370 = vector.extract_strided_slice %342 {offsets = [0, 96], sizes = [2, 64], strides = [1, 1]} : vector<2x192xf32> to vector<2x64xf32>
    %371 = arith.addf %369, %370 : vector<2x64xf32>
    %cst_86 = arith.constant 0.000000e+00 : f32
    %372 = vector.broadcast %cst_86 : f32 to vector<2x64xf32>
    %373 = arith.subf %372, %371 : vector<2x64xf32>
    %374 = math.exp %373 : vector<2x64xf32>
    %cst_87 = arith.constant 1.000000e+00 : f32
    %375 = vector.broadcast %cst_87 : f32 to vector<2x64xf32>
    %376 = arith.addf %375, %374 : vector<2x64xf32>
    %cst_88 = arith.constant 1.000000e+00 : f32
    %377 = vector.broadcast %cst_88 : f32 to vector<2x64xf32>
    %378 = arith.divf %377, %376 : vector<2x64xf32>
    %379 = vector.extract_strided_slice %344 {offsets = [0, 160], sizes = [2, 32], strides = [1, 1]} : vector<2x192xf32> to vector<2x32xf32>
    %380 = vector.extract_strided_slice %378 {offsets = [0, 0], sizes = [2, 32], strides = [1, 1]} : vector<2x64xf32> to vector<2x32xf32>
    %381 = vector.extract_strided_slice %342 {offsets = [0, 160], sizes = [2, 32], strides = [1, 1]} : vector<2x192xf32> to vector<2x32xf32>
    %382 = arith.mulf %380, %381 : vector<2x32xf32>
    %383 = arith.addf %379, %382 : vector<2x32xf32>
    %384 = math.tanh %383 : vector<2x32xf32>
    %385 = vector.extract_strided_slice %378 {offsets = [0, 32], sizes = [2, 32], strides = [1, 1]} : vector<2x64xf32> to vector<2x32xf32>
    %cst_89 = arith.constant 1.000000e+00 : f32
    %386 = vector.broadcast %cst_89 : f32 to vector<2x32xf32>
    %387 = arith.subf %386, %385 : vector<2x32xf32>
    %388 = arith.mulf %387, %384 : vector<2x32xf32>
    %389 = vector.extract_strided_slice %378 {offsets = [0, 32], sizes = [2, 32], strides = [1, 1]} : vector<2x64xf32> to vector<2x32xf32>
    %390 = vector.extract_strided_slice %340 {offsets = [0, 32], sizes = [2, 32], strides = [1, 1]} : vector<2x64xf32> to vector<2x32xf32>
    %391 = arith.mulf %389, %390 : vector<2x32xf32>
    %392 = arith.addf %388, %391 : vector<2x32xf32>
    %c12_90 = arith.constant 12 : index
    %c0_91 = arith.constant 0 : index
    %393 = vector.load %arg13[%c12_90, %c0_91] : memref<16x32xf32, #tpu.memory_space<vmem>>, vector<2x32xf32>
    tpu.vector_store %arg13[%c12_90, %c0_91], %368 {strides = array<i32>} : memref<16x32xf32, #tpu.memory_space<vmem>>, vector<2x32xf32>,
    %c2_92 = arith.constant 2 : index
    %c0_93 = arith.constant 0 : index
    %394 = vector.load %arg14[%c2_92, %c0_93] : memref<16x32xf32, #tpu.memory_space<vmem>>, vector<2x32xf32>
    tpu.vector_store %arg14[%c2_92, %c0_93], %392 {strides = array<i32>} : memref<16x32xf32, #tpu.memory_space<vmem>>, vector<2x32xf32>,
    %395 = tpu.concatenate %368, %392 in 1 : vector<2x32xf32>, vector<2x32xf32> -> vector<2x64xf32>
    %cst_94 = arith.constant dense<0.000000e+00> : vector<2x192xf32>
    %396 = tpu.matmul %395, %6, %cst_94 {dimension_numbers = #tpu.dot_dimension_numbers<[1], [0], [0], [1], [0, 0, 1, 1], [], []>} : vector<2x64xf32>, vector<64x192xf32>, vector<2x192xf32> -> vector<2x192xf32>
    %397 = arith.addf %396, %9 : vector<2x192xf32>
    %398 = vector.extract_strided_slice %5 {offsets = [14, 0], sizes = [2, 192], strides = [1, 1]} : vector<16x192xf32> to vector<2x192xf32>
    %399 = vector.extract_strided_slice %5 {offsets = [0, 0], sizes = [2, 192], strides = [1, 1]} : vector<16x192xf32> to vector<2x192xf32>
    %400 = vector.extract_strided_slice %398 {offsets = [0, 0], sizes = [2, 64], strides = [1, 1]} : vector<2x192xf32> to vector<2x64xf32>
    %401 = vector.extract_strided_slice %397 {offsets = [0, 0], sizes = [2, 64], strides = [1, 1]} : vector<2x192xf32> to vector<2x64xf32>
    %402 = arith.addf %400, %401 : vector<2x64xf32>
    %cst_95 = arith.constant 0.000000e+00 : f32
    %403 = vector.broadcast %cst_95 : f32 to vector<2x64xf32>
    %404 = arith.subf %403, %402 : vector<2x64xf32>
    %405 = math.exp %404 : vector<2x64xf32>
    %cst_96 = arith.constant 1.000000e+00 : f32
    %406 = vector.broadcast %cst_96 : f32 to vector<2x64xf32>
    %407 = arith.addf %406, %405 : vector<2x64xf32>
    %cst_97 = arith.constant 1.000000e+00 : f32
    %408 = vector.broadcast %cst_97 : f32 to vector<2x64xf32>
    %409 = arith.divf %408, %407 : vector<2x64xf32>
    %410 = vector.extract_strided_slice %398 {offsets = [0, 64], sizes = [2, 32], strides = [1, 1]} : vector<2x192xf32> to vector<2x32xf32>
    %411 = vector.extract_strided_slice %409 {offsets = [0, 0], sizes = [2, 32], strides = [1, 1]} : vector<2x64xf32> to vector<2x32xf32>
    %412 = vector.extract_strided_slice %397 {offsets = [0, 64], sizes = [2, 32], strides = [1, 1]} : vector<2x192xf32> to vector<2x32xf32>
    %413 = arith.mulf %411, %412 : vector<2x32xf32>
    %414 = arith.addf %410, %413 : vector<2x32xf32>
    %415 = math.tanh %414 : vector<2x32xf32>
    %416 = vector.extract_strided_slice %409 {offsets = [0, 32], sizes = [2, 32], strides = [1, 1]} : vector<2x64xf32> to vector<2x32xf32>
    %cst_98 = arith.constant 1.000000e+00 : f32
    %417 = vector.broadcast %cst_98 : f32 to vector<2x32xf32>
    %418 = arith.subf %417, %416 : vector<2x32xf32>
    %419 = arith.mulf %418, %415 : vector<2x32xf32>
    %420 = vector.extract_strided_slice %409 {offsets = [0, 32], sizes = [2, 32], strides = [1, 1]} : vector<2x64xf32> to vector<2x32xf32>
    %421 = vector.extract_strided_slice %395 {offsets = [0, 0], sizes = [2, 32], strides = [1, 1]} : vector<2x64xf32> to vector<2x32xf32>
    %422 = arith.mulf %420, %421 : vector<2x32xf32>
    %423 = arith.addf %419, %422 : vector<2x32xf32>
    %424 = vector.extract_strided_slice %399 {offsets = [0, 96], sizes = [2, 64], strides = [1, 1]} : vector<2x192xf32> to vector<2x64xf32>
    %425 = vector.extract_strided_slice %397 {offsets = [0, 96], sizes = [2, 64], strides = [1, 1]} : vector<2x192xf32> to vector<2x64xf32>
    %426 = arith.addf %424, %425 : vector<2x64xf32>
    %cst_99 = arith.constant 0.000000e+00 : f32
    %427 = vector.broadcast %cst_99 : f32 to vector<2x64xf32>
    %428 = arith.subf %427, %426 : vector<2x64xf32>
    %429 = math.exp %428 : vector<2x64xf32>
    %cst_100 = arith.constant 1.000000e+00 : f32
    %430 = vector.broadcast %cst_100 : f32 to vector<2x64xf32>
    %431 = arith.addf %430, %429 : vector<2x64xf32>
    %cst_101 = arith.constant 1.000000e+00 : f32
    %432 = vector.broadcast %cst_101 : f32 to vector<2x64xf32>
    %433 = arith.divf %432, %431 : vector<2x64xf32>
    %434 = vector.extract_strided_slice %399 {offsets = [0, 160], sizes = [2, 32], strides = [1, 1]} : vector<2x192xf32> to vector<2x32xf32>
    %435 = vector.extract_strided_slice %433 {offsets = [0, 0], sizes = [2, 32], strides = [1, 1]} : vector<2x64xf32> to vector<2x32xf32>
    %436 = vector.extract_strided_slice %397 {offsets = [0, 160], sizes = [2, 32], strides = [1, 1]} : vector<2x192xf32> to vector<2x32xf32>
    %437 = arith.mulf %435, %436 : vector<2x32xf32>
    %438 = arith.addf %434, %437 : vector<2x32xf32>
    %439 = math.tanh %438 : vector<2x32xf32>
    %440 = vector.extract_strided_slice %433 {offsets = [0, 32], sizes = [2, 32], strides = [1, 1]} : vector<2x64xf32> to vector<2x32xf32>
    %cst_102 = arith.constant 1.000000e+00 : f32
    %441 = vector.broadcast %cst_102 : f32 to vector<2x32xf32>
    %442 = arith.subf %441, %440 : vector<2x32xf32>
    %443 = arith.mulf %442, %439 : vector<2x32xf32>
    %444 = vector.extract_strided_slice %433 {offsets = [0, 32], sizes = [2, 32], strides = [1, 1]} : vector<2x64xf32> to vector<2x32xf32>
    %445 = vector.extract_strided_slice %395 {offsets = [0, 32], sizes = [2, 32], strides = [1, 1]} : vector<2x64xf32> to vector<2x32xf32>
    %446 = arith.mulf %444, %445 : vector<2x32xf32>
    %447 = arith.addf %443, %446 : vector<2x32xf32>
    %c14_103 = arith.constant 14 : index
    %c0_104 = arith.constant 0 : index
    %448 = vector.load %arg13[%c14_103, %c0_104] : memref<16x32xf32, #tpu.memory_space<vmem>>, vector<2x32xf32>
    tpu.vector_store %arg13[%c14_103, %c0_104], %423 {strides = array<i32>} : memref<16x32xf32, #tpu.memory_space<vmem>>, vector<2x32xf32>,
    %c0_105 = arith.constant 0 : index
    %c0_106 = arith.constant 0 : index
    %449 = vector.load %arg14[%c0_105, %c0_106] : memref<16x32xf32, #tpu.memory_space<vmem>>, vector<2x32xf32>
    tpu.vector_store %arg14[%c0_105, %c0_106], %447 {strides = array<i32>} : memref<16x32xf32, #tpu.memory_space<vmem>>, vector<2x32xf32>,
    %c0_107 = arith.constant 0 : index
    %c0_108 = arith.constant 0 : index
    %450 = vector.load %arg13[%c0_107, %c0_108] : memref<16x32xf32, #tpu.memory_space<vmem>>, vector<16x32xf32>
    %c0_109 = arith.constant 0 : index
    %c0_110 = arith.constant 0 : index
    %451 = vector.load %arg5[%c0_109, %c0_110] : memref<32x192xf32, #tpu.memory_space<vmem>>, vector<32x192xf32>
    %cst_111 = arith.constant dense<0.000000e+00> : vector<16x192xf32>
    %452 = tpu.matmul %450, %451, %cst_111 {dimension_numbers = #tpu.dot_dimension_numbers<[1], [0], [0], [1], [0, 0, 1, 1], [], []>} : vector<16x32xf32>, vector<32x192xf32>, vector<16x192xf32> -> vector<16x192xf32>
    %c0_112 = arith.constant 0 : index
    %c0_113 = arith.constant 0 : index
    %453 = vector.load %arg14[%c0_112, %c0_113] : memref<16x32xf32, #tpu.memory_space<vmem>>, vector<16x32xf32>
    %c0_114 = arith.constant 0 : index
    %c0_115 = arith.constant 0 : index
    %454 = vector.load %arg6[%c0_114, %c0_115] : memref<32x192xf32, #tpu.memory_space<vmem>>, vector<32x192xf32>
    %cst_116 = arith.constant dense<0.000000e+00> : vector<16x192xf32>
    %455 = tpu.matmul %453, %454, %cst_116 {dimension_numbers = #tpu.dot_dimension_numbers<[1], [0], [0], [1], [0, 0, 1, 1], [], []>} : vector<16x32xf32>, vector<32x192xf32>, vector<16x192xf32> -> vector<16x192xf32>
    %456 = arith.addf %452, %455 : vector<16x192xf32>
    %c0_117 = arith.constant 0 : index
    %c0_118 = arith.constant 0 : index
    %457 = vector.load %arg7[%c0_117, %c0_118] : memref<1x192xf32, #tpu.memory_space<vmem>>, vector<1x192xf32>
    %458 = vector.broadcast %457 : vector<1x192xf32> to vector<16x192xf32>
    %459 = arith.addf %456, %458 : vector<16x192xf32>
    %c0_119 = arith.constant 0 : index
    %c0_120 = arith.constant 0 : index
    %460 = vector.load %arg8[%c0_119, %c0_120] : memref<64x192xf32, #tpu.memory_space<vmem>>, vector<64x192xf32>
    %c0_121 = arith.constant 0 : index
    %c0_122 = arith.constant 0 : index
    %461 = vector.load %arg9[%c0_121, %c0_122] : memref<1x192xf32, #tpu.memory_space<vmem>>, vector<1x192xf32>
    %462 = vector.shape_cast %461 : vector<1x192xf32> to vector<1x192xf32>
    %463 = vector.broadcast %462 : vector<1x192xf32> to vector<2x192xf32>
    %cst_123 = arith.constant 0.000000e+00 : f32
    %464 = vector.broadcast %cst_123 : f32 to vector<2x64xf32>
    %cst_124 = arith.constant dense<0.000000e+00> : vector<2x192xf32>
    %465 = tpu.matmul %464, %460, %cst_124 {dimension_numbers = #tpu.dot_dimension_numbers<[1], [0], [0], [1], [0, 0, 1, 1], [], []>} : vector<2x64xf32>, vector<64x192xf32>, vector<2x192xf32> -> vector<2x192xf32>
    %466 = arith.addf %465, %463 : vector<2x192xf32>
    %467 = vector.extract_strided_slice %459 {offsets = [0, 0], sizes = [2, 192], strides = [1, 1]} : vector<16x192xf32> to vector<2x192xf32>
    %468 = vector.extract_strided_slice %459 {offsets = [14, 0], sizes = [2, 192], strides = [1, 1]} : vector<16x192xf32> to vector<2x192xf32>
    %469 = vector.extract_strided_slice %467 {offsets = [0, 0], sizes = [2, 64], strides = [1, 1]} : vector<2x192xf32> to vector<2x64xf32>
    %470 = vector.extract_strided_slice %466 {offsets = [0, 0], sizes = [2, 64], strides = [1, 1]} : vector<2x192xf32> to vector<2x64xf32>
    %471 = arith.addf %469, %470 : vector<2x64xf32>
    %cst_125 = arith.constant 0.000000e+00 : f32
    %472 = vector.broadcast %cst_125 : f32 to vector<2x64xf32>
    %473 = arith.subf %472, %471 : vector<2x64xf32>
    %474 = math.exp %473 : vector<2x64xf32>
    %cst_126 = arith.constant 1.000000e+00 : f32
    %475 = vector.broadcast %cst_126 : f32 to vector<2x64xf32>
    %476 = arith.addf %475, %474 : vector<2x64xf32>
    %cst_127 = arith.constant 1.000000e+00 : f32
    %477 = vector.broadcast %cst_127 : f32 to vector<2x64xf32>
    %478 = arith.divf %477, %476 : vector<2x64xf32>
    %479 = vector.extract_strided_slice %467 {offsets = [0, 64], sizes = [2, 32], strides = [1, 1]} : vector<2x192xf32> to vector<2x32xf32>
    %480 = vector.extract_strided_slice %478 {offsets = [0, 0], sizes = [2, 32], strides = [1, 1]} : vector<2x64xf32> to vector<2x32xf32>
    %481 = vector.extract_strided_slice %466 {offsets = [0, 64], sizes = [2, 32], strides = [1, 1]} : vector<2x192xf32> to vector<2x32xf32>
    %482 = arith.mulf %480, %481 : vector<2x32xf32>
    %483 = arith.addf %479, %482 : vector<2x32xf32>
    %484 = math.tanh %483 : vector<2x32xf32>
    %485 = vector.extract_strided_slice %478 {offsets = [0, 32], sizes = [2, 32], strides = [1, 1]} : vector<2x64xf32> to vector<2x32xf32>
    %cst_128 = arith.constant 1.000000e+00 : f32
    %486 = vector.broadcast %cst_128 : f32 to vector<2x32xf32>
    %487 = arith.subf %486, %485 : vector<2x32xf32>
    %488 = arith.mulf %487, %484 : vector<2x32xf32>
    %489 = vector.extract_strided_slice %478 {offsets = [0, 32], sizes = [2, 32], strides = [1, 1]} : vector<2x64xf32> to vector<2x32xf32>
    %490 = vector.extract_strided_slice %464 {offsets = [0, 0], sizes = [2, 32], strides = [1, 1]} : vector<2x64xf32> to vector<2x32xf32>
    %491 = arith.mulf %489, %490 : vector<2x32xf32>
    %492 = arith.addf %488, %491 : vector<2x32xf32>
    %493 = vector.extract_strided_slice %468 {offsets = [0, 96], sizes = [2, 64], strides = [1, 1]} : vector<2x192xf32> to vector<2x64xf32>
    %494 = vector.extract_strided_slice %466 {offsets = [0, 96], sizes = [2, 64], strides = [1, 1]} : vector<2x192xf32> to vector<2x64xf32>
    %495 = arith.addf %493, %494 : vector<2x64xf32>
    %cst_129 = arith.constant 0.000000e+00 : f32
    %496 = vector.broadcast %cst_129 : f32 to vector<2x64xf32>
    %497 = arith.subf %496, %495 : vector<2x64xf32>
    %498 = math.exp %497 : vector<2x64xf32>
    %cst_130 = arith.constant 1.000000e+00 : f32
    %499 = vector.broadcast %cst_130 : f32 to vector<2x64xf32>
    %500 = arith.addf %499, %498 : vector<2x64xf32>
    %cst_131 = arith.constant 1.000000e+00 : f32
    %501 = vector.broadcast %cst_131 : f32 to vector<2x64xf32>
    %502 = arith.divf %501, %500 : vector<2x64xf32>
    %503 = vector.extract_strided_slice %468 {offsets = [0, 160], sizes = [2, 32], strides = [1, 1]} : vector<2x192xf32> to vector<2x32xf32>
    %504 = vector.extract_strided_slice %502 {offsets = [0, 0], sizes = [2, 32], strides = [1, 1]} : vector<2x64xf32> to vector<2x32xf32>
    %505 = vector.extract_strided_slice %466 {offsets = [0, 160], sizes = [2, 32], strides = [1, 1]} : vector<2x192xf32> to vector<2x32xf32>
    %506 = arith.mulf %504, %505 : vector<2x32xf32>
    %507 = arith.addf %503, %506 : vector<2x32xf32>
    %508 = math.tanh %507 : vector<2x32xf32>
    %509 = vector.extract_strided_slice %502 {offsets = [0, 32], sizes = [2, 32], strides = [1, 1]} : vector<2x64xf32> to vector<2x32xf32>
    %cst_132 = arith.constant 1.000000e+00 : f32
    %510 = vector.broadcast %cst_132 : f32 to vector<2x32xf32>
    %511 = arith.subf %510, %509 : vector<2x32xf32>
    %512 = arith.mulf %511, %508 : vector<2x32xf32>
    %513 = vector.extract_strided_slice %502 {offsets = [0, 32], sizes = [2, 32], strides = [1, 1]} : vector<2x64xf32> to vector<2x32xf32>
    %514 = vector.extract_strided_slice %464 {offsets = [0, 32], sizes = [2, 32], strides = [1, 1]} : vector<2x64xf32> to vector<2x32xf32>
    %515 = arith.mulf %513, %514 : vector<2x32xf32>
    %516 = arith.addf %512, %515 : vector<2x32xf32>
    %517 = tpu.concatenate %492, %516 in 1 : vector<2x32xf32>, vector<2x32xf32> -> vector<2x64xf32>
    %cst_133 = arith.constant dense<0.000000e+00> : vector<2x192xf32>
    %518 = tpu.matmul %517, %460, %cst_133 {dimension_numbers = #tpu.dot_dimension_numbers<[1], [0], [0], [1], [0, 0, 1, 1], [], []>} : vector<2x64xf32>, vector<64x192xf32>, vector<2x192xf32> -> vector<2x192xf32>
    %519 = arith.addf %518, %463 : vector<2x192xf32>
    %520 = vector.extract_strided_slice %459 {offsets = [2, 0], sizes = [2, 192], strides = [1, 1]} : vector<16x192xf32> to vector<2x192xf32>
    %521 = vector.extract_strided_slice %459 {offsets = [12, 0], sizes = [2, 192], strides = [1, 1]} : vector<16x192xf32> to vector<2x192xf32>
    %522 = vector.extract_strided_slice %520 {offsets = [0, 0], sizes = [2, 64], strides = [1, 1]} : vector<2x192xf32> to vector<2x64xf32>
    %523 = vector.extract_strided_slice %519 {offsets = [0, 0], sizes = [2, 64], strides = [1, 1]} : vector<2x192xf32> to vector<2x64xf32>
    %524 = arith.addf %522, %523 : vector<2x64xf32>
    %cst_134 = arith.constant 0.000000e+00 : f32
    %525 = vector.broadcast %cst_134 : f32 to vector<2x64xf32>
    %526 = arith.subf %525, %524 : vector<2x64xf32>
    %527 = math.exp %526 : vector<2x64xf32>
    %cst_135 = arith.constant 1.000000e+00 : f32
    %528 = vector.broadcast %cst_135 : f32 to vector<2x64xf32>
    %529 = arith.addf %528, %527 : vector<2x64xf32>
    %cst_136 = arith.constant 1.000000e+00 : f32
    %530 = vector.broadcast %cst_136 : f32 to vector<2x64xf32>
    %531 = arith.divf %530, %529 : vector<2x64xf32>
    %532 = vector.extract_strided_slice %520 {offsets = [0, 64], sizes = [2, 32], strides = [1, 1]} : vector<2x192xf32> to vector<2x32xf32>
    %533 = vector.extract_strided_slice %531 {offsets = [0, 0], sizes = [2, 32], strides = [1, 1]} : vector<2x64xf32> to vector<2x32xf32>
    %534 = vector.extract_strided_slice %519 {offsets = [0, 64], sizes = [2, 32], strides = [1, 1]} : vector<2x192xf32> to vector<2x32xf32>
    %535 = arith.mulf %533, %534 : vector<2x32xf32>
    %536 = arith.addf %532, %535 : vector<2x32xf32>
    %537 = math.tanh %536 : vector<2x32xf32>
    %538 = vector.extract_strided_slice %531 {offsets = [0, 32], sizes = [2, 32], strides = [1, 1]} : vector<2x64xf32> to vector<2x32xf32>
    %cst_137 = arith.constant 1.000000e+00 : f32
    %539 = vector.broadcast %cst_137 : f32 to vector<2x32xf32>
    %540 = arith.subf %539, %538 : vector<2x32xf32>
    %541 = arith.mulf %540, %537 : vector<2x32xf32>
    %542 = vector.extract_strided_slice %531 {offsets = [0, 32], sizes = [2, 32], strides = [1, 1]} : vector<2x64xf32> to vector<2x32xf32>
    %543 = vector.extract_strided_slice %517 {offsets = [0, 0], sizes = [2, 32], strides = [1, 1]} : vector<2x64xf32> to vector<2x32xf32>
    %544 = arith.mulf %542, %543 : vector<2x32xf32>
    %545 = arith.addf %541, %544 : vector<2x32xf32>
    %546 = vector.extract_strided_slice %521 {offsets = [0, 96], sizes = [2, 64], strides = [1, 1]} : vector<2x192xf32> to vector<2x64xf32>
    %547 = vector.extract_strided_slice %519 {offsets = [0, 96], sizes = [2, 64], strides = [1, 1]} : vector<2x192xf32> to vector<2x64xf32>
    %548 = arith.addf %546, %547 : vector<2x64xf32>
    %cst_138 = arith.constant 0.000000e+00 : f32
    %549 = vector.broadcast %cst_138 : f32 to vector<2x64xf32>
    %550 = arith.subf %549, %548 : vector<2x64xf32>
    %551 = math.exp %550 : vector<2x64xf32>
    %cst_139 = arith.constant 1.000000e+00 : f32
    %552 = vector.broadcast %cst_139 : f32 to vector<2x64xf32>
    %553 = arith.addf %552, %551 : vector<2x64xf32>
    %cst_140 = arith.constant 1.000000e+00 : f32
    %554 = vector.broadcast %cst_140 : f32 to vector<2x64xf32>
    %555 = arith.divf %554, %553 : vector<2x64xf32>
    %556 = vector.extract_strided_slice %521 {offsets = [0, 160], sizes = [2, 32], strides = [1, 1]} : vector<2x192xf32> to vector<2x32xf32>
    %557 = vector.extract_strided_slice %555 {offsets = [0, 0], sizes = [2, 32], strides = [1, 1]} : vector<2x64xf32> to vector<2x32xf32>
    %558 = vector.extract_strided_slice %519 {offsets = [0, 160], sizes = [2, 32], strides = [1, 1]} : vector<2x192xf32> to vector<2x32xf32>
    %559 = arith.mulf %557, %558 : vector<2x32xf32>
    %560 = arith.addf %556, %559 : vector<2x32xf32>
    %561 = math.tanh %560 : vector<2x32xf32>
    %562 = vector.extract_strided_slice %555 {offsets = [0, 32], sizes = [2, 32], strides = [1, 1]} : vector<2x64xf32> to vector<2x32xf32>
    %cst_141 = arith.constant 1.000000e+00 : f32
    %563 = vector.broadcast %cst_141 : f32 to vector<2x32xf32>
    %564 = arith.subf %563, %562 : vector<2x32xf32>
    %565 = arith.mulf %564, %561 : vector<2x32xf32>
    %566 = vector.extract_strided_slice %555 {offsets = [0, 32], sizes = [2, 32], strides = [1, 1]} : vector<2x64xf32> to vector<2x32xf32>
    %567 = vector.extract_strided_slice %517 {offsets = [0, 32], sizes = [2, 32], strides = [1, 1]} : vector<2x64xf32> to vector<2x32xf32>
    %568 = arith.mulf %566, %567 : vector<2x32xf32>
    %569 = arith.addf %565, %568 : vector<2x32xf32>
    %570 = tpu.concatenate %545, %569 in 1 : vector<2x32xf32>, vector<2x32xf32> -> vector<2x64xf32>
    %cst_142 = arith.constant dense<0.000000e+00> : vector<2x192xf32>
    %571 = tpu.matmul %570, %460, %cst_142 {dimension_numbers = #tpu.dot_dimension_numbers<[1], [0], [0], [1], [0, 0, 1, 1], [], []>} : vector<2x64xf32>, vector<64x192xf32>, vector<2x192xf32> -> vector<2x192xf32>
    %572 = arith.addf %571, %463 : vector<2x192xf32>
    %573 = vector.extract_strided_slice %459 {offsets = [4, 0], sizes = [2, 192], strides = [1, 1]} : vector<16x192xf32> to vector<2x192xf32>
    %574 = vector.extract_strided_slice %459 {offsets = [10, 0], sizes = [2, 192], strides = [1, 1]} : vector<16x192xf32> to vector<2x192xf32>
    %575 = vector.extract_strided_slice %573 {offsets = [0, 0], sizes = [2, 64], strides = [1, 1]} : vector<2x192xf32> to vector<2x64xf32>
    %576 = vector.extract_strided_slice %572 {offsets = [0, 0], sizes = [2, 64], strides = [1, 1]} : vector<2x192xf32> to vector<2x64xf32>
    %577 = arith.addf %575, %576 : vector<2x64xf32>
    %cst_143 = arith.constant 0.000000e+00 : f32
    %578 = vector.broadcast %cst_143 : f32 to vector<2x64xf32>
    %579 = arith.subf %578, %577 : vector<2x64xf32>
    %580 = math.exp %579 : vector<2x64xf32>
    %cst_144 = arith.constant 1.000000e+00 : f32
    %581 = vector.broadcast %cst_144 : f32 to vector<2x64xf32>
    %582 = arith.addf %581, %580 : vector<2x64xf32>
    %cst_145 = arith.constant 1.000000e+00 : f32
    %583 = vector.broadcast %cst_145 : f32 to vector<2x64xf32>
    %584 = arith.divf %583, %582 : vector<2x64xf32>
    %585 = vector.extract_strided_slice %573 {offsets = [0, 64], sizes = [2, 32], strides = [1, 1]} : vector<2x192xf32> to vector<2x32xf32>
    %586 = vector.extract_strided_slice %584 {offsets = [0, 0], sizes = [2, 32], strides = [1, 1]} : vector<2x64xf32> to vector<2x32xf32>
    %587 = vector.extract_strided_slice %572 {offsets = [0, 64], sizes = [2, 32], strides = [1, 1]} : vector<2x192xf32> to vector<2x32xf32>
    %588 = arith.mulf %586, %587 : vector<2x32xf32>
    %589 = arith.addf %585, %588 : vector<2x32xf32>
    %590 = math.tanh %589 : vector<2x32xf32>
    %591 = vector.extract_strided_slice %584 {offsets = [0, 32], sizes = [2, 32], strides = [1, 1]} : vector<2x64xf32> to vector<2x32xf32>
    %cst_146 = arith.constant 1.000000e+00 : f32
    %592 = vector.broadcast %cst_146 : f32 to vector<2x32xf32>
    %593 = arith.subf %592, %591 : vector<2x32xf32>
    %594 = arith.mulf %593, %590 : vector<2x32xf32>
    %595 = vector.extract_strided_slice %584 {offsets = [0, 32], sizes = [2, 32], strides = [1, 1]} : vector<2x64xf32> to vector<2x32xf32>
    %596 = vector.extract_strided_slice %570 {offsets = [0, 0], sizes = [2, 32], strides = [1, 1]} : vector<2x64xf32> to vector<2x32xf32>
    %597 = arith.mulf %595, %596 : vector<2x32xf32>
    %598 = arith.addf %594, %597 : vector<2x32xf32>
    %599 = vector.extract_strided_slice %574 {offsets = [0, 96], sizes = [2, 64], strides = [1, 1]} : vector<2x192xf32> to vector<2x64xf32>
    %600 = vector.extract_strided_slice %572 {offsets = [0, 96], sizes = [2, 64], strides = [1, 1]} : vector<2x192xf32> to vector<2x64xf32>
    %601 = arith.addf %599, %600 : vector<2x64xf32>
    %cst_147 = arith.constant 0.000000e+00 : f32
    %602 = vector.broadcast %cst_147 : f32 to vector<2x64xf32>
    %603 = arith.subf %602, %601 : vector<2x64xf32>
    %604 = math.exp %603 : vector<2x64xf32>
    %cst_148 = arith.constant 1.000000e+00 : f32
    %605 = vector.broadcast %cst_148 : f32 to vector<2x64xf32>
    %606 = arith.addf %605, %604 : vector<2x64xf32>
    %cst_149 = arith.constant 1.000000e+00 : f32
    %607 = vector.broadcast %cst_149 : f32 to vector<2x64xf32>
    %608 = arith.divf %607, %606 : vector<2x64xf32>
    %609 = vector.extract_strided_slice %574 {offsets = [0, 160], sizes = [2, 32], strides = [1, 1]} : vector<2x192xf32> to vector<2x32xf32>
    %610 = vector.extract_strided_slice %608 {offsets = [0, 0], sizes = [2, 32], strides = [1, 1]} : vector<2x64xf32> to vector<2x32xf32>
    %611 = vector.extract_strided_slice %572 {offsets = [0, 160], sizes = [2, 32], strides = [1, 1]} : vector<2x192xf32> to vector<2x32xf32>
    %612 = arith.mulf %610, %611 : vector<2x32xf32>
    %613 = arith.addf %609, %612 : vector<2x32xf32>
    %614 = math.tanh %613 : vector<2x32xf32>
    %615 = vector.extract_strided_slice %608 {offsets = [0, 32], sizes = [2, 32], strides = [1, 1]} : vector<2x64xf32> to vector<2x32xf32>
    %cst_150 = arith.constant 1.000000e+00 : f32
    %616 = vector.broadcast %cst_150 : f32 to vector<2x32xf32>
    %617 = arith.subf %616, %615 : vector<2x32xf32>
    %618 = arith.mulf %617, %614 : vector<2x32xf32>
    %619 = vector.extract_strided_slice %608 {offsets = [0, 32], sizes = [2, 32], strides = [1, 1]} : vector<2x64xf32> to vector<2x32xf32>
    %620 = vector.extract_strided_slice %570 {offsets = [0, 32], sizes = [2, 32], strides = [1, 1]} : vector<2x64xf32> to vector<2x32xf32>
    %621 = arith.mulf %619, %620 : vector<2x32xf32>
    %622 = arith.addf %618, %621 : vector<2x32xf32>
    %623 = tpu.concatenate %598, %622 in 1 : vector<2x32xf32>, vector<2x32xf32> -> vector<2x64xf32>
    %cst_151 = arith.constant dense<0.000000e+00> : vector<2x192xf32>
    %624 = tpu.matmul %623, %460, %cst_151 {dimension_numbers = #tpu.dot_dimension_numbers<[1], [0], [0], [1], [0, 0, 1, 1], [], []>} : vector<2x64xf32>, vector<64x192xf32>, vector<2x192xf32> -> vector<2x192xf32>
    %625 = arith.addf %624, %463 : vector<2x192xf32>
    %626 = vector.extract_strided_slice %459 {offsets = [6, 0], sizes = [2, 192], strides = [1, 1]} : vector<16x192xf32> to vector<2x192xf32>
    %627 = vector.extract_strided_slice %459 {offsets = [8, 0], sizes = [2, 192], strides = [1, 1]} : vector<16x192xf32> to vector<2x192xf32>
    %628 = vector.extract_strided_slice %626 {offsets = [0, 0], sizes = [2, 64], strides = [1, 1]} : vector<2x192xf32> to vector<2x64xf32>
    %629 = vector.extract_strided_slice %625 {offsets = [0, 0], sizes = [2, 64], strides = [1, 1]} : vector<2x192xf32> to vector<2x64xf32>
    %630 = arith.addf %628, %629 : vector<2x64xf32>
    %cst_152 = arith.constant 0.000000e+00 : f32
    %631 = vector.broadcast %cst_152 : f32 to vector<2x64xf32>
    %632 = arith.subf %631, %630 : vector<2x64xf32>
    %633 = math.exp %632 : vector<2x64xf32>
    %cst_153 = arith.constant 1.000000e+00 : f32
    %634 = vector.broadcast %cst_153 : f32 to vector<2x64xf32>
    %635 = arith.addf %634, %633 : vector<2x64xf32>
    %cst_154 = arith.constant 1.000000e+00 : f32
    %636 = vector.broadcast %cst_154 : f32 to vector<2x64xf32>
    %637 = arith.divf %636, %635 : vector<2x64xf32>
    %638 = vector.extract_strided_slice %626 {offsets = [0, 64], sizes = [2, 32], strides = [1, 1]} : vector<2x192xf32> to vector<2x32xf32>
    %639 = vector.extract_strided_slice %637 {offsets = [0, 0], sizes = [2, 32], strides = [1, 1]} : vector<2x64xf32> to vector<2x32xf32>
    %640 = vector.extract_strided_slice %625 {offsets = [0, 64], sizes = [2, 32], strides = [1, 1]} : vector<2x192xf32> to vector<2x32xf32>
    %641 = arith.mulf %639, %640 : vector<2x32xf32>
    %642 = arith.addf %638, %641 : vector<2x32xf32>
    %643 = math.tanh %642 : vector<2x32xf32>
    %644 = vector.extract_strided_slice %637 {offsets = [0, 32], sizes = [2, 32], strides = [1, 1]} : vector<2x64xf32> to vector<2x32xf32>
    %cst_155 = arith.constant 1.000000e+00 : f32
    %645 = vector.broadcast %cst_155 : f32 to vector<2x32xf32>
    %646 = arith.subf %645, %644 : vector<2x32xf32>
    %647 = arith.mulf %646, %643 : vector<2x32xf32>
    %648 = vector.extract_strided_slice %637 {offsets = [0, 32], sizes = [2, 32], strides = [1, 1]} : vector<2x64xf32> to vector<2x32xf32>
    %649 = vector.extract_strided_slice %623 {offsets = [0, 0], sizes = [2, 32], strides = [1, 1]} : vector<2x64xf32> to vector<2x32xf32>
    %650 = arith.mulf %648, %649 : vector<2x32xf32>
    %651 = arith.addf %647, %650 : vector<2x32xf32>
    %652 = vector.extract_strided_slice %627 {offsets = [0, 96], sizes = [2, 64], strides = [1, 1]} : vector<2x192xf32> to vector<2x64xf32>
    %653 = vector.extract_strided_slice %625 {offsets = [0, 96], sizes = [2, 64], strides = [1, 1]} : vector<2x192xf32> to vector<2x64xf32>
    %654 = arith.addf %652, %653 : vector<2x64xf32>
    %cst_156 = arith.constant 0.000000e+00 : f32
    %655 = vector.broadcast %cst_156 : f32 to vector<2x64xf32>
    %656 = arith.subf %655, %654 : vector<2x64xf32>
    %657 = math.exp %656 : vector<2x64xf32>
    %cst_157 = arith.constant 1.000000e+00 : f32
    %658 = vector.broadcast %cst_157 : f32 to vector<2x64xf32>
    %659 = arith.addf %658, %657 : vector<2x64xf32>
    %cst_158 = arith.constant 1.000000e+00 : f32
    %660 = vector.broadcast %cst_158 : f32 to vector<2x64xf32>
    %661 = arith.divf %660, %659 : vector<2x64xf32>
    %662 = vector.extract_strided_slice %627 {offsets = [0, 160], sizes = [2, 32], strides = [1, 1]} : vector<2x192xf32> to vector<2x32xf32>
    %663 = vector.extract_strided_slice %661 {offsets = [0, 0], sizes = [2, 32], strides = [1, 1]} : vector<2x64xf32> to vector<2x32xf32>
    %664 = vector.extract_strided_slice %625 {offsets = [0, 160], sizes = [2, 32], strides = [1, 1]} : vector<2x192xf32> to vector<2x32xf32>
    %665 = arith.mulf %663, %664 : vector<2x32xf32>
    %666 = arith.addf %662, %665 : vector<2x32xf32>
    %667 = math.tanh %666 : vector<2x32xf32>
    %668 = vector.extract_strided_slice %661 {offsets = [0, 32], sizes = [2, 32], strides = [1, 1]} : vector<2x64xf32> to vector<2x32xf32>
    %cst_159 = arith.constant 1.000000e+00 : f32
    %669 = vector.broadcast %cst_159 : f32 to vector<2x32xf32>
    %670 = arith.subf %669, %668 : vector<2x32xf32>
    %671 = arith.mulf %670, %667 : vector<2x32xf32>
    %672 = vector.extract_strided_slice %661 {offsets = [0, 32], sizes = [2, 32], strides = [1, 1]} : vector<2x64xf32> to vector<2x32xf32>
    %673 = vector.extract_strided_slice %623 {offsets = [0, 32], sizes = [2, 32], strides = [1, 1]} : vector<2x64xf32> to vector<2x32xf32>
    %674 = arith.mulf %672, %673 : vector<2x32xf32>
    %675 = arith.addf %671, %674 : vector<2x32xf32>
    %676 = tpu.concatenate %651, %675 in 1 : vector<2x32xf32>, vector<2x32xf32> -> vector<2x64xf32>
    %cst_160 = arith.constant dense<0.000000e+00> : vector<2x192xf32>
    %677 = tpu.matmul %676, %460, %cst_160 {dimension_numbers = #tpu.dot_dimension_numbers<[1], [0], [0], [1], [0, 0, 1, 1], [], []>} : vector<2x64xf32>, vector<64x192xf32>, vector<2x192xf32> -> vector<2x192xf32>
    %678 = arith.addf %677, %463 : vector<2x192xf32>
    %679 = vector.extract_strided_slice %459 {offsets = [8, 0], sizes = [2, 192], strides = [1, 1]} : vector<16x192xf32> to vector<2x192xf32>
    %680 = vector.extract_strided_slice %459 {offsets = [6, 0], sizes = [2, 192], strides = [1, 1]} : vector<16x192xf32> to vector<2x192xf32>
    %681 = vector.extract_strided_slice %679 {offsets = [0, 0], sizes = [2, 64], strides = [1, 1]} : vector<2x192xf32> to vector<2x64xf32>
    %682 = vector.extract_strided_slice %678 {offsets = [0, 0], sizes = [2, 64], strides = [1, 1]} : vector<2x192xf32> to vector<2x64xf32>
    %683 = arith.addf %681, %682 : vector<2x64xf32>
    %cst_161 = arith.constant 0.000000e+00 : f32
    %684 = vector.broadcast %cst_161 : f32 to vector<2x64xf32>
    %685 = arith.subf %684, %683 : vector<2x64xf32>
    %686 = math.exp %685 : vector<2x64xf32>
    %cst_162 = arith.constant 1.000000e+00 : f32
    %687 = vector.broadcast %cst_162 : f32 to vector<2x64xf32>
    %688 = arith.addf %687, %686 : vector<2x64xf32>
    %cst_163 = arith.constant 1.000000e+00 : f32
    %689 = vector.broadcast %cst_163 : f32 to vector<2x64xf32>
    %690 = arith.divf %689, %688 : vector<2x64xf32>
    %691 = vector.extract_strided_slice %679 {offsets = [0, 64], sizes = [2, 32], strides = [1, 1]} : vector<2x192xf32> to vector<2x32xf32>
    %692 = vector.extract_strided_slice %690 {offsets = [0, 0], sizes = [2, 32], strides = [1, 1]} : vector<2x64xf32> to vector<2x32xf32>
    %693 = vector.extract_strided_slice %678 {offsets = [0, 64], sizes = [2, 32], strides = [1, 1]} : vector<2x192xf32> to vector<2x32xf32>
    %694 = arith.mulf %692, %693 : vector<2x32xf32>
    %695 = arith.addf %691, %694 : vector<2x32xf32>
    %696 = math.tanh %695 : vector<2x32xf32>
    %697 = vector.extract_strided_slice %690 {offsets = [0, 32], sizes = [2, 32], strides = [1, 1]} : vector<2x64xf32> to vector<2x32xf32>
    %cst_164 = arith.constant 1.000000e+00 : f32
    %698 = vector.broadcast %cst_164 : f32 to vector<2x32xf32>
    %699 = arith.subf %698, %697 : vector<2x32xf32>
    %700 = arith.mulf %699, %696 : vector<2x32xf32>
    %701 = vector.extract_strided_slice %690 {offsets = [0, 32], sizes = [2, 32], strides = [1, 1]} : vector<2x64xf32> to vector<2x32xf32>
    %702 = vector.extract_strided_slice %676 {offsets = [0, 0], sizes = [2, 32], strides = [1, 1]} : vector<2x64xf32> to vector<2x32xf32>
    %703 = arith.mulf %701, %702 : vector<2x32xf32>
    %704 = arith.addf %700, %703 : vector<2x32xf32>
    %705 = vector.extract_strided_slice %680 {offsets = [0, 96], sizes = [2, 64], strides = [1, 1]} : vector<2x192xf32> to vector<2x64xf32>
    %706 = vector.extract_strided_slice %678 {offsets = [0, 96], sizes = [2, 64], strides = [1, 1]} : vector<2x192xf32> to vector<2x64xf32>
    %707 = arith.addf %705, %706 : vector<2x64xf32>
    %cst_165 = arith.constant 0.000000e+00 : f32
    %708 = vector.broadcast %cst_165 : f32 to vector<2x64xf32>
    %709 = arith.subf %708, %707 : vector<2x64xf32>
    %710 = math.exp %709 : vector<2x64xf32>
    %cst_166 = arith.constant 1.000000e+00 : f32
    %711 = vector.broadcast %cst_166 : f32 to vector<2x64xf32>
    %712 = arith.addf %711, %710 : vector<2x64xf32>
    %cst_167 = arith.constant 1.000000e+00 : f32
    %713 = vector.broadcast %cst_167 : f32 to vector<2x64xf32>
    %714 = arith.divf %713, %712 : vector<2x64xf32>
    %715 = vector.extract_strided_slice %680 {offsets = [0, 160], sizes = [2, 32], strides = [1, 1]} : vector<2x192xf32> to vector<2x32xf32>
    %716 = vector.extract_strided_slice %714 {offsets = [0, 0], sizes = [2, 32], strides = [1, 1]} : vector<2x64xf32> to vector<2x32xf32>
    %717 = vector.extract_strided_slice %678 {offsets = [0, 160], sizes = [2, 32], strides = [1, 1]} : vector<2x192xf32> to vector<2x32xf32>
    %718 = arith.mulf %716, %717 : vector<2x32xf32>
    %719 = arith.addf %715, %718 : vector<2x32xf32>
    %720 = math.tanh %719 : vector<2x32xf32>
    %721 = vector.extract_strided_slice %714 {offsets = [0, 32], sizes = [2, 32], strides = [1, 1]} : vector<2x64xf32> to vector<2x32xf32>
    %cst_168 = arith.constant 1.000000e+00 : f32
    %722 = vector.broadcast %cst_168 : f32 to vector<2x32xf32>
    %723 = arith.subf %722, %721 : vector<2x32xf32>
    %724 = arith.mulf %723, %720 : vector<2x32xf32>
    %725 = vector.extract_strided_slice %714 {offsets = [0, 32], sizes = [2, 32], strides = [1, 1]} : vector<2x64xf32> to vector<2x32xf32>
    %726 = vector.extract_strided_slice %676 {offsets = [0, 32], sizes = [2, 32], strides = [1, 1]} : vector<2x64xf32> to vector<2x32xf32>
    %727 = arith.mulf %725, %726 : vector<2x32xf32>
    %728 = arith.addf %724, %727 : vector<2x32xf32>
    %729 = tpu.concatenate %704, %728 in 1 : vector<2x32xf32>, vector<2x32xf32> -> vector<2x64xf32>
    %cst_169 = arith.constant dense<0.000000e+00> : vector<2x192xf32>
    %730 = tpu.matmul %729, %460, %cst_169 {dimension_numbers = #tpu.dot_dimension_numbers<[1], [0], [0], [1], [0, 0, 1, 1], [], []>} : vector<2x64xf32>, vector<64x192xf32>, vector<2x192xf32> -> vector<2x192xf32>
    %731 = arith.addf %730, %463 : vector<2x192xf32>
    %732 = vector.extract_strided_slice %459 {offsets = [10, 0], sizes = [2, 192], strides = [1, 1]} : vector<16x192xf32> to vector<2x192xf32>
    %733 = vector.extract_strided_slice %459 {offsets = [4, 0], sizes = [2, 192], strides = [1, 1]} : vector<16x192xf32> to vector<2x192xf32>
    %734 = vector.extract_strided_slice %732 {offsets = [0, 0], sizes = [2, 64], strides = [1, 1]} : vector<2x192xf32> to vector<2x64xf32>
    %735 = vector.extract_strided_slice %731 {offsets = [0, 0], sizes = [2, 64], strides = [1, 1]} : vector<2x192xf32> to vector<2x64xf32>
    %736 = arith.addf %734, %735 : vector<2x64xf32>
    %cst_170 = arith.constant 0.000000e+00 : f32
    %737 = vector.broadcast %cst_170 : f32 to vector<2x64xf32>
    %738 = arith.subf %737, %736 : vector<2x64xf32>
    %739 = math.exp %738 : vector<2x64xf32>
    %cst_171 = arith.constant 1.000000e+00 : f32
    %740 = vector.broadcast %cst_171 : f32 to vector<2x64xf32>
    %741 = arith.addf %740, %739 : vector<2x64xf32>
    %cst_172 = arith.constant 1.000000e+00 : f32
    %742 = vector.broadcast %cst_172 : f32 to vector<2x64xf32>
    %743 = arith.divf %742, %741 : vector<2x64xf32>
    %744 = vector.extract_strided_slice %732 {offsets = [0, 64], sizes = [2, 32], strides = [1, 1]} : vector<2x192xf32> to vector<2x32xf32>
    %745 = vector.extract_strided_slice %743 {offsets = [0, 0], sizes = [2, 32], strides = [1, 1]} : vector<2x64xf32> to vector<2x32xf32>
    %746 = vector.extract_strided_slice %731 {offsets = [0, 64], sizes = [2, 32], strides = [1, 1]} : vector<2x192xf32> to vector<2x32xf32>
    %747 = arith.mulf %745, %746 : vector<2x32xf32>
    %748 = arith.addf %744, %747 : vector<2x32xf32>
    %749 = math.tanh %748 : vector<2x32xf32>
    %750 = vector.extract_strided_slice %743 {offsets = [0, 32], sizes = [2, 32], strides = [1, 1]} : vector<2x64xf32> to vector<2x32xf32>
    %cst_173 = arith.constant 1.000000e+00 : f32
    %751 = vector.broadcast %cst_173 : f32 to vector<2x32xf32>
    %752 = arith.subf %751, %750 : vector<2x32xf32>
    %753 = arith.mulf %752, %749 : vector<2x32xf32>
    %754 = vector.extract_strided_slice %743 {offsets = [0, 32], sizes = [2, 32], strides = [1, 1]} : vector<2x64xf32> to vector<2x32xf32>
    %755 = vector.extract_strided_slice %729 {offsets = [0, 0], sizes = [2, 32], strides = [1, 1]} : vector<2x64xf32> to vector<2x32xf32>
    %756 = arith.mulf %754, %755 : vector<2x32xf32>
    %757 = arith.addf %753, %756 : vector<2x32xf32>
    %758 = vector.extract_strided_slice %733 {offsets = [0, 96], sizes = [2, 64], strides = [1, 1]} : vector<2x192xf32> to vector<2x64xf32>
    %759 = vector.extract_strided_slice %731 {offsets = [0, 96], sizes = [2, 64], strides = [1, 1]} : vector<2x192xf32> to vector<2x64xf32>
    %760 = arith.addf %758, %759 : vector<2x64xf32>
    %cst_174 = arith.constant 0.000000e+00 : f32
    %761 = vector.broadcast %cst_174 : f32 to vector<2x64xf32>
    %762 = arith.subf %761, %760 : vector<2x64xf32>
    %763 = math.exp %762 : vector<2x64xf32>
    %cst_175 = arith.constant 1.000000e+00 : f32
    %764 = vector.broadcast %cst_175 : f32 to vector<2x64xf32>
    %765 = arith.addf %764, %763 : vector<2x64xf32>
    %cst_176 = arith.constant 1.000000e+00 : f32
    %766 = vector.broadcast %cst_176 : f32 to vector<2x64xf32>
    %767 = arith.divf %766, %765 : vector<2x64xf32>
    %768 = vector.extract_strided_slice %733 {offsets = [0, 160], sizes = [2, 32], strides = [1, 1]} : vector<2x192xf32> to vector<2x32xf32>
    %769 = vector.extract_strided_slice %767 {offsets = [0, 0], sizes = [2, 32], strides = [1, 1]} : vector<2x64xf32> to vector<2x32xf32>
    %770 = vector.extract_strided_slice %731 {offsets = [0, 160], sizes = [2, 32], strides = [1, 1]} : vector<2x192xf32> to vector<2x32xf32>
    %771 = arith.mulf %769, %770 : vector<2x32xf32>
    %772 = arith.addf %768, %771 : vector<2x32xf32>
    %773 = math.tanh %772 : vector<2x32xf32>
    %774 = vector.extract_strided_slice %767 {offsets = [0, 32], sizes = [2, 32], strides = [1, 1]} : vector<2x64xf32> to vector<2x32xf32>
    %cst_177 = arith.constant 1.000000e+00 : f32
    %775 = vector.broadcast %cst_177 : f32 to vector<2x32xf32>
    %776 = arith.subf %775, %774 : vector<2x32xf32>
    %777 = arith.mulf %776, %773 : vector<2x32xf32>
    %778 = vector.extract_strided_slice %767 {offsets = [0, 32], sizes = [2, 32], strides = [1, 1]} : vector<2x64xf32> to vector<2x32xf32>
    %779 = vector.extract_strided_slice %729 {offsets = [0, 32], sizes = [2, 32], strides = [1, 1]} : vector<2x64xf32> to vector<2x32xf32>
    %780 = arith.mulf %778, %779 : vector<2x32xf32>
    %781 = arith.addf %777, %780 : vector<2x32xf32>
    %782 = tpu.concatenate %757, %781 in 1 : vector<2x32xf32>, vector<2x32xf32> -> vector<2x64xf32>
    %cst_178 = arith.constant dense<0.000000e+00> : vector<2x192xf32>
    %783 = tpu.matmul %782, %460, %cst_178 {dimension_numbers = #tpu.dot_dimension_numbers<[1], [0], [0], [1], [0, 0, 1, 1], [], []>} : vector<2x64xf32>, vector<64x192xf32>, vector<2x192xf32> -> vector<2x192xf32>
    %784 = arith.addf %783, %463 : vector<2x192xf32>
    %785 = vector.extract_strided_slice %459 {offsets = [12, 0], sizes = [2, 192], strides = [1, 1]} : vector<16x192xf32> to vector<2x192xf32>
    %786 = vector.extract_strided_slice %459 {offsets = [2, 0], sizes = [2, 192], strides = [1, 1]} : vector<16x192xf32> to vector<2x192xf32>
    %787 = vector.extract_strided_slice %785 {offsets = [0, 0], sizes = [2, 64], strides = [1, 1]} : vector<2x192xf32> to vector<2x64xf32>
    %788 = vector.extract_strided_slice %784 {offsets = [0, 0], sizes = [2, 64], strides = [1, 1]} : vector<2x192xf32> to vector<2x64xf32>
    %789 = arith.addf %787, %788 : vector<2x64xf32>
    %cst_179 = arith.constant 0.000000e+00 : f32
    %790 = vector.broadcast %cst_179 : f32 to vector<2x64xf32>
    %791 = arith.subf %790, %789 : vector<2x64xf32>
    %792 = math.exp %791 : vector<2x64xf32>
    %cst_180 = arith.constant 1.000000e+00 : f32
    %793 = vector.broadcast %cst_180 : f32 to vector<2x64xf32>
    %794 = arith.addf %793, %792 : vector<2x64xf32>
    %cst_181 = arith.constant 1.000000e+00 : f32
    %795 = vector.broadcast %cst_181 : f32 to vector<2x64xf32>
    %796 = arith.divf %795, %794 : vector<2x64xf32>
    %797 = vector.extract_strided_slice %785 {offsets = [0, 64], sizes = [2, 32], strides = [1, 1]} : vector<2x192xf32> to vector<2x32xf32>
    %798 = vector.extract_strided_slice %796 {offsets = [0, 0], sizes = [2, 32], strides = [1, 1]} : vector<2x64xf32> to vector<2x32xf32>
    %799 = vector.extract_strided_slice %784 {offsets = [0, 64], sizes = [2, 32], strides = [1, 1]} : vector<2x192xf32> to vector<2x32xf32>
    %800 = arith.mulf %798, %799 : vector<2x32xf32>
    %801 = arith.addf %797, %800 : vector<2x32xf32>
    %802 = math.tanh %801 : vector<2x32xf32>
    %803 = vector.extract_strided_slice %796 {offsets = [0, 32], sizes = [2, 32], strides = [1, 1]} : vector<2x64xf32> to vector<2x32xf32>
    %cst_182 = arith.constant 1.000000e+00 : f32
    %804 = vector.broadcast %cst_182 : f32 to vector<2x32xf32>
    %805 = arith.subf %804, %803 : vector<2x32xf32>
    %806 = arith.mulf %805, %802 : vector<2x32xf32>
    %807 = vector.extract_strided_slice %796 {offsets = [0, 32], sizes = [2, 32], strides = [1, 1]} : vector<2x64xf32> to vector<2x32xf32>
    %808 = vector.extract_strided_slice %782 {offsets = [0, 0], sizes = [2, 32], strides = [1, 1]} : vector<2x64xf32> to vector<2x32xf32>
    %809 = arith.mulf %807, %808 : vector<2x32xf32>
    %810 = arith.addf %806, %809 : vector<2x32xf32>
    %811 = vector.extract_strided_slice %786 {offsets = [0, 96], sizes = [2, 64], strides = [1, 1]} : vector<2x192xf32> to vector<2x64xf32>
    %812 = vector.extract_strided_slice %784 {offsets = [0, 96], sizes = [2, 64], strides = [1, 1]} : vector<2x192xf32> to vector<2x64xf32>
    %813 = arith.addf %811, %812 : vector<2x64xf32>
    %cst_183 = arith.constant 0.000000e+00 : f32
    %814 = vector.broadcast %cst_183 : f32 to vector<2x64xf32>
    %815 = arith.subf %814, %813 : vector<2x64xf32>
    %816 = math.exp %815 : vector<2x64xf32>
    %cst_184 = arith.constant 1.000000e+00 : f32
    %817 = vector.broadcast %cst_184 : f32 to vector<2x64xf32>
    %818 = arith.addf %817, %816 : vector<2x64xf32>
    %cst_185 = arith.constant 1.000000e+00 : f32
    %819 = vector.broadcast %cst_185 : f32 to vector<2x64xf32>
    %820 = arith.divf %819, %818 : vector<2x64xf32>
    %821 = vector.extract_strided_slice %786 {offsets = [0, 160], sizes = [2, 32], strides = [1, 1]} : vector<2x192xf32> to vector<2x32xf32>
    %822 = vector.extract_strided_slice %820 {offsets = [0, 0], sizes = [2, 32], strides = [1, 1]} : vector<2x64xf32> to vector<2x32xf32>
    %823 = vector.extract_strided_slice %784 {offsets = [0, 160], sizes = [2, 32], strides = [1, 1]} : vector<2x192xf32> to vector<2x32xf32>
    %824 = arith.mulf %822, %823 : vector<2x32xf32>
    %825 = arith.addf %821, %824 : vector<2x32xf32>
    %826 = math.tanh %825 : vector<2x32xf32>
    %827 = vector.extract_strided_slice %820 {offsets = [0, 32], sizes = [2, 32], strides = [1, 1]} : vector<2x64xf32> to vector<2x32xf32>
    %cst_186 = arith.constant 1.000000e+00 : f32
    %828 = vector.broadcast %cst_186 : f32 to vector<2x32xf32>
    %829 = arith.subf %828, %827 : vector<2x32xf32>
    %830 = arith.mulf %829, %826 : vector<2x32xf32>
    %831 = vector.extract_strided_slice %820 {offsets = [0, 32], sizes = [2, 32], strides = [1, 1]} : vector<2x64xf32> to vector<2x32xf32>
    %832 = vector.extract_strided_slice %782 {offsets = [0, 32], sizes = [2, 32], strides = [1, 1]} : vector<2x64xf32> to vector<2x32xf32>
    %833 = arith.mulf %831, %832 : vector<2x32xf32>
    %834 = arith.addf %830, %833 : vector<2x32xf32>
    %835 = tpu.concatenate %810, %834 in 1 : vector<2x32xf32>, vector<2x32xf32> -> vector<2x64xf32>
    %cst_187 = arith.constant dense<0.000000e+00> : vector<2x192xf32>
    %836 = tpu.matmul %835, %460, %cst_187 {dimension_numbers = #tpu.dot_dimension_numbers<[1], [0], [0], [1], [0, 0, 1, 1], [], []>} : vector<2x64xf32>, vector<64x192xf32>, vector<2x192xf32> -> vector<2x192xf32>
    %837 = arith.addf %836, %463 : vector<2x192xf32>
    %838 = vector.extract_strided_slice %459 {offsets = [14, 0], sizes = [2, 192], strides = [1, 1]} : vector<16x192xf32> to vector<2x192xf32>
    %839 = vector.extract_strided_slice %459 {offsets = [0, 0], sizes = [2, 192], strides = [1, 1]} : vector<16x192xf32> to vector<2x192xf32>
    %840 = vector.extract_strided_slice %838 {offsets = [0, 0], sizes = [2, 64], strides = [1, 1]} : vector<2x192xf32> to vector<2x64xf32>
    %841 = vector.extract_strided_slice %837 {offsets = [0, 0], sizes = [2, 64], strides = [1, 1]} : vector<2x192xf32> to vector<2x64xf32>
    %842 = arith.addf %840, %841 : vector<2x64xf32>
    %cst_188 = arith.constant 0.000000e+00 : f32
    %843 = vector.broadcast %cst_188 : f32 to vector<2x64xf32>
    %844 = arith.subf %843, %842 : vector<2x64xf32>
    %845 = math.exp %844 : vector<2x64xf32>
    %cst_189 = arith.constant 1.000000e+00 : f32
    %846 = vector.broadcast %cst_189 : f32 to vector<2x64xf32>
    %847 = arith.addf %846, %845 : vector<2x64xf32>
    %cst_190 = arith.constant 1.000000e+00 : f32
    %848 = vector.broadcast %cst_190 : f32 to vector<2x64xf32>
    %849 = arith.divf %848, %847 : vector<2x64xf32>
    %850 = vector.extract_strided_slice %838 {offsets = [0, 64], sizes = [2, 32], strides = [1, 1]} : vector<2x192xf32> to vector<2x32xf32>
    %851 = vector.extract_strided_slice %849 {offsets = [0, 0], sizes = [2, 32], strides = [1, 1]} : vector<2x64xf32> to vector<2x32xf32>
    %852 = vector.extract_strided_slice %837 {offsets = [0, 64], sizes = [2, 32], strides = [1, 1]} : vector<2x192xf32> to vector<2x32xf32>
    %853 = arith.mulf %851, %852 : vector<2x32xf32>
    %854 = arith.addf %850, %853 : vector<2x32xf32>
    %855 = math.tanh %854 : vector<2x32xf32>
    %856 = vector.extract_strided_slice %849 {offsets = [0, 32], sizes = [2, 32], strides = [1, 1]} : vector<2x64xf32> to vector<2x32xf32>
    %cst_191 = arith.constant 1.000000e+00 : f32
    %857 = vector.broadcast %cst_191 : f32 to vector<2x32xf32>
    %858 = arith.subf %857, %856 : vector<2x32xf32>
    %859 = arith.mulf %858, %855 : vector<2x32xf32>
    %860 = vector.extract_strided_slice %849 {offsets = [0, 32], sizes = [2, 32], strides = [1, 1]} : vector<2x64xf32> to vector<2x32xf32>
    %861 = vector.extract_strided_slice %835 {offsets = [0, 0], sizes = [2, 32], strides = [1, 1]} : vector<2x64xf32> to vector<2x32xf32>
    %862 = arith.mulf %860, %861 : vector<2x32xf32>
    %863 = arith.addf %859, %862 : vector<2x32xf32>
    %864 = vector.extract_strided_slice %839 {offsets = [0, 96], sizes = [2, 64], strides = [1, 1]} : vector<2x192xf32> to vector<2x64xf32>
    %865 = vector.extract_strided_slice %837 {offsets = [0, 96], sizes = [2, 64], strides = [1, 1]} : vector<2x192xf32> to vector<2x64xf32>
    %866 = arith.addf %864, %865 : vector<2x64xf32>
    %cst_192 = arith.constant 0.000000e+00 : f32
    %867 = vector.broadcast %cst_192 : f32 to vector<2x64xf32>
    %868 = arith.subf %867, %866 : vector<2x64xf32>
    %869 = math.exp %868 : vector<2x64xf32>
    %cst_193 = arith.constant 1.000000e+00 : f32
    %870 = vector.broadcast %cst_193 : f32 to vector<2x64xf32>
    %871 = arith.addf %870, %869 : vector<2x64xf32>
    %cst_194 = arith.constant 1.000000e+00 : f32
    %872 = vector.broadcast %cst_194 : f32 to vector<2x64xf32>
    %873 = arith.divf %872, %871 : vector<2x64xf32>
    %874 = vector.extract_strided_slice %839 {offsets = [0, 160], sizes = [2, 32], strides = [1, 1]} : vector<2x192xf32> to vector<2x32xf32>
    %875 = vector.extract_strided_slice %873 {offsets = [0, 0], sizes = [2, 32], strides = [1, 1]} : vector<2x64xf32> to vector<2x32xf32>
    %876 = vector.extract_strided_slice %837 {offsets = [0, 160], sizes = [2, 32], strides = [1, 1]} : vector<2x192xf32> to vector<2x32xf32>
    %877 = arith.mulf %875, %876 : vector<2x32xf32>
    %878 = arith.addf %874, %877 : vector<2x32xf32>
    %879 = math.tanh %878 : vector<2x32xf32>
    %880 = vector.extract_strided_slice %873 {offsets = [0, 32], sizes = [2, 32], strides = [1, 1]} : vector<2x64xf32> to vector<2x32xf32>
    %cst_195 = arith.constant 1.000000e+00 : f32
    %881 = vector.broadcast %cst_195 : f32 to vector<2x32xf32>
    %882 = arith.subf %881, %880 : vector<2x32xf32>
    %883 = arith.mulf %882, %879 : vector<2x32xf32>
    %884 = vector.extract_strided_slice %873 {offsets = [0, 32], sizes = [2, 32], strides = [1, 1]} : vector<2x64xf32> to vector<2x32xf32>
    %885 = vector.extract_strided_slice %835 {offsets = [0, 32], sizes = [2, 32], strides = [1, 1]} : vector<2x64xf32> to vector<2x32xf32>
    %886 = arith.mulf %884, %885 : vector<2x32xf32>
    %887 = arith.addf %883, %886 : vector<2x32xf32>
    %888 = tpu.concatenate %863, %887 in 1 : vector<2x32xf32>, vector<2x32xf32> -> vector<2x64xf32>
    %c0_196 = arith.constant 0 : index
    %c0_197 = arith.constant 0 : index
    %889 = vector.load %arg10[%c0_196, %c0_197] : memref<64x8xf32, #tpu.memory_space<vmem>>, vector<64x8xf32>
    %cst_198 = arith.constant dense<0.000000e+00> : vector<2x8xf32>
    %890 = tpu.matmul %888, %889, %cst_198 {dimension_numbers = #tpu.dot_dimension_numbers<[1], [0], [0], [1], [0, 0, 1, 1], [], []>} : vector<2x64xf32>, vector<64x8xf32>, vector<2x8xf32> -> vector<2x8xf32>
    %c0_199 = arith.constant 0 : index
    %c0_200 = arith.constant 0 : index
    %891 = vector.load %arg11[%c0_199, %c0_200] : memref<1x8xf32, #tpu.memory_space<vmem>>, vector<1x8xf32>
    %892 = vector.broadcast %891 : vector<1x8xf32> to vector<2x8xf32>
    %893 = arith.addf %890, %892 : vector<2x8xf32>
    %c0_201 = arith.constant 0 : index
    %c0_202 = arith.constant 0 : index
    %894 = vector.load %arg12[%c0_201, %c0_202] : memref<2x8xf32, #tpu.memory_space<vmem>>, vector<2x8xf32>
    tpu.vector_store %arg12[%c0_201, %c0_202], %893 {strides = array<i32>} : memref<2x8xf32, #tpu.memory_space<vmem>>, vector<2x8xf32>,
    return
  }
}

</mosaic_0001>

<bundles_post_ra>
// kernel: tpu_custom_call.1
= control target key start
LH: loop header
LB: loop body
LE: loop exit
PB: predicated region body
PF: predicated region fallthrough
CT: control target
= control target key end

     0   :  { %17 = vsyncpa [#allocation5], 0  ;;  %s4541_s0 = inlined_call_operand.vmem [shape: f32[16,16], index: 0, kind: input, shape index: {}]   ;;  %s4542_s1 = inlined_call_operand.hbm [shape: f32[16,192], index: 1, kind: input, shape index: {}]   ;;  %s4543_s2 = inlined_call_operand.hbm [shape: f32[1,192], index: 2, kind: input, shape index: {}]   ;;  %s4544_s3 = inlined_call_operand.hbm [shape: f32[64,192], index: 3, kind: input, shape index: {}]   ;;  %s4545_s4 = inlined_call_operand.hbm [shape: f32[1,192], index: 4, kind: input, shape index: {}]   ;;  %s4546_s5 = inlined_call_operand.vmem [shape: f32[32,192], index: 5, kind: input, shape index: {}]   ;;  %s4547_s6 = inlined_call_operand.hbm [shape: f32[32,192], index: 6, kind: input, shape index: {}]   ;;  %s4548_s7 = inlined_call_operand.hbm [shape: f32[1,192], index: 7, kind: input, shape index: {}]   ;;  %s4549_s8 = inlined_call_operand.hbm [shape: f32[64,192], index: 8, kind: input, shape index: {}]   ;;  %s4550_s9 = inlined_call_operand.hbm [shape: f32[1,192], index: 9, kind: input, shape index: {}]   ;;  %s4551_s10 = inlined_call_operand.vmem [shape: f32[64,8], index: 10, kind: input, shape index: {}]   ;;  %s4552_s11 = inlined_call_operand.vmem [shape: f32[1,8], index: 11, kind: input, shape index: {}]   ;;  %s4553_s12 = inlined_call_operand.hbm [shape: f32[2,8], index: 12, kind: output, shape index: {}]  }
   0x1   :  { %18 = vsyncpa [#allocation8], 0 }
   0x2   :  { %19 = vsyncpa [#allocation11], 0 }
   0x3   :  { %20 = vsyncpa [#allocation14], 0 }
   0x4   :  { %21 = vsyncpa [#allocation17], 0 }
   0x5   :  { %22 = vsyncpa [#allocation6], 0  ;;  %s3637_s21 = smov [#allocation7]   ;;  %s3638_s23 = smov [#allocation10]  }
   0x6   :  { %s43_s22 = sshll.u32 %s3637_s21, 4  ;;  %s65_s24 = sshll.u32 %s3638_s23, 4  ;;  %s44_s22 = int_to_ptr.vmem [resolvable:$true] %s43_s22  ;;  %s66_s24 = int_to_ptr.vmem [resolvable:$true] %s65_s24 }
   0x7   :  { %s3453_s25 = scalar_lea.vmem %s44_s22, 32  ;;  %p3458_p1 = scmp.lt.s32.totalorder %s44_s22, %s44_s22 }
   0x8   :  { %p3454_p0 = scmp.ne.s32.totalorder %s44_s22, %s3453_s25  ;;  %p3459_p2 = scmp.lt.s32.totalorder %s3453_s25, %s3453_s25 }
   0xa   :  { %p3460_p3 = por %p3459_p2, %p3458_p1 }
   0xc   :  { %p3461_p4 = pnand %p3460_p3, %p3454_p0 }
   0xe   :  { %3464 = shalt.err (!%p3461_p4)
}
   0xf   :  { %46 = dma.hbm_to_vmem [thread:$0]  %s4543_s2, 32, %s44_s22, [#allocation8]  }
  0x10   :  { %s3473_s28 = scalar_lea.vmem %s66_s24, 32  ;;  %p3478_p6 = scmp.lt.s32.totalorder %s66_s24, %s66_s24 }
  0x11   :  { %p3474_p5 = scmp.ne.s32.totalorder %s66_s24, %s3473_s28  ;;  %p3479_p7 = scmp.lt.s32.totalorder %s3473_s28, %s3473_s28 }
  0x13   :  { %p3480_p8 = por %p3479_p7, %p3478_p6 }
  0x15   :  { %p3481_p9 = pnand %p3480_p8, %p3474_p5 }
  0x17   :  { %3484 = shalt.err (!%p3481_p9)
}
  0x18   :  { %68 = dma.hbm_to_vmem [thread:$0]  %s4545_s4, 32, %s66_s24, [#allocation11]  }
  0x19   :  { %s3639_s13 = smov [#allocation13]   ;;  %s3640_s15 = smov [#allocation4]  }
  0x1a   :  { %s89_s14 = sshll.u32 %s3639_s13, 4  ;;  %s30_s16 = sshll.u32 %s3640_s15, 4  ;;  %s90_s14 = int_to_ptr.vmem [resolvable:$true] %s89_s14  ;;  %s31_s16 = int_to_ptr.vmem [resolvable:$true] %s30_s16 }
  0x1b   :  { %s3493_s17 = scalar_lea.vmem %s90_s14, 32  ;;  %p3498_p11 = scmp.lt.s32.totalorder %s90_s14, %s90_s14 }
  0x1c   :  { %p3494_p10 = scmp.ne.s32.totalorder %s90_s14, %s3493_s17  ;;  %p3499_p12 = scmp.lt.s32.totalorder %s3493_s17, %s3493_s17 }
  0x1e   :  { %p3500_p13 = por %p3499_p12, %p3498_p11 }
  0x20   :  { %p3501_p0 = pnand %p3500_p13, %p3494_p10 }
  0x22   :  { %3504 = shalt.err (!%p3501_p0)
}
  0x23   :  { %92 = dma.hbm_to_vmem [thread:$0]  %s4548_s7, 32, %s90_s14, [#allocation14]  }
  0x24   :  { %s3513_s19 = scalar_lea.vmem %s31_s16, 512  ;;  %p3518_p2 = scmp.lt.s32.totalorder %s31_s16, %s31_s16 }
  0x25   :  { %p3514_p1 = scmp.ne.s32.totalorder %s31_s16, %s3513_s19  ;;  %p3519_p3 = scmp.lt.s32.totalorder %s3513_s19, %s3513_s19 }
  0x27   :  { %p3520_p4 = por %p3519_p3, %p3518_p2 }
  0x29   :  { %p3521_p5 = pnand %p3520_p4, %p3514_p1 }
  0x2b   :  { %3524 = shalt.err (!%p3521_p5)
}
  0x2c   :  { %s3641_s4 = smov 256   ;;  %s3642_s20 = smov 16  }
  0x2d   :  { %36 = dma.hbm_to_vmem [thread:$0]  %s4542_s1, 512, %s31_s16, [#allocation5], %s3641_s4, %s3641_s4, %s3642_s20  }
  0x2e   :  { %s3643_s23 = smov [#allocation9]   ;;  %s3644_s25 = smov [#allocation12]  }
  0x2f   :  { %s52_s24 = sshll.u32 %s3643_s23, 4  ;;  %s76_s7 = sshll.u32 %s3644_s25, 4  ;;  %s53_s24 = int_to_ptr.vmem [resolvable:$true] %s52_s24  ;;  %s77_s7 = int_to_ptr.vmem [resolvable:$true] %s76_s7 }
  0x30   :  { %s3533_s26 = scalar_lea.vmem %s53_s24, 2048  ;;  %p3538_p7 = scmp.lt.s32.totalorder %s53_s24, %s53_s24 }
  0x31   :  { %p3534_p6 = scmp.ne.s32.totalorder %s53_s24, %s3533_s26  ;;  %p3539_p8 = scmp.lt.s32.totalorder %s3533_s26, %s3533_s26 }
  0x33   :  { %p3540_p9 = por %p3539_p8, %p3538_p7 }
  0x35   :  { %p3541_p10 = pnand %p3540_p9, %p3534_p6 }
  0x37   :  { %3544 = shalt.err (!%p3541_p10)
}
  0x38   :  { %58 = dma.hbm_to_vmem [thread:$0]  %s4544_s3, 2048, %s53_s24, [#allocation8], %s3641_s4, %s3641_s4, %s3642_s20  }
  0x39   :  { %s3553_s1 = scalar_lea.vmem %s77_s7, 1024  ;;  %p3558_p12 = scmp.lt.s32.totalorder %s77_s7, %s77_s7 }
  0x3a   :  { %p3554_p11 = scmp.ne.s32.totalorder %s77_s7, %s3553_s1  ;;  %p3559_p13 = scmp.lt.s32.totalorder %s3553_s1, %s3553_s1 }
  0x3c   :  { %p3560_p0 = por %p3559_p13, %p3558_p12 }
  0x3e   :  { %p3561_p1 = pnand %p3560_p0, %p3554_p11 }
  0x40   :  { %3564 = shalt.err (!%p3561_p1)
}
  0x41   :  { %82 = dma.hbm_to_vmem [thread:$0]  %s4547_s6, 1024, %s77_s7, [#allocation11], %s3641_s4, %s3641_s4, %s3642_s20  }
  0x42   :  { %s3645_s13 = smov [#allocation15]   ;;  %s3646_s15 = smov [#allocation16]  }
  0x43   :  { %s98_s14 = sshll.u32 %s3645_s13, 4  ;;  %s111_s16 = sshll.u32 %s3646_s15, 4  ;;  %s99_s14 = int_to_ptr.vmem [resolvable:$true] %s98_s14  ;;  %s112_s16 = int_to_ptr.vmem [resolvable:$true] %s111_s16 }
  0x44   :  { %s3573_s3 = scalar_lea.vmem %s99_s14, 2048  ;;  %p3578_p3 = scmp.lt.s32.totalorder %s99_s14, %s99_s14 }
  0x45   :  { %p3574_p2 = scmp.ne.s32.totalorder %s99_s14, %s3573_s3  ;;  %p3579_p4 = scmp.lt.s32.totalorder %s3573_s3, %s3573_s3 }
  0x47   :  { %p3580_p5 = por %p3579_p4, %p3578_p3 }
  0x49   :  { %p3581_p6 = pnand %p3580_p5, %p3574_p2 }
  0x4b   :  { %3584 = shalt.err (!%p3581_p6)
}
  0x4c   :  { %104 = dma.hbm_to_vmem [thread:$0]  %s4549_s8, 2048, %s99_s14, [#allocation14], %s3641_s4, %s3641_s4, %s3642_s20  }
  0x4d   :  { %s3593_s6 = scalar_lea.vmem %s112_s16, 32  ;;  %p3598_p8 = scmp.lt.s32.totalorder %s112_s16, %s112_s16 }
  0x4e   :  { %p3594_p7 = scmp.ne.s32.totalorder %s112_s16, %s3593_s6  ;;  %p3599_p9 = scmp.lt.s32.totalorder %s3593_s6, %s3593_s6 }
  0x50   :  { %p3600_p10 = por %p3599_p9, %p3598_p8 }
  0x52   :  { %p3601_p11 = pnand %p3600_p10, %p3594_p7 }
  0x54   :  { %3604 = shalt.err (!%p3601_p11)
}
  0x55   :  { %114 = dma.hbm_to_vmem [thread:$0]  %s4550_s9, 32, %s112_s16, [#allocation17]  }
  0x56   :  { %3625 = dma.done.wait [#allocation5], 512  }
  0x57   :  { %3626 = vsyncadd [#allocation5], 4294966784 }
  0x58   :  { %3627 = dma.done.wait [#allocation8], 2080  }
  0x59   :  { %3628 = vsyncadd [#allocation8], 4294965216 }
  0x5a   :  { %3629 = dma.done.wait [#allocation11], 1056  }
  0x5b   :  { %3630 = vsyncadd [#allocation11], 4294966240 }
  0x5c   :  { %3631 = dma.done.wait [#allocation14], 2080  }
  0x5d   :  { %3632 = vsyncadd [#allocation14], 4294965216 }
  0x5e   :  { %3633 = dma.done.wait [#allocation17], 32  }
  0x5f   :  { %3634 = vsyncadd [#allocation17], 4294967264  ;;  %v3647_v0 = vmov 0.0   ;;  %v3756_v1 = vld [vmem:[#allocation9 + $0x78] sm:$0xff]  ;;  %v3758_v2 = vld [vmem:[#allocation9 + $0x70] sm:$0xff]  ;;  %vm161_vm0 = vcmask 130048   ;;  %v151_v23 = vlaneseq }
  0x60   :  { %232 = vmatprep.mubr.f32.mxu0 %v3647_v0  ;;  %341 = vmatprep.mubr.f32.mxu1 %v3647_v0  ;;  %v3760_v3 = vld [vmem:[#allocation9 + $0x68] sm:$0xff]  ;;  %v3763_v4 = vld [vmem:[#allocation9 + $0x60] sm:$0xff]  ;;  %v3766_v5 = vld [vmem:[#allocation9 + $0x58] sm:$0xff]  ;;  %s3649_s21 = smov 96   ;;  %vm417_vm1 = vcmask 261126   ;;  %s3650_s22 = smov 32  }
  0x61   :  { %293 = vmatprep.subr.mxu1 %v3756_v1  ;;  %v3769_v6 = vld [vmem:[#allocation9 + $0x50] sm:$0xff]  ;;  %v3772_v8 = vld [vmem:[#allocation9 + $0x48] sm:$0xff]  ;;  %v3775_v11 = vld [vmem:[#allocation9 + $0x40] sm:$0xff]  ;;  %v152_v24 = vshrl.u32 %v151_v23, 7  ;;  %vm415_vm2 = vcmask 254976   ;;  %vm424_vm3 = vcmask 261120  }
  0x62   :  { %294 = vmatpush1.msra.mxu1 %v3758_v2  ;;  %v148_v7 = vld [vmem:[#allocation4 + $0x18] sm:$0xff]  ;;  %v147_v9 = vld [vmem:[#allocation4 + $0x10] sm:$0xff]  ;;  %v146_v10 = vld [vmem:[#allocation4 + $0x8] sm:$0xff]  ;;  %vm273_vm4 = vcmask 523264   ;;  %vm579_vm5 = vcmask 259076   ;;  %vm577_vm6 = vcmask 257026  }
  0x63   :  { %295 = vmatprep.subr.mxu1 %v3760_v3  ;;  %196 = vmatprep.subr.mxu0 %v148_v7  ;;  %v145_v12 = vld [vmem:[#allocation4] sm:$0xff]  ;;  %v3784_v15 = vld [vmem:[#allocation9 + $0x30] sm:$0xff]  ;;  %v3787_v16 = vld [vmem:[#allocation9 + $0x28] sm:$0xff]  ;;  %v3850_v25 = vsub.s32 1, %v152_v24  ;;  %v3858_v34 = vsub.s32 0, %v152_v24  ;;  %vm3651_vm7 = vmmov 0  }
  0x64   :  { %296 = vmatpush1.msra.mxu1 %v3763_v4  ;;  %197 = vmatpush1.msra.mxu0 %v147_v9  ;;  %v3778_v13 = vld [vmem:[#allocation9 + $0x38] sm:$0xff]  ;;  %v3791_v17 = vld [vmem:[#allocation9 + $0x20] sm:$0xff]  ;;  %v3802_v20 = vld [vmem:[#allocation9 + $0x10] sm:$0xff]  ;;  %s3652_s1 = smov [#allocation18]   ;;  %vm3075_vm8 = vcmask 58368  }
  0x65   :  { %297 = vmatprep.subr.mxu1 %v3766_v5  ;;  %198 = vmatprep.subr.mxu0 %v146_v10  ;;  %v143_v14 = vld [vmem:[%s4541_s0] sm:$0xff]  ;;  %v144_v18 = vld [vmem:[%s4541_s0 + $0x8] sm:$0xff]  ;;  %s3648_s0 = smov 64   ;;  %s3083_s29 = sshll.u32 %s3652_s1, 4  ;;  %s3084_s29 = int_to_ptr.vmem [resolvable:$true] %s3083_s29 }
  0x66   :  { %298 = vmatpush1.msra.mxu1 %v3769_v6  ;;  %199 = vmatpush1.msra.mxu0 %v145_v12  ;;  %v3798_v19 = vld [vmem:[#allocation9 + $0x18] sm:$0xff]  ;;  %v3806_v21 = vld [vmem:[#allocation9 + $0x8] sm:$0xff]  ;;  %v3810_v22 = vld [vmem:[#allocation9] sm:$0xff]  ;;  %p3610_p13 = scmp.lt.s32.totalorder %s3084_s29, %s3084_s29 }
  0x67   :  { %299 = vmatprep.subr.mxu1 %v3772_v8  ;;  %3096 = vmatmul.mubr.msk.f32.vlgmr.msra.gmra.mxu0 %vm161_vm0, %v143_v14  ;;  %v149_v26 = vld [vmem:[#allocation7] sm:$0x3]  ;;  %v261_v31 = vld [vmem:[#allocation10] sm:$0x3] }
  0x68   :  { %300 = vmatpush1.msra.mxu1 %v3775_v11  ;;  %238 = vmatprep.mubr.f32.mxu0 %v3647_v0  ;;  %v158_v28 = vrot.slane %v149_v26, %v3850_v25  ;;  %v3856_v32 = vrot.slane %v261_v31, %v3850_v25  ;;  %v3862_v37 = vrot.slane %v261_v31, %v3858_v34 }
  0x69   :  { %301 = vmatprep.subr.mxu1 %v3778_v13  ;;  %445 = vmatprep.subr.mxu0 %v3756_v1  ;;  %v154_v41 = vrot.slane %v149_v26, %v3858_v34 }
  0x6a   :  { %302 = vmatpush1.msra.mxu1 %v3784_v15  ;;  %446 = vmatpush1.msra.mxu0 %v3758_v2 }
  0x6b   :  { %303 = vmatprep.subr.mxu1 %v3787_v16  ;;  %3097 = vmatmul.mubr.msk.f32.gmra.mxu0 %vm161_vm0, %v144_v18 }
  0x6c   :  { %304 = vmatpush1.msra.mxu1 %v3791_v17  ;;  %447 = vmatprep.subr.mxu0 %v3760_v3 }
  0x6d   :  { %305 = vmatprep.subr.mxu1 %v3798_v19  ;;  %448 = vmatpush1.msra.mxu0 %v3763_v4 }
  0x6e   :  { %306 = vmatpush1.msra.mxu1 %v3802_v20  ;;  %449 = vmatprep.subr.mxu0 %v3766_v5 }
  0x6f   :  { %307 = vmatprep.subr.mxu1 %v3806_v21  ;;  %450 = vmatpush1.msra.mxu0 %v3769_v6 }
  0x70   :  { %308 = vmatpush1.msra.mxu1 %v3810_v22  ;;  %451 = vmatprep.subr.mxu0 %v3772_v8 }
  0x71   :  { %342 = vmatmul.mubr.f32.vlgmr.msra.gmra.mxu1 %v3647_v0  ;;  %452 = vmatpush1.msra.mxu0 %v3775_v11 }
  0x72   :  { %493 = vmatprep.mubr.f32.mxu0 %v3647_v0  ;;  %453 = vmatprep.subr.mxu0 %v3778_v13 }
  0x73   :  { %607 = vmatprep.subr.mxu1 %v3756_v1  ;;  %454 = vmatpush1.msra.mxu0 %v3784_v15 }
  0x74   :  { %608 = vmatpush1.msra.mxu1 %v3758_v2  ;;  %455 = vmatprep.subr.mxu0 %v3787_v16 }
  0x75   :  { %609 = vmatprep.subr.mxu1 %v3760_v3  ;;  %456 = vmatpush1.msra.mxu0 %v3791_v17 }
  0x76   :  { %610 = vmatpush1.msra.mxu1 %v3763_v4  ;;  %457 = vmatprep.subr.mxu0 %v3798_v19 }
  0x77   :  { %611 = vmatprep.subr.mxu1 %v3766_v5  ;;  %458 = vmatpush1.msra.mxu0 %v3802_v20 }
  0x78   :  { %612 = vmatpush1.msra.mxu1 %v3769_v6  ;;  %459 = vmatprep.subr.mxu0 %v3806_v21 }
  0x79   :  { %613 = vmatprep.subr.mxu1 %v3772_v8  ;;  %460 = vmatpush1.msra.mxu0 %v3810_v22 }
  0x7a   :  { %614 = vmatpush1.msra.mxu1 %v3775_v11  ;;  %655 = vmatprep.mubr.f32.mxu1 %v3647_v0 }
  0x7b   :  { %615 = vmatprep.subr.mxu1 %v3778_v13  ;;  %766 = vmatprep.subr.mxu0 %v3756_v1 }
  0x7c   :  { %616 = vmatpush1.msra.mxu1 %v3784_v15 }
  0x7d   :  { %617 = vmatprep.subr.mxu1 %v3787_v16 }
  0x7e   :  { %618 = vmatpush1.msra.mxu1 %v3791_v17 }
  0x7f   :  { %619 = vmatprep.subr.mxu1 %v3798_v19 }
  0x80   :  { %620 = vmatpush1.msra.mxu1 %v3802_v20 }
  0x81   :  { %621 = vmatprep.subr.mxu1 %v3806_v21 }
  0x82   :  { %622 = vmatpush1.msra.mxu1 %v3810_v22 }
  0x83   :  { %921 = vmatprep.subr.mxu1 %v3756_v1 }
 0x127   :  { %v234_v27 = vpop.f32.mrf.mxu0 }
 0x128   :  { %v3870_v44 = vadd.f32 %v234_v27, %v154_v41 }
 0x129   :  { %v236_v29 = vpop.f32.mrf.mxu0 }
 0x12a   :  { %v3853_v30 = vadd.f32 %v236_v29, %v158_v28 }
 0x12b   :  { %v240_v40 = vpop.f32.mrf.mxu0 }
 0x12c   :  { %v3868_v43 = vadd.f32 %v240_v40, %v154_v41 }
 0x12d   :  { %v242_v61 = vpop.f32.mrf.mxu0 }
 0x12e   :  { %v3876_v62 = vadd.f32 %v242_v61, %v158_v28 }
 0x131   :  { %v343_v33 = vpop.f32.mrf.mxu1 }
 0x132   :  { %v344_v39 = vadd.f32 %v343_v33, %v3862_v37 }
 0x133   :  { %v345_v35 = vpop.f32.mrf.mxu1 }
 0x134   :  { %v346_v36 = vadd.f32 %v345_v35, %v3856_v32  ;;  %v375_v42 = vrot.slane %v344_v39, 2  ;;  %v348_v46 = vadd.f32 %v344_v39, %v3870_v44 }
 0x136   :  { %v376_v38 = vrot.slane %v346_v36, 2  ;;  %v379_v45 = vadd.f32 %v375_v42, %v3868_v43  ;;  %v349_v48 = vsub.f32 0.0, %v348_v46 }
 0x138   :  { %393 = vrot.lane.b32.xlu0 %v376_v38, %s3648_s0  ;;  %v381_v47 = vsub.f32 0.0, %v379_v45  ;;  %v350_v50 = vmul.f32 1.442695, %v349_v48  ;;  %v380_v18 = vadd.f32 %v376_v38, %v3876_v62 }
 0x13a   :  { %v383_v49 = vmul.f32 1.442695, %v381_v47  ;;  %v382_v23 = vsub.f32 0.0, %v380_v18 }
 0x13c   :  { %356 = vrot.lane.b32.xlu0 %v344_v39, %s3648_s0  ;;  %3162 = vpow2.f32 %v383_v49  ;;  %v385_v24 = vmul.f32 1.442695, %v382_v23 }
 0x13d   :  { %3164 = vpow2.f32 %v350_v50 }
 0x149   :  { %v3163_v51 = vpop.eup %3162 }
 0x14a   :  { %v387_v52 = vadd.f32 1.0, %v3163_v51  ;;  %v3165_v53 = vpop.eup %3164 }
 0x14b   :  { %v352_v54 = vadd.f32 1.0, %v3165_v53 }
 0x14c   :  { %3166 = vrcp.f32 %v387_v52 }
 0x14d   :  { %3168 = vrcp.f32 %v352_v54 }
 0x159   :  { %v3167_v55 = vpop.eup %3166 }
 0x15a   :  { %v3169_v58 = vpop.eup %3168 }
 0x15b   :  { %v366_v39 = vsub.f32 1.0, %v3169_v58  ;;  %v372_v41 = vmul.f32 0.0, %v3169_v58 }
 0x1aa   :  { %v394_v56 = vpop.permute.xlu0 %393 }
 0x1ab   :  { %v396_v57 = vmul.f32 %v3167_v55, %v394_v56 }
 0x1ad   :  { %398 = vrot.lane.b32.xlu1 %v396_v57, %s3648_s0 }
 0x1ae   :  { %v357_v59 = vpop.permute.xlu0 %356 }
 0x1af   :  { %v359_v60 = vmul.f32 %v3169_v58, %v357_v59 }
 0x1b1   :  { %361 = vrot.lane.b32.xlu1 %v359_v60, %s3648_s0 }
 0x21f   :  { %v399_v63 = vpop.permute.xlu1 %398 }
 0x220   :  { %v401_v7 = vadd.f32 %v399_v63, %v3876_v62 }
 0x222   :  { %3170 = vtanh.f32 %v401_v7 }
 0x223   :  { %v362_v9 = vpop.permute.xlu1 %361 }
 0x224   :  { %v364_v10 = vadd.f32 %v362_v9, %v3870_v44 }
 0x226   :  { %3172 = vtanh.f32 %v364_v10 }
 0x227   :  { %3174 = vpow2.f32 %v385_v24 }
 0x22f   :  { %v3171_v12 = vpop.eup %3170 }
 0x230   :  { %405 = vrot.lane.b32.xlu0 %v3171_v12, %s3649_s21 }
 0x233   :  { %v3173_v14 = vpop.eup %3172 }
 0x234   :  { %368 = vrot.lane.b32.xlu1 %v3173_v14, %s3649_s21  ;;  %v3175_v26 = vpop.eup %3174 }
 0x235   :  { %v388_v27 = vadd.f32 1.0, %v3175_v26 }
 0x237   :  { %3176 = vrcp.f32 %v388_v27 }
 0x244   :  { %v3177_v28 = vpop.eup %3176 }
 0x245   :  { %v403_v29 = vsub.f32 1.0, %v3177_v28  ;;  %v409_v33 = vmul.f32 0.0, %v3177_v28 }
 0x2a2   :  { %v406_v31 = vpop.permute.xlu0 %405 }
 0x2a3   :  { %v408_v35 = vmul.f32 %v406_v31, %v403_v29 }
 0x2a5   :  { %v410_v36 = vadd.f32 %v409_v33, %v408_v35 }
 0x2a6   :  { %v369_v40 = vpop.permute.xlu1 %368 }
 0x2a7   :  { %v371_v42 = vmul.f32 %v369_v40, %v366_v39  ;;  %v420_v45 = vrot.slane %v410_v36, 6  ;;  %418 = vst.msk [vmem:[#allocation3 + $0x8] sm:$0xc0] %vm417_vm1, %v410_v36 }
 0x2a9   :  { %v373_v38 = vadd.f32 %v372_v41, %v371_v42  ;;  %421 = vrot.lane.b32.xlu1 %v420_v45, %s3650_s22 }
 0x2ab   :  { %412 = vrot.lane.b32.xlu0 %v373_v38, %s3649_s21 }
 0x31b   :  { %v422_v46 = vpop.permute.xlu1 %421 }
 0x31d   :  { %v413_v47 = vpop.permute.xlu0 %412 }
 0x31e   :  { %416 = vst.msk [vmem:[#allocation2] sm:$0x3] %vm415_vm2, %v413_v47  ;;  %v425_v48 = vsel %vm424_vm3, %v413_v47, %v422_v46 }
 0x31f   :  { %3098 = vmatmul.mubr.msk.f32.vlgmr.msra.gmra.mxu0 %vm273_vm4, %v425_v48  ;;  %v567_v27 = vrot.slane %v425_v48, 4  ;;  %v526_v28 = vrot.slane %v425_v48, 6 }
 0x320   :  { %767 = vmatpush1.msra.mxu0 %v3758_v2  ;;  %814 = vmatprep.mubr.f32.mxu0 %v3647_v0 }
 0x321   :  { %768 = vmatprep.subr.mxu0 %v3760_v3 }
 0x322   :  { %769 = vmatpush1.msra.mxu0 %v3763_v4 }
 0x323   :  { %770 = vmatprep.subr.mxu0 %v3766_v5 }
 0x324   :  { %771 = vmatpush1.msra.mxu0 %v3769_v6 }
 0x325   :  { %772 = vmatprep.subr.mxu0 %v3772_v8 }
 0x326   :  { %773 = vmatpush1.msra.mxu0 %v3775_v11 }
 0x327   :  { %774 = vmatprep.subr.mxu0 %v3778_v13 }
 0x328   :  { %775 = vmatpush1.msra.mxu0 %v3784_v15 }
 0x329   :  { %776 = vmatprep.subr.mxu0 %v3787_v16 }
 0x32a   :  { %777 = vmatpush1.msra.mxu0 %v3791_v17 }
 0x32b   :  { %778 = vmatprep.subr.mxu0 %v3798_v19 }
 0x32c   :  { %779 = vmatpush1.msra.mxu0 %v3802_v20 }
 0x32d   :  { %780 = vmatprep.subr.mxu0 %v3806_v21 }
 0x32e   :  { %781 = vmatpush1.msra.mxu0 %v3810_v22 }
 0x32f   :  { %1076 = vmatprep.subr.mxu0 %v3756_v1 }
 0x3df   :  { %v495_v49 = vpop.f32.mrf.mxu0 }
 0x3e0   :  { %v496_v50 = vadd.f32 %v495_v49, %v3862_v37 }
 0x3e1   :  { %v497_v51 = vpop.f32.mrf.mxu0 }
 0x3e2   :  { %v501_v52 = vrot.slane %v496_v50, 6  ;;  %v498_v53 = vadd.f32 %v497_v51, %v3856_v32  ;;  %v533_v55 = vrot.slane %v496_v50, 4 }
 0x3e4   :  { %v534_v54 = vrot.slane %v498_v53, 4  ;;  %510 = vrot.lane.b32.xlu1 %v501_v52, %s3648_s0  ;;  %v503_v56 = vadd.f32 %v501_v52, %v3870_v44  ;;  %v537_v57 = vadd.f32 %v533_v55, %v3868_v43 }
 0x3e6   :  { %551 = vrot.lane.b32.xlu0 %v534_v54, %s3648_s0  ;;  %v504_v58 = vsub.f32 0.0, %v503_v56  ;;  %v539_v59 = vsub.f32 0.0, %v537_v57  ;;  %v538_v40 = vadd.f32 %v534_v54, %v3876_v62 }
 0x3e8   :  { %v505_v60 = vmul.f32 1.442695, %v504_v58  ;;  %v541_v61 = vmul.f32 1.442695, %v539_v59  ;;  %v540_v41 = vsub.f32 0.0, %v538_v40 }
 0x3ea   :  { %3178 = vpow2.f32 %v505_v60  ;;  %v543_v42 = vmul.f32 1.442695, %v540_v41 }
 0x3eb   :  { %3180 = vpow2.f32 %v541_v61 }
 0x3f7   :  { %v3179_v63 = vpop.eup %3178 }
 0x3f8   :  { %v3181_v7 = vpop.eup %3180  ;;  %v507_v9 = vadd.f32 1.0, %v3179_v63 }
 0x3f9   :  { %v545_v10 = vadd.f32 1.0, %v3181_v7 }
 0x3fa   :  { %3182 = vrcp.f32 %v507_v9 }
 0x3fb   :  { %3184 = vrcp.f32 %v545_v10 }
 0x407   :  { %v3183_v12 = vpop.eup %3182 }
 0x408   :  { %v3185_v23 = vpop.eup %3184  ;;  %v520_v55 = vsub.f32 1.0, %v3183_v12 }
 0x456   :  { %v511_v14 = vpop.permute.xlu1 %510 }
 0x457   :  { %v513_v18 = vmul.f32 %v3183_v12, %v511_v14 }
 0x458   :  { %v552_v24 = vpop.permute.xlu0 %551 }
 0x459   :  { %v554_v26 = vmul.f32 %v3185_v23, %v552_v24  ;;  %515 = vrot.lane.b32.xlu1 %v513_v18, %s3648_s0 }
 0x45b   :  { %556 = vrot.lane.b32.xlu0 %v554_v26, %s3648_s0 }
 0x45d   :  { %568 = vrot.lane.b32.xlu1 %v567_v27, %s3649_s21 }
 0x461   :  { %527 = vrot.lane.b32.xlu1 %v526_v28, %s3650_s22 }
 0x4cb   :  { %v516_v29 = vpop.permute.xlu1 %515 }
 0x4cc   :  { %v518_v35 = vadd.f32 %v516_v29, %v3870_v44 }
 0x4cd   :  { %v557_v31 = vpop.permute.xlu0 %556 }
 0x4ce   :  { %v559_v33 = vadd.f32 %v557_v31, %v3876_v62 }
 0x4cf   :  { %v569_v47 = vpop.permute.xlu1 %568 }
 0x4d0   :  { %3186 = vtanh.f32 %v559_v33 }
 0x4d1   :  { %3188 = vtanh.f32 %v518_v35 }
 0x4d2   :  { %3190 = vpow2.f32 %v543_v42 }
 0x4d3   :  { %v528_v52 = vpop.permute.xlu1 %527 }
 0x4d4   :  { %v530_v57 = vmul.f32 %v3183_v12, %v528_v52 }
 0x4dd   :  { %v3187_v36 = vpop.eup %3186 }
 0x4de   :  { %563 = vrot.lane.b32.xlu0 %v3187_v36, %s3649_s21  ;;  %v3189_v39 = vpop.eup %3188 }
 0x4df   :  { %v3191_v45 = vpop.eup %3190 }
 0x4e0   :  { %v546_v38 = vadd.f32 1.0, %v3191_v45 }
 0x4e2   :  { %522 = vrot.lane.b32.xlu0 %v3189_v39, %s3649_s21  ;;  %3192 = vrcp.f32 %v546_v38 }
 0x4ef   :  { %v3193_v46 = vpop.eup %3192 }
 0x4f0   :  { %v561_v48 = vsub.f32 1.0, %v3193_v46  ;;  %v571_v50 = vmul.f32 %v3193_v46, %v569_v47 }
 0x550   :  { %v564_v49 = vpop.permute.xlu0 %563 }
 0x551   :  { %v566_v51 = vmul.f32 %v564_v49, %v561_v48 }
 0x553   :  { %v572_v53 = vadd.f32 %v571_v50, %v566_v51 }
 0x554   :  { %v523_v56 = vpop.permute.xlu0 %522 }
 0x555   :  { %v525_v58 = vmul.f32 %v523_v56, %v520_v55  ;;  %v582_v54 = vrot.slane %v572_v53, 2  ;;  %580 = vst.msk [vmem:[#allocation3 + $0x8] sm:$0x30] %vm579_vm5, %v572_v53 }
 0x557   :  { %v531_v59 = vadd.f32 %v530_v57, %v525_v58  ;;  %583 = vrot.lane.b32.xlu1 %v582_v54, %s3650_s22 }
 0x559   :  { %574 = vrot.lane.b32.xlu0 %v531_v59, %s3649_s21 }
 0x5c9   :  { %v584_v60 = vpop.permute.xlu1 %583 }
 0x5cb   :  { %v575_v61 = vpop.permute.xlu0 %574 }
 0x5cc   :  { %578 = vst.msk [vmem:[#allocation2] sm:$0xc] %vm577_vm6, %v575_v61  ;;  %v586_v63 = vsel %vm424_vm3, %v575_v61, %v584_v60 }
 0x5cd   :  { %v588_v7 = vrot.slane %v586_v63, 2  ;;  %v688_v48 = vrot.slane %v586_v63, 6 }
 0x5cf   :  { %3099 = vmatmul.mubr.msk.f32.vlgmr.msra.gmra.mxu1 %vm273_vm4, %v588_v7 }
 0x5d0   :  { %922 = vmatpush1.msra.mxu1 %v3758_v2  ;;  %969 = vmatprep.mubr.f32.mxu1 %v3647_v0 }
 0x5d1   :  { %923 = vmatprep.subr.mxu1 %v3760_v3 }
 0x5d2   :  { %924 = vmatpush1.msra.mxu1 %v3763_v4 }
 0x5d3   :  { %925 = vmatprep.subr.mxu1 %v3766_v5 }
 0x5d4   :  { %926 = vmatpush1.msra.mxu1 %v3769_v6 }
 0x5d5   :  { %927 = vmatprep.subr.mxu1 %v3772_v8 }
 0x5d6   :  { %928 = vmatpush1.msra.mxu1 %v3775_v11 }
 0x5d7   :  { %929 = vmatprep.subr.mxu1 %v3778_v13 }
 0x5d8   :  { %930 = vmatpush1.msra.mxu1 %v3784_v15 }
 0x5d9   :  { %931 = vmatprep.subr.mxu1 %v3787_v16 }
 0x5da   :  { %932 = vmatpush1.msra.mxu1 %v3791_v17 }
 0x5db   :  { %933 = vmatprep.subr.mxu1 %v3798_v19 }
 0x5dc   :  { %934 = vmatpush1.msra.mxu1 %v3802_v20 }
 0x5dd   :  { %935 = vmatprep.subr.mxu1 %v3806_v21 }
 0x5de   :  { %936 = vmatpush1.msra.mxu1 %v3810_v22 }
 0x5df   :  { %1236 = vmatprep.subr.mxu1 %v3756_v1 }
 0x68f   :  { %v657_v9 = vpop.f32.mrf.mxu1 }
 0x690   :  { %v658_v10 = vadd.f32 %v657_v9, %v3862_v37 }
 0x691   :  { %v659_v12 = vpop.f32.mrf.mxu1 }
 0x692   :  { %v663_v14 = vrot.slane %v658_v10, 4  ;;  %v660_v18 = vadd.f32 %v659_v12, %v3856_v32  ;;  %v695_v24 = vrot.slane %v658_v10, 6 }
 0x694   :  { %v696_v23 = vrot.slane %v660_v18, 6  ;;  %672 = vrot.lane.b32.xlu1 %v663_v14, %s3648_s0  ;;  %v665_v26 = vadd.f32 %v663_v14, %v3870_v44  ;;  %v699_v27 = vadd.f32 %v695_v24, %v3868_v43 }
 0x696   :  { %713 = vrot.lane.b32.xlu0 %v696_v23, %s3648_s0  ;;  %v666_v28 = vsub.f32 0.0, %v665_v26  ;;  %v701_v29 = vsub.f32 0.0, %v699_v27  ;;  %v700_v56 = vadd.f32 %v696_v23, %v3876_v62 }
 0x698   :  { %v667_v31 = vmul.f32 1.442695, %v666_v28  ;;  %v703_v33 = vmul.f32 1.442695, %v701_v29  ;;  %v702_v57 = vsub.f32 0.0, %v700_v56 }
 0x69a   :  { %3194 = vpow2.f32 %v667_v31  ;;  %v705_v58 = vmul.f32 1.442695, %v702_v57 }
 0x69b   :  { %3196 = vpow2.f32 %v703_v33 }
 0x6a7   :  { %v3195_v35 = vpop.eup %3194 }
 0x6a8   :  { %v3197_v36 = vpop.eup %3196  ;;  %v669_v39 = vadd.f32 1.0, %v3195_v35 }
 0x6a9   :  { %v707_v40 = vadd.f32 1.0, %v3197_v36 }
 0x6aa   :  { %3198 = vrcp.f32 %v669_v39 }
 0x6ab   :  { %3200 = vrcp.f32 %v707_v40 }
 0x6b7   :  { %v3199_v41 = vpop.eup %3198 }
 0x6b8   :  { %v3201_v38 = vpop.eup %3200  ;;  %v682_v18 = vsub.f32 1.0, %v3199_v41 }
 0x706   :  { %v673_v42 = vpop.permute.xlu1 %672 }
 0x707   :  { %v675_v45 = vmul.f32 %v3199_v41, %v673_v42 }
 0x708   :  { %v714_v46 = vpop.permute.xlu0 %713 }
 0x709   :  { %v716_v47 = vmul.f32 %v3201_v38, %v714_v46  ;;  %677 = vrot.lane.b32.xlu1 %v675_v45, %s3648_s0 }
 0x70b   :  { %718 = vrot.lane.b32.xlu0 %v716_v47, %s3648_s0 }
 0x70d   :  { %729 = vrot.lane.b32.xlu1 %v586_v63, %s3649_s21 }
 0x711   :  { %689 = vrot.lane.b32.xlu1 %v688_v48, %s3650_s22 }
 0x77b   :  { %v678_v49 = vpop.permute.xlu1 %677 }
 0x77c   :  { %v680_v52 = vadd.f32 %v678_v49, %v3870_v44 }
 0x77d   :  { %v719_v50 = vpop.permute.xlu0 %718 }
 0x77e   :  { %v721_v51 = vadd.f32 %v719_v50, %v3876_v62 }
 0x77f   :  { %v730_v61 = vpop.permute.xlu1 %729 }
 0x780   :  { %3202 = vtanh.f32 %v721_v51 }
 0x781   :  { %3204 = vtanh.f32 %v680_v52 }
 0x782   :  { %3206 = vpow2.f32 %v705_v58 }
 0x783   :  { %v690_v12 = vpop.permute.xlu1 %689 }
 0x784   :  { %v692_v26 = vmul.f32 %v3199_v41, %v690_v12 }
 0x78d   :  { %v3203_v53 = vpop.eup %3202 }
 0x78e   :  { %725 = vrot.lane.b32.xlu0 %v3203_v53, %s3649_s21  ;;  %v3205_v55 = vpop.eup %3204 }
 0x78f   :  { %v3207_v54 = vpop.eup %3206 }
 0x790   :  { %v708_v59 = vadd.f32 1.0, %v3207_v54 }
 0x792   :  { %684 = vrot.lane.b32.xlu0 %v3205_v55, %s3649_s21  ;;  %3208 = vrcp.f32 %v708_v59 }
 0x79f   :  { %v3209_v60 = vpop.eup %3208 }
 0x7a0   :  { %v723_v63 = vsub.f32 1.0, %v3209_v60  ;;  %v732_v9 = vmul.f32 %v3209_v60, %v730_v61 }
 0x800   :  { %v726_v7 = vpop.permute.xlu0 %725 }
 0x801   :  { %v728_v10 = vmul.f32 %v726_v7, %v723_v63 }
 0x803   :  { %v733_v14 = vadd.f32 %v732_v9, %v728_v10 }
 0x804   :  { %v685_v24 = vpop.permute.xlu0 %684 }
 0x805   :  { %739 = vst.msk [vmem:[#allocation3 + $0x8] sm:$0xc] %vm577_vm6, %v733_v14  ;;  %v687_v23 = vmul.f32 %v685_v24, %v682_v18  ;;  %v741_v27 = vrot.slane %v733_v14, 6 }
 0x807   :  { %v693_v28 = vadd.f32 %v692_v26, %v687_v23  ;;  %742 = vrot.lane.b32.xlu1 %v741_v27, %s3650_s22 }
 0x809   :  { %735 = vrot.lane.b32.xlu0 %v693_v28, %s3649_s21 }
 0x879   :  { %v743_v29 = vpop.permute.xlu1 %742 }
 0x87b   :  { %v736_v31 = vpop.permute.xlu0 %735 }
 0x87c   :  { %738 = vst.msk [vmem:[#allocation2] sm:$0x30] %vm579_vm5, %v736_v31  ;;  %v745_v33 = vsel %vm424_vm3, %v736_v31, %v743_v29 }
 0x87d   :  { %v747_v35 = vrot.slane %v745_v33, 4  ;;  %v847_v59 = vrot.slane %v745_v33, 6 }
 0x87f   :  { %3100 = vmatmul.mubr.msk.f32.vlgmr.msra.gmra.mxu0 %vm273_vm4, %v747_v35 }
 0x880   :  { %1077 = vmatpush1.msra.mxu0 %v3758_v2  ;;  %1124 = vmatprep.mubr.f32.mxu0 %v3647_v0 }
 0x881   :  { %1078 = vmatprep.subr.mxu0 %v3760_v3 }
 0x882   :  { %1079 = vmatpush1.msra.mxu0 %v3763_v4 }
 0x883   :  { %1080 = vmatprep.subr.mxu0 %v3766_v5 }
 0x884   :  { %1081 = vmatpush1.msra.mxu0 %v3769_v6 }
 0x885   :  { %1082 = vmatprep.subr.mxu0 %v3772_v8 }
 0x886   :  { %1083 = vmatpush1.msra.mxu0 %v3775_v11 }
 0x887   :  { %1084 = vmatprep.subr.mxu0 %v3778_v13 }
 0x888   :  { %1085 = vmatpush1.msra.mxu0 %v3784_v15 }
 0x889   :  { %1086 = vmatprep.subr.mxu0 %v3787_v16 }
 0x88a   :  { %1087 = vmatpush1.msra.mxu0 %v3791_v17 }
 0x88b   :  { %1088 = vmatprep.subr.mxu0 %v3798_v19 }
 0x88c   :  { %1089 = vmatpush1.msra.mxu0 %v3802_v20 }
 0x88d   :  { %1090 = vmatprep.subr.mxu0 %v3806_v21 }
 0x88e   :  { %1091 = vmatpush1.msra.mxu0 %v3810_v22 }
 0x88f   :  { %1395 = vmatprep.subr.mxu0 %v3756_v1 }
 0x93f   :  { %v816_v36 = vpop.f32.mrf.mxu0 }
 0x940   :  { %v817_v39 = vadd.f32 %v816_v36, %v3862_v37 }
 0x941   :  { %v818_v40 = vpop.f32.mrf.mxu0 }
 0x942   :  { %v822_v41 = vrot.slane %v817_v39, 2  ;;  %v819_v42 = vadd.f32 %v818_v40, %v3856_v32  ;;  %v853_v45 = vadd.f32 %v817_v39, %v3868_v43 }
 0x944   :  { %868 = vrot.lane.b32.xlu0 %v819_v42, %s3648_s0  ;;  %831 = vrot.lane.b32.xlu1 %v822_v41, %s3648_s0  ;;  %v824_v38 = vadd.f32 %v822_v41, %v3870_v44  ;;  %v855_v46 = vsub.f32 0.0, %v853_v45  ;;  %v854_v12 = vadd.f32 %v819_v42, %v3876_v62 }
 0x946   :  { %v825_v47 = vsub.f32 0.0, %v824_v38  ;;  %v857_v48 = vmul.f32 1.442695, %v855_v46  ;;  %v856_v14 = vsub.f32 0.0, %v854_v12 }
 0x948   :  { %v826_v49 = vmul.f32 1.442695, %v825_v47  ;;  %3210 = vpow2.f32 %v857_v48  ;;  %v859_v18 = vmul.f32 1.442695, %v856_v14 }
 0x94a   :  { %3212 = vpow2.f32 %v826_v49 }
 0x955   :  { %v3211_v1 = vpop.eup %3210 }
 0x956   :  { %v861_v51 = vadd.f32 1.0, %v3211_v1 }
 0x957   :  { %v3213_v50 = vpop.eup %3212 }
 0x958   :  { %v828_v52 = vadd.f32 1.0, %v3213_v50  ;;  %3214 = vrcp.f32 %v861_v51 }
 0x95a   :  { %3216 = vrcp.f32 %v828_v52 }
 0x965   :  { %v3215_v53 = vpop.eup %3214 }
 0x967   :  { %v3217_v55 = vpop.eup %3216 }
 0x968   :  { %v841_v39 = vsub.f32 1.0, %v3217_v55 }
 0x9b6   :  { %v869_v56 = vpop.permute.xlu0 %868  ;;  %v832_v57 = vpop.permute.xlu1 %831 }
 0x9b7   :  { %v871_v58 = vmul.f32 %v3215_v53, %v869_v56  ;;  %v834_v54 = vmul.f32 %v3217_v55, %v832_v57 }
 0x9b9   :  { %873 = vrot.lane.b32.xlu0 %v871_v58, %s3648_s0  ;;  %836 = vrot.lane.b32.xlu1 %v834_v54, %s3648_s0 }
 0x9bd   :  { %884 = vrot.lane.b32.xlu1 %v747_v35, %s3649_s21 }
 0x9c1   :  { %848 = vrot.lane.b32.xlu1 %v847_v59, %s3650_s22 }
 0xa2b   :  { %v874_v60 = vpop.permute.xlu0 %873  ;;  %v837_v61 = vpop.permute.xlu1 %836 }
 0xa2c   :  { %v876_v63 = vadd.f32 %v874_v60, %v3876_v62  ;;  %v839_v7 = vadd.f32 %v837_v61, %v3870_v44 }
 0xa2e   :  { %3218 = vtanh.f32 %v876_v63 }
 0xa2f   :  { %3220 = vtanh.f32 %v839_v7  ;;  %v885_v27 = vpop.permute.xlu1 %884 }
 0xa30   :  { %3222 = vpow2.f32 %v859_v18 }
 0xa33   :  { %v849_v35 = vpop.permute.xlu1 %848 }
 0xa34   :  { %v851_v41 = vmul.f32 %v3217_v55, %v849_v35 }
 0xa3b   :  { %v3219_v9 = vpop.eup %3218 }
 0xa3c   :  { %880 = vrot.lane.b32.xlu0 %v3219_v9, %s3649_s21  ;;  %v3221_v10 = vpop.eup %3220 }
 0xa3d   :  { %v3223_v24 = vpop.eup %3222 }
 0xa3e   :  { %v862_v26 = vadd.f32 1.0, %v3223_v24 }
 0xa40   :  { %843 = vrot.lane.b32.xlu0 %v3221_v10, %s3649_s21  ;;  %3224 = vrcp.f32 %v862_v26 }
 0xa4d   :  { %v3225_v23 = vpop.eup %3224 }
 0xa4e   :  { %v878_v28 = vsub.f32 1.0, %v3225_v23  ;;  %v887_v31 = vmul.f32 %v3225_v23, %v885_v27 }
 0xaae   :  { %v881_v29 = vpop.permute.xlu0 %880 }
 0xaaf   :  { %v883_v33 = vmul.f32 %v881_v29, %v878_v28 }
 0xab1   :  { %v888_v36 = vadd.f32 %v887_v31, %v883_v33 }
 0xab2   :  { %v844_v40 = vpop.permute.xlu0 %843 }
 0xab3   :  { %894 = vst.msk [vmem:[#allocation3 + $0x8] sm:$0x3] %vm415_vm2, %v888_v36  ;;  %v846_v62 = vmul.f32 %v844_v40, %v841_v39  ;;  %v896_v42 = vrot.slane %v888_v36, 2 }
 0xab5   :  { %v852_v45 = vadd.f32 %v851_v41, %v846_v62  ;;  %897 = vrot.lane.b32.xlu1 %v896_v42, %s3650_s22 }
 0xab7   :  { %890 = vrot.lane.b32.xlu0 %v852_v45, %s3649_s21 }
 0xb27   :  { %v898_v38 = vpop.permute.xlu1 %897 }
 0xb29   :  { %v891_v46 = vpop.permute.xlu0 %890 }
 0xb2a   :  { %893 = vst.msk [vmem:[#allocation2] sm:$0xc0] %vm417_vm1, %v891_v46  ;;  %v900_v47 = vsel %vm424_vm3, %v891_v46, %v898_v38  ;;  %v3418_v46 = vld [vmem:[#allocation9 + $0x70] sm:$0xff] }
 0xb2b   :  { %v902_v48 = vrot.slane %v900_v47, 6 }
 0xb2d   :  { %3101 = vmatmul.mubr.msk.f32.vlgmr.msra.gmra.mxu1 %vm273_vm4, %v902_v48 }
 0xb2e   :  { %1237 = vmatpush1.msra.mxu1 %v3758_v2  ;;  %1284 = vmatprep.mubr.f32.mxu1 %v3647_v0 }
 0xb2f   :  { %1238 = vmatprep.subr.mxu1 %v3760_v3 }
 0xb30   :  { %1239 = vmatpush1.msra.mxu1 %v3763_v4 }
 0xb31   :  { %1240 = vmatprep.subr.mxu1 %v3766_v5 }
 0xb32   :  { %1241 = vmatpush1.msra.mxu1 %v3769_v6 }
 0xb33   :  { %1242 = vmatprep.subr.mxu1 %v3772_v8 }
 0xb34   :  { %1243 = vmatpush1.msra.mxu1 %v3775_v11 }
 0xb35   :  { %1244 = vmatprep.subr.mxu1 %v3778_v13 }
 0xb36   :  { %1245 = vmatpush1.msra.mxu1 %v3784_v15 }
 0xb37   :  { %1246 = vmatprep.subr.mxu1 %v3787_v16 }
 0xb38   :  { %1247 = vmatpush1.msra.mxu1 %v3791_v17 }
 0xb39   :  { %1248 = vmatprep.subr.mxu1 %v3798_v19 }
 0xb3a   :  { %1249 = vmatpush1.msra.mxu1 %v3802_v20 }
 0xb3b   :  { %1250 = vmatprep.subr.mxu1 %v3806_v21 }
 0xb3c   :  { %1251 = vmatpush1.msra.mxu1 %v3810_v22 }
 0xbed   :  { %v971_v2 = vpop.f32.mrf.mxu1 }
 0xbee   :  { %v972_v3 = vadd.f32 %v971_v2, %v3862_v37  ;;  %v3421_v2 = vld [vmem:[#allocation9 + $0x58] sm:$0xff] }
 0xbef   :  { %v973_v4 = vpop.f32.mrf.mxu1 }
 0xbf0   :  { %v974_v5 = vadd.f32 %v973_v4, %v3856_v32  ;;  %984 = vrot.lane.b32.xlu1 %v972_v3, %s3648_s0  ;;  %v976_v8 = vadd.f32 %v972_v3, %v3868_v43  ;;  %v1006_v11 = vrot.slane %v972_v3, 2  ;;  %v3422_v3 = vld [vmem:[#allocation9 + $0x50] sm:$0xff]  ;;  %v3423_v4 = vld [vmem:[#allocation9 + $0x48] sm:$0xff] }
 0xbf2   :  { %v1007_v6 = vrot.slane %v974_v5, 2  ;;  %v977_v13 = vsub.f32 0.0, %v976_v8  ;;  %v1010_v15 = vadd.f32 %v1006_v11, %v3870_v44  ;;  %v3424_v5 = vld [vmem:[#allocation9 + $0x40] sm:$0xff]  ;;  %v3426_v8 = vld [vmem:[#allocation9 + $0x30] sm:$0xff]  ;;  %v3427_v11 = vld [vmem:[#allocation9 + $0x28] sm:$0xff] }
 0xbf4   :  { %1024 = vrot.lane.b32.xlu0 %v1007_v6, %s3648_s0  ;;  %v978_v16 = vmul.f32 1.442695, %v977_v13  ;;  %v1012_v17 = vsub.f32 0.0, %v1010_v15  ;;  %v1011_v9 = vadd.f32 %v1007_v6, %v3853_v30  ;;  %v3425_v6 = vld [vmem:[#allocation9 + $0x38] sm:$0xff]  ;;  %v3428_v13 = vld [vmem:[#allocation9 + $0x20] sm:$0xff] }
 0xbf5   :  { %v3429_v15 = vld [vmem:[#allocation9 + $0x18] sm:$0xff] }
 0xbf6   :  { %3226 = vpow2.f32 %v978_v16  ;;  %v1014_v19 = vmul.f32 1.442695, %v1012_v17  ;;  %v1013_v10 = vsub.f32 0.0, %v1011_v9 }
 0xbf8   :  { %3228 = vpow2.f32 %v1014_v19  ;;  %v1016_v12 = vmul.f32 1.442695, %v1013_v10 }
 0xc03   :  { %v3227_v49 = vpop.eup %3226 }
 0xc04   :  { %v980_v1 = vadd.f32 1.0, %v3227_v49 }
 0xc05   :  { %v3229_v50 = vpop.eup %3228 }
 0xc06   :  { %3230 = vrcp.f32 %v980_v1  ;;  %v1018_v51 = vadd.f32 1.0, %v3229_v50 }
 0xc08   :  { %3232 = vrcp.f32 %v1018_v51 }
 0xc13   :  { %v3231_v52 = vpop.eup %3230 }
 0xc14   :  { %v994_v35 = vsub.f32 1.0, %v3231_v52 }
 0xc15   :  { %v3233_v56 = vpop.eup %3232 }
 0xc62   :  { %v985_v53 = vpop.permute.xlu1 %984 }
 0xc63   :  { %v987_v55 = vmul.f32 %v3231_v52, %v985_v53 }
 0xc65   :  { %989 = vrot.lane.b32.xlu1 %v987_v55, %s3648_s0 }
 0xc66   :  { %v1025_v57 = vpop.permute.xlu0 %1024 }
 0xc67   :  { %v1027_v58 = vmul.f32 %v3233_v56, %v1025_v57 }
 0xc69   :  { %1029 = vrot.lane.b32.xlu0 %v1027_v58, %s3648_s0  ;;  %1040 = vrot.lane.b32.xlu1 %v900_v47, %s3649_s21  ;;  %v3419_v47 = vld [vmem:[#allocation9 + $0x68] sm:$0xff] }
 0xc6d   :  { %1000 = vrot.lane.b32.xlu1 %v902_v48, %s3650_s22  ;;  %v3420_v48 = vld [vmem:[#allocation9 + $0x60] sm:$0xff] }
 0xcd7   :  { %v990_v54 = vpop.permute.xlu1 %989 }
 0xcd8   :  { %v992_v61 = vadd.f32 %v990_v54, %v3868_v43 }
 0xcdb   :  { %v1030_v59 = vpop.permute.xlu0 %1029  ;;  %v1041_v26 = vpop.permute.xlu1 %1040 }
 0xcdc   :  { %v1032_v60 = vadd.f32 %v1030_v59, %v3853_v30 }
 0xcde   :  { %3234 = vtanh.f32 %v1032_v60 }
 0xcdf   :  { %3236 = vtanh.f32 %v992_v61  ;;  %v1001_v31 = vpop.permute.xlu1 %1000 }
 0xce0   :  { %3238 = vpow2.f32 %v1016_v12  ;;  %v1003_v39 = vmul.f32 %v3231_v52, %v1001_v31 }
 0xceb   :  { %v3235_v63 = vpop.eup %3234 }
 0xcec   :  { %1036 = vrot.lane.b32.xlu0 %v3235_v63, %s3649_s21  ;;  %v3237_v7 = vpop.eup %3236 }
 0xced   :  { %v3239_v14 = vpop.eup %3238 }
 0xcee   :  { %v1019_v18 = vadd.f32 1.0, %v3239_v14 }
 0xcf0   :  { %996 = vrot.lane.b32.xlu0 %v3237_v7, %s3649_s21  ;;  %3240 = vrcp.f32 %v1019_v18 }
 0xcfd   :  { %v3241_v24 = vpop.eup %3240 }
 0xcfe   :  { %v1034_v23 = vsub.f32 1.0, %v3241_v24  ;;  %v1043_v28 = vmul.f32 %v3241_v24, %v1041_v26 }
 0xd5e   :  { %v1037_v27 = vpop.permute.xlu0 %1036 }
 0xd5f   :  { %v1039_v29 = vmul.f32 %v1037_v27, %v1034_v23 }
 0xd61   :  { %v1044_v33 = vadd.f32 %v1043_v28, %v1039_v29 }
 0xd62   :  { %v997_v36 = vpop.permute.xlu0 %996 }
 0xd63   :  { %1050 = vst.msk [vmem:[#allocation3] sm:$0xc0] %vm417_vm1, %v1044_v33  ;;  %v999_v40 = vmul.f32 %v997_v36, %v994_v35  ;;  %v1052_v41 = vrot.slane %v1044_v33, 6 }
 0xd65   :  { %v1004_v62 = vadd.f32 %v1003_v39, %v999_v40  ;;  %1053 = vrot.lane.b32.xlu1 %v1052_v41, %s3650_s22 }
 0xd67   :  { %1046 = vrot.lane.b32.xlu0 %v1004_v62, %s3649_s21 }
 0xdd7   :  { %v1054_v42 = vpop.permute.xlu1 %1053 }
 0xdd9   :  { %v1047_v45 = vpop.permute.xlu0 %1046 }
 0xdda   :  { %1049 = vst.msk [vmem:[#allocation2 + $0x8] sm:$0x3] %vm415_vm2, %v1047_v45  ;;  %v4039_v38 = vsel %vm424_vm3, %v1047_v45, %v1054_v42 }
 0xddb   :  { %3102 = vmatmul.mubr.msk.f32.vlgmr.msra.gmra.mxu0 %vm273_vm4, %v4039_v38  ;;  %v1198_v10 = vrot.slane %v4039_v38, 4  ;;  %v1157_v12 = vrot.slane %v4039_v38, 6 }
 0xddc   :  { %1396 = vmatpush1.msra.mxu0 %v3418_v46  ;;  %1443 = vmatprep.mubr.f32.mxu0 %v3647_v0 }
 0xddd   :  { %1397 = vmatprep.subr.mxu0 %v3419_v47 }
 0xdde   :  { %1398 = vmatpush1.msra.mxu0 %v3420_v48 }
 0xddf   :  { %1399 = vmatprep.subr.mxu0 %v3421_v2 }
 0xde0   :  { %1400 = vmatpush1.msra.mxu0 %v3422_v3 }
 0xde1   :  { %1401 = vmatprep.subr.mxu0 %v3423_v4 }
 0xde2   :  { %1402 = vmatpush1.msra.mxu0 %v3424_v5 }
 0xde3   :  { %1403 = vmatprep.subr.mxu0 %v3425_v6 }
 0xde4   :  { %1404 = vmatpush1.msra.mxu0 %v3426_v8 }
 0xde5   :  { %1405 = vmatprep.subr.mxu0 %v3427_v11 }
 0xde6   :  { %1406 = vmatpush1.msra.mxu0 %v3428_v13 }
 0xde7   :  { %1407 = vmatprep.subr.mxu0 %v3429_v15 }
 0xde8   :  { %1408 = vmatpush1.msra.mxu0 %v3802_v20 }
 0xde9   :  { %1409 = vmatprep.subr.mxu0 %v3806_v21 }
 0xdea   :  { %1410 = vmatpush1.msra.mxu0 %v3810_v22 }
 0xe9b   :  { %v1126_v16 = vpop.f32.mrf.mxu0 }
 0xe9c   :  { %v1127_v17 = vadd.f32 %v1126_v16, %v3862_v37 }
 0xe9d   :  { %v1128_v19 = vpop.f32.mrf.mxu0 }
 0xe9e   :  { %v1132_v49 = vrot.slane %v1127_v17, 6  ;;  %v1129_v1 = vadd.f32 %v1128_v19, %v3856_v32  ;;  %v1164_v51 = vrot.slane %v1127_v17, 4 }
 0xea0   :  { %v1165_v50 = vrot.slane %v1129_v1, 4  ;;  %1141 = vrot.lane.b32.xlu1 %v1132_v49, %s3648_s0  ;;  %v1134_v52 = vadd.f32 %v1132_v49, %v3868_v43  ;;  %v1168_v20 = vadd.f32 %v1164_v51, %v3870_v44 }
 0xea2   :  { %1182 = vrot.lane.b32.xlu0 %v1165_v50, %s3648_s0  ;;  %v1135_v21 = vsub.f32 0.0, %v1134_v52  ;;  %v1170_v53 = vsub.f32 0.0, %v1168_v20  ;;  %v1169_v28 = vadd.f32 %v1165_v50, %v3853_v30 }
 0xea4   :  { %v1136_v22 = vmul.f32 1.442695, %v1135_v21  ;;  %v1172_v55 = vmul.f32 1.442695, %v1170_v53  ;;  %v1171_v29 = vsub.f32 0.0, %v1169_v28 }
 0xea6   :  { %3242 = vpow2.f32 %v1136_v22  ;;  %v1174_v31 = vmul.f32 1.442695, %v1171_v29 }
 0xea7   :  { %3244 = vpow2.f32 %v1172_v55 }
 0xeb3   :  { %v3243_v56 = vpop.eup %3242 }
 0xeb4   :  { %v3245_v57 = vpop.eup %3244  ;;  %v1138_v58 = vadd.f32 1.0, %v3243_v56 }
 0xeb5   :  { %v1176_v54 = vadd.f32 1.0, %v3245_v57 }
 0xeb6   :  { %3246 = vrcp.f32 %v1138_v58 }
 0xeb7   :  { %3248 = vrcp.f32 %v1176_v54 }
 0xec3   :  { %v3247_v59 = vpop.eup %3246 }
 0xec4   :  { %v3249_v63 = vpop.eup %3248  ;;  %v1151_v46 = vsub.f32 1.0, %v3247_v59 }
 0xf12   :  { %v1142_v60 = vpop.permute.xlu1 %1141 }
 0xf13   :  { %v1144_v61 = vmul.f32 %v3247_v59, %v1142_v60 }
 0xf14   :  { %v1183_v7 = vpop.permute.xlu0 %1182 }
 0xf15   :  { %v1185_v9 = vmul.f32 %v3249_v63, %v1183_v7  ;;  %1146 = vrot.lane.b32.xlu1 %v1144_v61, %s3648_s0 }
 0xf17   :  { %1187 = vrot.lane.b32.xlu0 %v1185_v9, %s3648_s0 }
 0xf19   :  { %1199 = vrot.lane.b32.xlu1 %v1198_v10, %s3649_s21 }
 0xf1d   :  { %1158 = vrot.lane.b32.xlu1 %v1157_v12, %s3650_s22 }
 0xf87   :  { %v1147_v14 = vpop.permute.xlu1 %1146 }
 0xf88   :  { %v1149_v26 = vadd.f32 %v1147_v14, %v3868_v43 }
 0xf89   :  { %v1188_v18 = vpop.permute.xlu0 %1187 }
 0xf8a   :  { %v1190_v24 = vadd.f32 %v1188_v18, %v3853_v30 }
 0xf8b   :  { %v1200_v39 = vpop.permute.xlu1 %1199 }
 0xf8c   :  { %3250 = vtanh.f32 %v1190_v24 }
 0xf8d   :  { %3252 = vtanh.f32 %v1149_v26 }
 0xf8e   :  { %3254 = vpow2.f32 %v1174_v31 }
 0xf8f   :  { %v1159_v45 = vpop.permute.xlu1 %1158 }
 0xf90   :  { %v1161_v48 = vmul.f32 %v3247_v59, %v1159_v45 }
 0xf99   :  { %v3251_v23 = vpop.eup %3250 }
 0xf9a   :  { %1194 = vrot.lane.b32.xlu0 %v3251_v23, %s3649_s21  ;;  %v3253_v27 = vpop.eup %3252 }
 0xf9b   :  { %v3255_v33 = vpop.eup %3254 }
 0xf9c   :  { %v1177_v35 = vadd.f32 1.0, %v3255_v33 }
 0xf9e   :  { %1153 = vrot.lane.b32.xlu0 %v3253_v27, %s3649_s21  ;;  %3256 = vrcp.f32 %v1177_v35 }
 0xfab   :  { %v3257_v36 = vpop.eup %3256 }
 0xfac   :  { %v1192_v40 = vsub.f32 1.0, %v3257_v36  ;;  %v1202_v62 = vmul.f32 %v3257_v36, %v1200_v39 }
0x100c   :  { %v1195_v41 = vpop.permute.xlu0 %1194 }
0x100d   :  { %v1197_v42 = vmul.f32 %v1195_v41, %v1192_v40 }
0x100f   :  { %v1203_v38 = vadd.f32 %v1202_v62, %v1197_v42 }
0x1010   :  { %v1154_v47 = vpop.permute.xlu0 %1153 }
0x1011   :  { %1209 = vst.msk [vmem:[#allocation3] sm:$0x30] %vm579_vm5, %v1203_v38  ;;  %v1156_v2 = vmul.f32 %v1154_v47, %v1151_v46  ;;  %v1211_v3 = vrot.slane %v1203_v38, 2 }
0x1013   :  { %v1162_v4 = vadd.f32 %v1161_v48, %v1156_v2  ;;  %1212 = vrot.lane.b32.xlu1 %v1211_v3, %s3650_s22 }
0x1015   :  { %1205 = vrot.lane.b32.xlu0 %v1162_v4, %s3649_s21 }
0x1085   :  { %v1213_v5 = vpop.permute.xlu1 %1212 }
0x1087   :  { %v1206_v6 = vpop.permute.xlu0 %1205 }
0x1088   :  { %1208 = vst.msk [vmem:[#allocation2 + $0x8] sm:$0xc] %vm577_vm6, %v1206_v6  ;;  %v1215_v8 = vsel %vm424_vm3, %v1206_v6, %v1213_v5 }
0x1089   :  { %v1217_v11 = vrot.slane %v1215_v8, 2  ;;  %v1317_v7 = vrot.slane %v1215_v8, 6 }
0x108b   :  { %3103 = vmatmul.mubr.msk.f32.vlgmr.msra.gmra.mxu1 %vm273_vm4, %v1217_v11 }
0x108c   :  { %1818 = vmatprep.mubr.f32.mxu1 %v3647_v0 }
0x114b   :  { %v1286_v13 = vpop.f32.mrf.mxu1 }
0x114c   :  { %v1287_v15 = vadd.f32 %v1286_v13, %v3862_v37 }
0x114d   :  { %v1288_v16 = vpop.f32.mrf.mxu1 }
0x114e   :  { %v1292_v17 = vrot.slane %v1287_v15, 4  ;;  %v1289_v19 = vadd.f32 %v1288_v16, %v3856_v32  ;;  %v1324_v1 = vrot.slane %v1287_v15, 6 }
0x1150   :  { %v1325_v49 = vrot.slane %v1289_v19, 6  ;;  %1301 = vrot.lane.b32.xlu1 %v1292_v17, %s3648_s0  ;;  %v1294_v50 = vadd.f32 %v1292_v17, %v3868_v43  ;;  %v1328_v51 = vadd.f32 %v1324_v1, %v3870_v44 }
0x1152   :  { %1342 = vrot.lane.b32.xlu0 %v1325_v49, %s3648_s0  ;;  %v1295_v52 = vsub.f32 0.0, %v1294_v50  ;;  %v1330_v20 = vsub.f32 0.0, %v1328_v51  ;;  %v1329_v26 = vadd.f32 %v1325_v49, %v3853_v30 }
0x1154   :  { %v1296_v21 = vmul.f32 1.442695, %v1295_v52  ;;  %v1332_v53 = vmul.f32 1.442695, %v1330_v20  ;;  %v1331_v23 = vsub.f32 0.0, %v1329_v26  ;;  %v4149_v26 = vld [vmem:[#allocation15 + $0x8] sm:$0xff] }
0x1156   :  { %3258 = vpow2.f32 %v1296_v21  ;;  %v1334_v27 = vmul.f32 1.442695, %v1331_v23  ;;  %v4152_v23 = vld [vmem:[#allocation15] sm:$0xff] }
0x1157   :  { %3260 = vpow2.f32 %v1332_v53 }
0x1163   :  { %v3259_v22 = vpop.eup %3258 }
0x1164   :  { %v3261_v55 = vpop.eup %3260  ;;  %v1298_v56 = vadd.f32 1.0, %v3259_v22 }
0x1165   :  { %v1336_v57 = vadd.f32 1.0, %v3261_v55 }
0x1166   :  { %3262 = vrcp.f32 %v1298_v56 }
0x1167   :  { %3264 = vrcp.f32 %v1336_v57  ;;  %v4109_v57 = vld [vmem:[#allocation15 + $0x78] sm:$0xff] }
0x1168   :  { %1770 = vmatprep.subr.mxu1 %v4109_v57 }
0x1173   :  { %v3263_v58 = vpop.eup %3262 }
0x1174   :  { %v3265_v60 = vpop.eup %3264  ;;  %v1311_v42 = vsub.f32 1.0, %v3263_v58 }
0x11c2   :  { %v1302_v54 = vpop.permute.xlu1 %1301 }
0x11c3   :  { %v1304_v59 = vmul.f32 %v3263_v58, %v1302_v54  ;;  %v4113_v54 = vld [vmem:[#allocation15 + $0x68] sm:$0xff] }
0x11c4   :  { %v1343_v61 = vpop.permute.xlu0 %1342 }
0x11c5   :  { %v1345_v63 = vmul.f32 %v3265_v60, %v1343_v61  ;;  %1306 = vrot.lane.b32.xlu1 %v1304_v59, %s3648_s0  ;;  %v4116_v59 = vld [vmem:[#allocation15 + $0x60] sm:$0xff]  ;;  %v4119_v60 = vld [vmem:[#allocation15 + $0x58] sm:$0xff]  ;;  %v4122_v61 = vld [vmem:[#allocation15 + $0x50] sm:$0xff] }
0x11c7   :  { %1347 = vrot.lane.b32.xlu0 %v1345_v63, %s3648_s0  ;;  %v4125_v63 = vld [vmem:[#allocation15 + $0x48] sm:$0xff] }
0x11c9   :  { %1358 = vrot.lane.b32.xlu1 %v1215_v8, %s3649_s21 }
0x11cd   :  { %1318 = vrot.lane.b32.xlu1 %v1317_v7, %s3650_s22  ;;  %v4128_v7 = vld [vmem:[#allocation15 + $0x40] sm:$0xff] }
0x1237   :  { %v1307_v9 = vpop.permute.xlu1 %1306 }
0x1238   :  { %v1309_v14 = vadd.f32 %v1307_v9, %v3868_v43  ;;  %v4131_v9 = vld [vmem:[#allocation15 + $0x38] sm:$0xff] }
0x1239   :  { %v1348_v10 = vpop.permute.xlu0 %1347 }
0x123a   :  { %v1350_v12 = vadd.f32 %v1348_v10, %v3853_v30  ;;  %v4134_v10 = vld [vmem:[#allocation15 + $0x30] sm:$0xff] }
0x123b   :  { %v1359_v33 = vpop.permute.xlu1 %1358 }
0x123c   :  { %3266 = vtanh.f32 %v1350_v12  ;;  %v4137_v12 = vld [vmem:[#allocation15 + $0x28] sm:$0xff] }
0x123d   :  { %3268 = vtanh.f32 %v1309_v14  ;;  %v4140_v14 = vld [vmem:[#allocation15 + $0x20] sm:$0xff] }
0x123e   :  { %3270 = vpow2.f32 %v1334_v27 }
0x123f   :  { %v1319_v41 = vpop.permute.xlu1 %1318 }
0x1240   :  { %v1321_v38 = vmul.f32 %v3263_v58, %v1319_v41  ;;  %v4111_v58 = vld [vmem:[#allocation15 + $0x70] sm:$0xff] }
0x1241   :  { %1771 = vmatpush1.msra.mxu1 %v4111_v58  ;;  %v1538_v41 = vld [vmem:[#allocation12 + $0x10] sm:$0xff] }
0x1242   :  { %1772 = vmatprep.subr.mxu1 %v4113_v54 }
0x1243   :  { %1773 = vmatpush1.msra.mxu1 %v4116_v59 }
0x1244   :  { %1774 = vmatprep.subr.mxu1 %v4119_v60 }
0x1245   :  { %1775 = vmatpush1.msra.mxu1 %v4122_v61 }
0x1246   :  { %1776 = vmatprep.subr.mxu1 %v4125_v63 }
0x1247   :  { %1777 = vmatpush1.msra.mxu1 %v4128_v7 }
0x1248   :  { %1778 = vmatprep.subr.mxu1 %v4131_v9 }
0x1249   :  { %v3267_v18 = vpop.eup %3266  ;;  %1779 = vmatpush1.msra.mxu1 %v4134_v10 }
0x124a   :  { %1354 = vrot.lane.b32.xlu0 %v3267_v18, %s3649_s21  ;;  %v3269_v24 = vpop.eup %3268  ;;  %v4143_v18 = vld [vmem:[#allocation15 + $0x18] sm:$0xff]  ;;  %1780 = vmatprep.subr.mxu1 %v4137_v12 }
0x124b   :  { %v3271_v28 = vpop.eup %3270  ;;  %1781 = vmatpush1.msra.mxu1 %v4140_v14 }
0x124c   :  { %v1337_v29 = vadd.f32 1.0, %v3271_v28  ;;  %1782 = vmatprep.subr.mxu1 %v4143_v18 }
0x124e   :  { %1313 = vrot.lane.b32.xlu0 %v3269_v24, %s3649_s21  ;;  %3272 = vrcp.f32 %v1337_v29  ;;  %v4146_v24 = vld [vmem:[#allocation15 + $0x10] sm:$0xff] }
0x124f   :  { %1783 = vmatpush1.msra.mxu1 %v4146_v24 }
0x1250   :  { %1784 = vmatprep.subr.mxu1 %v4149_v26 }
0x1251   :  { %1785 = vmatpush1.msra.mxu1 %v4152_v23 }
0x1252   :  { %1819 = vmatmul.mubr.f32.vlgmr.msra.gmra.mxu1 %v3647_v0  ;;  %2075 = vmatprep.subr.mxu1 %v4109_v57 }
0x1253   :  { %2076 = vmatpush1.msra.mxu1 %v4111_v58  ;;  %2123 = vmatprep.mubr.f32.mxu1 %v3647_v0 }
0x1254   :  { %2077 = vmatprep.subr.mxu1 %v4113_v54 }
0x1255   :  { %2078 = vmatpush1.msra.mxu1 %v4116_v59 }
0x1256   :  { %2079 = vmatprep.subr.mxu1 %v4119_v60 }
0x1257   :  { %2080 = vmatpush1.msra.mxu1 %v4122_v61 }
0x1258   :  { %2081 = vmatprep.subr.mxu1 %v4125_v63 }
0x1259   :  { %2082 = vmatpush1.msra.mxu1 %v4128_v7 }
0x125a   :  { %2083 = vmatprep.subr.mxu1 %v4131_v9 }
0x125b   :  { %v3273_v31 = vpop.eup %3272  ;;  %2084 = vmatpush1.msra.mxu1 %v4134_v10 }
0x125c   :  { %v1352_v35 = vsub.f32 1.0, %v3273_v31  ;;  %v1361_v39 = vmul.f32 %v3273_v31, %v1359_v33  ;;  %2085 = vmatprep.subr.mxu1 %v4137_v12  ;;  %v1543_v33 = vld [vmem:[#allocation12 + $0x38] sm:$0xff] }
0x125d   :  { %2086 = vmatpush1.msra.mxu1 %v4140_v14  ;;  %1574 = vmatprep.subr.mxu0 %v1543_v33 }
0x125e   :  { %2087 = vmatprep.subr.mxu1 %v4143_v18 }
0x125f   :  { %2088 = vmatpush1.msra.mxu1 %v4146_v24 }
0x1260   :  { %2089 = vmatprep.subr.mxu1 %v4149_v26 }
0x1261   :  { %2090 = vmatpush1.msra.mxu1 %v4152_v23 }
0x1262   :  { %2385 = vmatprep.subr.mxu1 %v4109_v57 }
0x12bc   :  { %v1355_v36 = vpop.permute.xlu0 %1354 }
0x12bd   :  { %v1357_v40 = vmul.f32 %v1355_v36, %v1352_v35  ;;  %v1542_v35 = vld [vmem:[#allocation12 + $0x30] sm:$0xff]  ;;  %v1541_v36 = vld [vmem:[#allocation12 + $0x28] sm:$0xff] }
0x12bf   :  { %v1362_v62 = vadd.f32 %v1361_v39, %v1357_v40  ;;  %v1540_v39 = vld [vmem:[#allocation12 + $0x20] sm:$0xff]  ;;  %v1539_v40 = vld [vmem:[#allocation12 + $0x18] sm:$0xff] }
0x12c0   :  { %v1314_v45 = vpop.permute.xlu0 %1313 }
0x12c1   :  { %1368 = vst.msk [vmem:[#allocation3] sm:$0xc] %vm577_vm6, %v1362_v62  ;;  %v1316_v46 = vmul.f32 %v1314_v45, %v1311_v42  ;;  %v1370_v47 = vrot.slane %v1362_v62, 6  ;;  %v1537_v62 = vld [vmem:[#allocation12 + $0x8] sm:$0xff]  ;;  %v1536_v45 = vld [vmem:[#allocation12] sm:$0xff] }
0x12c3   :  { %v1322_v48 = vadd.f32 %v1321_v38, %v1316_v46  ;;  %1371 = vrot.lane.b32.xlu1 %v1370_v47, %s3650_s22 }
0x12c5   :  { %1364 = vrot.lane.b32.xlu0 %v1322_v48, %s3649_s21 }
0x1335   :  { %v1372_v2 = vpop.permute.xlu1 %1371 }
0x1337   :  { %v1365_v3 = vpop.permute.xlu0 %1364 }
0x1338   :  { %1367 = vst.msk [vmem:[#allocation2 + $0x8] sm:$0x30] %vm579_vm5, %v1365_v3  ;;  %v1374_v4 = vsel %vm424_vm3, %v1365_v3, %v1372_v2 }
0x1339   :  { %v1376_v5 = vrot.slane %v1374_v4, 4  ;;  %v1476_v56 = vrot.slane %v1374_v4, 6 }
0x133b   :  { %3104 = vmatmul.mubr.msk.f32.vlgmr.msra.gmra.mxu0 %vm273_vm4, %v1376_v5 }
0x133c   :  { %1614 = vmatprep.mubr.f32.mxu0 %v3647_v0  ;;  %1575 = vmatpush1.msra.mxu0 %v1542_v35 }
0x133d   :  { %1576 = vmatprep.subr.mxu0 %v1541_v36 }
0x133e   :  { %1577 = vmatpush1.msra.mxu0 %v1540_v39 }
0x133f   :  { %1578 = vmatprep.subr.mxu0 %v1539_v40 }
0x1340   :  { %1579 = vmatpush1.msra.mxu0 %v1538_v41 }
0x1341   :  { %1580 = vmatprep.subr.mxu0 %v1537_v62 }
0x1342   :  { %1581 = vmatpush1.msra.mxu0 %v1536_v45 }
0x13fb   :  { %v1445_v6 = vpop.f32.mrf.mxu0 }
0x13fc   :  { %v1446_v8 = vadd.f32 %v1445_v6, %v3862_v37 }
0x13fd   :  { %v1447_v11 = vpop.f32.mrf.mxu0 }
0x13fe   :  { %v1451_v13 = vrot.slane %v1446_v8, 2  ;;  %v4095_v15 = vadd.f32 %v1447_v11, %v3856_v32  ;;  %v1482_v16 = vadd.f32 %v1446_v8, %v3870_v44 }
0x1400   :  { %1497 = vrot.lane.b32.xlu1 %v4095_v15, %s3648_s0  ;;  %1460 = vrot.lane.b32.xlu0 %v1451_v13, %s3648_s0  ;;  %v1453_v17 = vadd.f32 %v1451_v13, %v3868_v43  ;;  %v1484_v19 = vsub.f32 0.0, %v1482_v16  ;;  %v1483_v46 = vadd.f32 %v4095_v15, %v3853_v30 }
0x1402   :  { %v1454_v49 = vsub.f32 0.0, %v1453_v17  ;;  %v1486_v1 = vmul.f32 1.442695, %v1484_v19  ;;  %v1485_v47 = vsub.f32 0.0, %v1483_v46 }
0x1404   :  { %v1455_v50 = vmul.f32 1.442695, %v1454_v49  ;;  %3274 = vpow2.f32 %v1486_v1  ;;  %v1488_v48 = vmul.f32 1.442695, %v1485_v47 }
0x1406   :  { %3276 = vpow2.f32 %v1455_v50 }
0x1411   :  { %v3275_v37 = vpop.eup %3274 }
0x1412   :  { %v1490_v52 = vadd.f32 1.0, %v3275_v37 }
0x1413   :  { %v3277_v51 = vpop.eup %3276 }
0x1414   :  { %v1457_v32 = vadd.f32 1.0, %v3277_v51  ;;  %3278 = vrcp.f32 %v1490_v52 }
0x1416   :  { %3280 = vrcp.f32 %v1457_v32  ;;  %v1532_v32 = vld [vmem:[%s4546_s5 + $0x30] sm:$0xff] }
0x1421   :  { %v3279_v20 = vpop.eup %3278 }
0x1423   :  { %v4102_v21 = vpop.eup %3280 }
0x1424   :  { %v1470_v6 = vsub.f32 1.0, %v4102_v21 }
0x1472   :  { %v1498_v53 = vpop.permute.xlu1 %1497  ;;  %v1461_v22 = vpop.permute.xlu0 %1460 }
0x1473   :  { %v1500_v44 = vmul.f32 %v3279_v20, %v1498_v53  ;;  %v1463_v55 = vmul.f32 %v4102_v21, %v1461_v22  ;;  %v1530_v53 = vld [vmem:[%s4546_s5 + $0x20] sm:$0xff]  ;;  %v1529_v22 = vld [vmem:[%s4546_s5 + $0x18] sm:$0xff] }
0x1475   :  { %1502 = vrot.lane.b32.xlu1 %v1500_v44, %s3648_s0  ;;  %1465 = vrot.lane.b32.xlu0 %v1463_v55, %s3648_s0  ;;  %v1528_v44 = vld [vmem:[%s4546_s5 + $0x10] sm:$0xff]  ;;  %v1535_v55 = vld [vmem:[#allocation3 + $0x8] sm:$0xff] }
0x1479   :  { %1477 = vrot.lane.b32.xlu1 %v1476_v56, %s3650_s22  ;;  %v1527_v56 = vld [vmem:[%s4546_s5 + $0x8] sm:$0xff] }
0x147d   :  { %1513 = vrot.lane.b32.xlu1 %v1376_v5, %s3649_s21  ;;  %v1742_v5 = vld [vmem:[#allocation16] sm:$0x3] }
0x147e   :  { %v4187_v13 = vrot.slane %v1742_v5, %v3858_v34 }
0x14e7   :  { %v1466_v27 = vpop.permute.xlu0 %1465  ;;  %v1503_v28 = vpop.permute.xlu1 %1502 }
0x14e8   :  { %v1468_v29 = vadd.f32 %v1466_v27, %v3868_v43  ;;  %v1505_v31 = vadd.f32 %v1503_v28, %v3853_v30  ;;  %v1533_v43 = vld [vmem:[%s4546_s5 + $0x38] sm:$0xff]  ;;  %v1820_v30 = vpop.f32.mrf.mxu1  ;;  %v1526_v27 = vld [vmem:[%s4546_s5] sm:$0xff] }
0x14e9   :  { %1657 = vmatprep.subr.mxu0 %v1533_v43  ;;  %v4192_v51 = vadd.f32 %v1820_v30, %v4187_v13  ;;  %v1524_v28 = vld [vmem:[#allocation2] sm:$0xff] }
0x14ea   :  { %3282 = vtanh.f32 %v1468_v29  ;;  %v4242_v29 = vrot.slane %v1742_v5, %v3850_v25 }
0x14eb   :  { %3284 = vtanh.f32 %v1505_v31  ;;  %v1478_v4 = vpop.permute.xlu1 %1477  ;;  %v1822_v31 = vpop.f32.mrf.mxu1 }
0x14ec   :  { %3286 = vpow2.f32 %v1488_v48  ;;  %v1480_v16 = vmul.f32 %v4102_v21, %v1478_v4  ;;  %v1531_v21 = vld [vmem:[%s4546_s5 + $0x28] sm:$0xff]  ;;  %v4245_v33 = vadd.f32 %v1822_v31, %v4242_v29 }
0x14ee   :  { %v1853_v35 = vrot.slane %v4245_v33, 2 }
0x14ef   :  { %v1514_v19 = vpop.permute.xlu1 %1513 }
0x14f0   :  { %1870 = vrot.lane.b32.xlu1 %v1853_v35, %s3648_s0 }
0x14f7   :  { %v3283_v42 = vpop.eup %3282 }
0x14f8   :  { %1472 = vrot.lane.b32.xlu0 %v3283_v42, %s3649_s21  ;;  %v3285_v38 = vpop.eup %3284  ;;  %v1710_v42 = vld [vmem:[#allocation13] sm:$0x3] }
0x14f9   :  { %v3287_v2 = vpop.eup %3286  ;;  %v1715_v43 = vrot.slane %v1710_v42, %v3858_v34 }
0x14fa   :  { %v1491_v3 = vadd.f32 1.0, %v3287_v2 }
0x14fc   :  { %1509 = vrot.lane.b32.xlu0 %v3285_v38, %s3649_s21  ;;  %3288 = vrcp.f32 %v1491_v3 }
0x1509   :  { %v3289_v8 = vpop.eup %3288 }
0x150a   :  { %v1507_v49 = vsub.f32 1.0, %v3289_v8  ;;  %v1516_v50 = vmul.f32 %v3289_v8, %v1514_v19  ;;  %v1852_v19 = vrot.slane %v4192_v51, 2 }
0x156a   :  { %v1473_v11 = vpop.permute.xlu0 %1472 }
0x156b   :  { %v1475_v17 = vmul.f32 %v1473_v11, %v1470_v6 }
0x156d   :  { %v1481_v15 = vadd.f32 %v1480_v16, %v1475_v17 }
0x156e   :  { %v1510_v1 = vpop.permute.xlu0 %1509 }
0x156f   :  { %v1512_v37 = vmul.f32 %v1510_v1, %v1507_v49  ;;  %1519 = vrot.lane.b32.xlu0 %v1481_v15, %s3649_s21 }
0x1571   :  { %v1517_v52 = vadd.f32 %v1516_v50, %v1512_v37 }
0x1573   :  { %1523 = vst.msk [vmem:[#allocation3] sm:$0x3] %vm415_vm2, %v1517_v52  ;;  %1833 = vrot.lane.b32.xlu0 %v4192_v51, %s3648_s0 }
0x157a   :  { %v1534_v20 = vld [vmem:[#allocation3] sm:$0xff] }
0x157b   :  { %3105 = vmatmul.mubr.msk.f32.vlgmr.msra.gmra.mxu0 %vm424_vm3, %v1534_v20 }
0x157c   :  { %1658 = vmatpush1.msra.mxu0 %v1532_v32  ;;  %1620 = vmatprep.mubr.f32.mxu0 %v3647_v0  ;;  %v1871_v32 = vpop.permute.xlu1 %1870 }
0x157d   :  { %1659 = vmatprep.subr.mxu0 %v1531_v21 }
0x157e   :  { %1660 = vmatpush1.msra.mxu0 %v1530_v53 }
0x157f   :  { %3106 = vmatmul.mubr.msk.f32.gmra.mxu0 %vm424_vm3, %v1535_v55  ;;  %1661 = vmatprep.subr.mxu0 %v1529_v22  ;;  %v4272_v55 = vrot.slane %v1710_v42, %v3850_v25 }
0x1580   :  { %1662 = vmatpush1.msra.mxu0 %v1528_v44  ;;  %1697 = vmatprep.mubr.f32.mxu0 %v3647_v0 }
0x1581   :  { %1663 = vmatprep.subr.mxu0 %v1527_v56 }
0x1582   :  { %1664 = vmatpush1.msra.mxu0 %v1526_v27 }
0x1583   :  { %3107 = vmatmul.mubr.msk.f32.vlgmr.msra.gmra.mxu0 %vm424_vm3, %v1524_v28  ;;  %1917 = vmatprep.subr.mxu0 %v4109_v57 }
0x1584   :  { %1703 = vmatprep.mubr.f32.mxu0 %v3647_v0  ;;  %1918 = vmatpush1.msra.mxu0 %v4111_v58 }
0x1585   :  { %1919 = vmatprep.subr.mxu0 %v4113_v54 }
0x1586   :  { %1920 = vmatpush1.msra.mxu0 %v4116_v59 }
0x1587   :  { %1921 = vmatprep.subr.mxu0 %v4119_v60 }
0x1588   :  { %1922 = vmatpush1.msra.mxu0 %v4122_v61 }
0x1589   :  { %1923 = vmatprep.subr.mxu0 %v4125_v63 }
0x158a   :  { %1924 = vmatpush1.msra.mxu0 %v4128_v7 }
0x158b   :  { %1925 = vmatprep.subr.mxu0 %v4131_v9 }
0x158c   :  { %1926 = vmatpush1.msra.mxu0 %v4134_v10 }
0x158d   :  { %1927 = vmatprep.subr.mxu0 %v4137_v12 }
0x158e   :  { %1928 = vmatpush1.msra.mxu0 %v4140_v14 }
0x158f   :  { %1929 = vmatprep.subr.mxu0 %v4143_v18 }
0x1590   :  { %1930 = vmatpush1.msra.mxu0 %v4146_v24 }
0x1591   :  { %1931 = vmatprep.subr.mxu0 %v4149_v26 }
0x1592   :  { %1932 = vmatpush1.msra.mxu0 %v4152_v23 }
0x1593   :  { %2232 = vmatprep.subr.mxu0 %v4109_v57 }
0x15e1   :  { %v1520_v36 = vpop.permute.xlu0 %1519 }
0x15e2   :  { %1522 = vst.msk [vmem:[#allocation2 + $0x8] sm:$0xc0] %vm417_vm1, %v1520_v36 }
0x15e5   :  { %v1834_v6 = vpop.permute.xlu0 %1833 }
0x15e9   :  { %v1525_v39 = vld [vmem:[#allocation2 + $0x8] sm:$0xff] }
0x15ea   :  { %3108 = vmatmul.mubr.msk.f32.gmra.mxu0 %vm424_vm3, %v1525_v39 }
0x15eb   :  { %1965 = vmatprep.mubr.f32.mxu0 %v3647_v0 }
0x163b   :  { %v1616_v40 = vpop.f32.mrf.mxu0 }
0x163d   :  { %v4254_v41 = vpop.f32.mrf.mxu0 }
0x163f   :  { %v1622_v62 = vpop.f32.mrf.mxu0 }
0x1641   :  { %v1624_v45 = vpop.f32.mrf.mxu0 }
0x1643   :  { %v1699_v38 = vpop.f32.mrf.mxu0 }
0x1644   :  { %v1700_v46 = vadd.f32 %v1699_v38, %v1616_v40 }
0x1645   :  { %v4262_v16 = vpop.f32.mrf.mxu0 }
0x1646   :  { %v4257_v47 = vadd.f32 %v1715_v43, %v1700_v46 }
0x1648   :  { %v1825_v48 = vadd.f32 %v4192_v51, %v4257_v47 }
0x164a   :  { %v1826_v2 = vsub.f32 0.0, %v1825_v48 }
0x164c   :  { %v1827_v3 = vmul.f32 1.442695, %v1826_v2 }
0x164e   :  { %3290 = vpow2.f32 %v1827_v3 }
0x165b   :  { %v3291_v4 = vpop.eup %3290 }
0x165c   :  { %v1829_v5 = vadd.f32 1.0, %v3291_v4 }
0x165e   :  { %3292 = vrcp.f32 %v1829_v5 }
0x166b   :  { %v3293_v8 = vpop.eup %3292 }
0x166c   :  { %v1836_v11 = vmul.f32 %v3293_v8, %v1834_v6  ;;  %v1843_v36 = vsub.f32 1.0, %v3293_v8  ;;  %v1849_v40 = vmul.f32 0.0, %v3293_v8 }
0x166e   :  { %1838 = vrot.lane.b32.xlu0 %v1836_v11, %s3648_s0 }
0x16aa   :  { %v1705_v34 = vpop.f32.mrf.mxu0 }
0x16ab   :  { %v1706_v17 = vadd.f32 %v1705_v34, %v1622_v62 }
0x16ac   :  { %v1707_v22 = vpop.f32.mrf.mxu0 }
0x16ad   :  { %v4265_v30 = vadd.f32 %v1715_v43, %v1706_v17  ;;  %v1708_v44 = vadd.f32 %v1707_v22, %v1624_v45 }
0x16af   :  { %v1856_v15 = vadd.f32 %v1852_v19, %v4265_v30  ;;  %v4275_v56 = vadd.f32 %v4272_v55, %v1708_v44 }
0x16b1   :  { %v1858_v49 = vsub.f32 0.0, %v1856_v15  ;;  %v1857_v25 = vadd.f32 %v1853_v35, %v4275_v56 }
0x16b3   :  { %v1860_v1 = vmul.f32 1.442695, %v1858_v49  ;;  %v1859_v42 = vsub.f32 0.0, %v1857_v25 }
0x16b5   :  { %3294 = vpow2.f32 %v1860_v1  ;;  %v1862_v45 = vmul.f32 1.442695, %v1859_v42 }
0x16c2   :  { %v3295_v50 = vpop.eup %3294 }
0x16c3   :  { %v1864_v37 = vadd.f32 1.0, %v3295_v50 }
0x16c5   :  { %3296 = vrcp.f32 %v1864_v37 }
0x16d2   :  { %v3297_v52 = vpop.eup %3296 }
0x16d3   :  { %v1873_v20 = vmul.f32 %v3297_v52, %v1871_v32 }
0x16d5   :  { %1875 = vrot.lane.b32.xlu1 %v1873_v20, %s3648_s0 }
0x16e0   :  { %v1839_v21 = vpop.permute.xlu0 %1838 }
0x16e1   :  { %v1841_v53 = vadd.f32 %v1839_v21, %v4257_v47 }
0x16e3   :  { %3298 = vtanh.f32 %v1841_v53 }
0x16f0   :  { %v3299_v51 = vpop.eup %3298 }
0x16f1   :  { %1845 = vrot.lane.b32.xlu0 %v3299_v51, %s3649_s21 }
0x1747   :  { %v1876_v27 = vpop.permute.xlu1 %1875 }
0x1748   :  { %v1878_v28 = vadd.f32 %v1876_v27, %v4275_v56 }
0x174a   :  { %3300 = vtanh.f32 %v1878_v28 }
0x174b   :  { %3302 = vpow2.f32 %v1862_v45 }
0x1757   :  { %v3301_v31 = vpop.eup %3300 }
0x1758   :  { %1882 = vrot.lane.b32.xlu1 %v3301_v31, %s3649_s21  ;;  %v3303_v38 = vpop.eup %3302 }
0x1759   :  { %v1865_v46 = vadd.f32 1.0, %v3303_v38 }
0x175b   :  { %3304 = vrcp.f32 %v1865_v46 }
0x1763   :  { %v1846_v39 = vpop.permute.xlu0 %1845 }
0x1764   :  { %v1848_v62 = vmul.f32 %v1846_v39, %v1843_v36 }
0x1766   :  { %v1850_v43 = vadd.f32 %v1849_v40, %v1848_v62 }
0x1768   :  { %1889 = vrot.lane.b32.xlu1 %v1850_v43, %s3649_s21  ;;  %v3305_v48 = vpop.eup %3304 }
0x1769   :  { %v1880_v2 = vsub.f32 1.0, %v3305_v48  ;;  %v1886_v4 = vmul.f32 0.0, %v3305_v48 }
0x17ca   :  { %v1883_v3 = vpop.permute.xlu1 %1882 }
0x17cb   :  { %v1885_v5 = vmul.f32 %v1883_v3, %v1880_v2 }
0x17cd   :  { %v1887_v6 = vadd.f32 %v1886_v4, %v1885_v5 }
0x17cf   :  { %v1893_v8 = vrot.slane %v1887_v6, 6 }
0x17d1   :  { %1894 = vrot.lane.b32.xlu0 %v1893_v8, %s3650_s22 }
0x17da   :  { %v1890_v11 = vpop.permute.xlu1 %1889 }
0x1843   :  { %v1895_v34 = vpop.permute.xlu0 %1894 }
0x1844   :  { %v1897_v33 = vsel %vm424_vm3, %v1890_v11, %v1895_v34 }
0x1845   :  { %3109 = vmatmul.mubr.msk.f32.vlgmr.msra.gmra.mxu0 %vm273_vm4, %v1897_v33  ;;  %v2039_v43 = vrot.slane %v1897_v33, 4  ;;  %v1998_v25 = vrot.slane %v1897_v33, 6 }
0x1846   :  { %2233 = vmatpush1.msra.mxu0 %v4111_v58  ;;  %2280 = vmatprep.mubr.f32.mxu0 %v3647_v0 }
0x1847   :  { %2234 = vmatprep.subr.mxu0 %v4113_v54 }
0x1848   :  { %2235 = vmatpush1.msra.mxu0 %v4116_v59 }
0x1849   :  { %2236 = vmatprep.subr.mxu0 %v4119_v60 }
0x184a   :  { %2237 = vmatpush1.msra.mxu0 %v4122_v61 }
0x184b   :  { %2238 = vmatprep.subr.mxu0 %v4125_v63 }
0x184c   :  { %2239 = vmatpush1.msra.mxu0 %v4128_v7 }
0x184d   :  { %2240 = vmatprep.subr.mxu0 %v4131_v9 }
0x184e   :  { %2241 = vmatpush1.msra.mxu0 %v4134_v10 }
0x184f   :  { %2242 = vmatprep.subr.mxu0 %v4137_v12 }
0x1850   :  { %2243 = vmatpush1.msra.mxu0 %v4140_v14 }
0x1851   :  { %2244 = vmatprep.subr.mxu0 %v4143_v18 }
0x1852   :  { %2245 = vmatpush1.msra.mxu0 %v4146_v24 }
0x1853   :  { %2246 = vmatprep.subr.mxu0 %v4149_v26 }
0x1854   :  { %2247 = vmatpush1.msra.mxu0 %v4152_v23 }
0x1855   :  { %2538 = vmatprep.subr.mxu0 %v4109_v57 }
0x1905   :  { %v1967_v35 = vpop.f32.mrf.mxu0 }
0x1906   :  { %v1968_v17 = vadd.f32 %v1967_v35, %v4187_v13 }
0x1907   :  { %v1969_v19 = vpop.f32.mrf.mxu0 }
0x1908   :  { %v1973_v15 = vrot.slane %v1968_v17, 6  ;;  %v1970_v49 = vadd.f32 %v1969_v19, %v4242_v29  ;;  %v2005_v50 = vrot.slane %v1968_v17, 4 }
0x190a   :  { %v2006_v1 = vrot.slane %v1970_v49, 4  ;;  %1982 = vrot.lane.b32.xlu0 %v1973_v15, %s3648_s0  ;;  %v1975_v37 = vadd.f32 %v1973_v15, %v4257_v47  ;;  %v2009_v52 = vadd.f32 %v2005_v50, %v4265_v30 }
0x190c   :  { %2023 = vrot.lane.b32.xlu1 %v2006_v1, %s3648_s0  ;;  %v1976_v32 = vsub.f32 0.0, %v1975_v37  ;;  %v2011_v20 = vsub.f32 0.0, %v2009_v52  ;;  %v2010_v3 = vadd.f32 %v2006_v1, %v4275_v56 }
0x190e   :  { %v1977_v21 = vmul.f32 1.442695, %v1976_v32  ;;  %v2013_v53 = vmul.f32 1.442695, %v2011_v20  ;;  %v2012_v4 = vsub.f32 0.0, %v2010_v3 }
0x1910   :  { %3306 = vpow2.f32 %v1977_v21  ;;  %v2015_v5 = vmul.f32 1.442695, %v2012_v4 }
0x1911   :  { %3308 = vpow2.f32 %v2013_v53 }
0x191d   :  { %v3307_v51 = vpop.eup %3306 }
0x191e   :  { %v3309_v22 = vpop.eup %3308  ;;  %v1979_v44 = vadd.f32 1.0, %v3307_v51 }
0x191f   :  { %v2017_v27 = vadd.f32 1.0, %v3309_v22 }
0x1920   :  { %3310 = vrcp.f32 %v1979_v44 }
0x1921   :  { %3312 = vrcp.f32 %v2017_v27 }
0x192d   :  { %v3311_v28 = vpop.eup %3310 }
0x192e   :  { %v3313_v39 = vpop.eup %3312  ;;  %v1992_v50 = vsub.f32 1.0, %v3311_v28 }
0x197c   :  { %v1983_v31 = vpop.permute.xlu0 %1982 }
0x197d   :  { %v1985_v36 = vmul.f32 %v3311_v28, %v1983_v31 }
0x197e   :  { %v2024_v40 = vpop.permute.xlu1 %2023 }
0x197f   :  { %v2026_v62 = vmul.f32 %v3313_v39, %v2024_v40  ;;  %1987 = vrot.lane.b32.xlu0 %v1985_v36, %s3648_s0 }
0x1981   :  { %2028 = vrot.lane.b32.xlu1 %v2026_v62, %s3648_s0 }
0x1983   :  { %2040 = vrot.lane.b32.xlu0 %v2039_v43, %s3649_s21 }
0x1987   :  { %1999 = vrot.lane.b32.xlu0 %v1998_v25, %s3650_s22 }
0x19f1   :  { %v1988_v42 = vpop.permute.xlu0 %1987 }
0x19f2   :  { %v1990_v46 = vadd.f32 %v1988_v42, %v4257_v47 }
0x19f3   :  { %v2029_v45 = vpop.permute.xlu1 %2028 }
0x19f4   :  { %v2031_v38 = vadd.f32 %v2029_v45, %v4275_v56 }
0x19f5   :  { %v2041_v34 = vpop.permute.xlu0 %2040 }
0x19f6   :  { %3314 = vtanh.f32 %v2031_v38 }
0x19f7   :  { %3316 = vtanh.f32 %v1990_v46 }
0x19f8   :  { %3318 = vpow2.f32 %v2015_v5 }
0x19f9   :  { %v2000_v15 = vpop.permute.xlu0 %1999 }
0x19fa   :  { %v2002_v52 = vmul.f32 %v3311_v28, %v2000_v15 }
0x1a03   :  { %v3315_v48 = vpop.eup %3314 }
0x1a04   :  { %2035 = vrot.lane.b32.xlu1 %v3315_v48, %s3649_s21  ;;  %v3317_v2 = vpop.eup %3316 }
0x1a05   :  { %v3319_v6 = vpop.eup %3318 }
0x1a06   :  { %v2018_v8 = vadd.f32 1.0, %v3319_v6 }
0x1a08   :  { %1994 = vrot.lane.b32.xlu1 %v3317_v2, %s3649_s21  ;;  %3320 = vrcp.f32 %v2018_v8 }
0x1a15   :  { %v3321_v11 = vpop.eup %3320 }
0x1a16   :  { %v2033_v33 = vsub.f32 1.0, %v3321_v11  ;;  %v2043_v17 = vmul.f32 %v3321_v11, %v2041_v34 }
0x1a76   :  { %v2036_v35 = vpop.permute.xlu1 %2035 }
0x1a77   :  { %v2038_v19 = vmul.f32 %v2036_v35, %v2033_v33 }
0x1a79   :  { %v2044_v49 = vadd.f32 %v2043_v17, %v2038_v19 }
0x1a7a   :  { %v1995_v37 = vpop.permute.xlu1 %1994 }
0x1a7b   :  { %v2050_v32 = vrot.slane %v2044_v49, 2  ;;  %v1997_v20 = vmul.f32 %v1995_v37, %v1992_v50 }
0x1a7d   :  { %v2003_v1 = vadd.f32 %v2002_v52, %v1997_v20  ;;  %2051 = vrot.lane.b32.xlu0 %v2050_v32, %s3650_s22 }
0x1a7f   :  { %2046 = vrot.lane.b32.xlu1 %v2003_v1, %s3649_s21 }
0x1aef   :  { %v2052_v21 = vpop.permute.xlu0 %2051 }
0x1af1   :  { %v2047_v53 = vpop.permute.xlu1 %2046 }
0x1af2   :  { %v2054_v51 = vsel %vm424_vm3, %v2047_v53, %v2052_v21 }
0x1af3   :  { %v2056_v22 = vrot.slane %v2054_v51, 2  ;;  %v2156_v33 = vrot.slane %v2054_v51, 6 }
0x1af5   :  { %3110 = vmatmul.mubr.msk.f32.vlgmr.msra.gmra.mxu1 %vm273_vm4, %v2056_v22 }
0x1af6   :  { %2386 = vmatpush1.msra.mxu1 %v4111_v58  ;;  %2433 = vmatprep.mubr.f32.mxu1 %v3647_v0 }
0x1af7   :  { %2387 = vmatprep.subr.mxu1 %v4113_v54 }
0x1af8   :  { %2388 = vmatpush1.msra.mxu1 %v4116_v59 }
0x1af9   :  { %2389 = vmatprep.subr.mxu1 %v4119_v60 }
0x1afa   :  { %2390 = vmatpush1.msra.mxu1 %v4122_v61 }
0x1afb   :  { %2391 = vmatprep.subr.mxu1 %v4125_v63 }
0x1afc   :  { %2392 = vmatpush1.msra.mxu1 %v4128_v7 }
0x1afd   :  { %2393 = vmatprep.subr.mxu1 %v4131_v9 }
0x1afe   :  { %2394 = vmatpush1.msra.mxu1 %v4134_v10 }
0x1aff   :  { %2395 = vmatprep.subr.mxu1 %v4137_v12 }
0x1b00   :  { %2396 = vmatpush1.msra.mxu1 %v4140_v14 }
0x1b01   :  { %2397 = vmatprep.subr.mxu1 %v4143_v18 }
0x1b02   :  { %2398 = vmatpush1.msra.mxu1 %v4146_v24 }
0x1b03   :  { %2399 = vmatprep.subr.mxu1 %v4149_v26 }
0x1b04   :  { %2400 = vmatpush1.msra.mxu1 %v4152_v23 }
0x1b05   :  { %2696 = vmatprep.subr.mxu1 %v4109_v57 }
0x1bb5   :  { %v2125_v44 = vpop.f32.mrf.mxu1 }
0x1bb6   :  { %v2126_v27 = vadd.f32 %v2125_v44, %v4187_v13 }
0x1bb7   :  { %v2127_v28 = vpop.f32.mrf.mxu1 }
0x1bb8   :  { %v2131_v31 = vrot.slane %v2126_v27, 4  ;;  %v2128_v36 = vadd.f32 %v2127_v28, %v4242_v29  ;;  %v2163_v40 = vrot.slane %v2126_v27, 6 }
0x1bba   :  { %v2164_v39 = vrot.slane %v2128_v36, 6  ;;  %2140 = vrot.lane.b32.xlu0 %v2131_v31, %s3648_s0  ;;  %v2133_v62 = vadd.f32 %v2131_v31, %v4257_v47  ;;  %v2167_v43 = vadd.f32 %v2163_v40, %v4265_v30 }
0x1bbc   :  { %2181 = vrot.lane.b32.xlu1 %v2164_v39, %s3648_s0  ;;  %v2134_v25 = vsub.f32 0.0, %v2133_v62  ;;  %v2169_v42 = vsub.f32 0.0, %v2167_v43  ;;  %v2168_v37 = vadd.f32 %v2164_v39, %v4275_v56 }
0x1bbe   :  { %v2135_v45 = vmul.f32 1.442695, %v2134_v25  ;;  %v2171_v38 = vmul.f32 1.442695, %v2169_v42  ;;  %v2170_v52 = vsub.f32 0.0, %v2168_v37 }
0x1bc0   :  { %3322 = vpow2.f32 %v2135_v45  ;;  %v2173_v32 = vmul.f32 1.442695, %v2170_v52 }
0x1bc1   :  { %3324 = vpow2.f32 %v2171_v38 }
0x1bcd   :  { %v3323_v46 = vpop.eup %3322 }
0x1bce   :  { %v3325_v48 = vpop.eup %3324  ;;  %v2137_v2 = vadd.f32 1.0, %v3323_v46 }
0x1bcf   :  { %v2175_v3 = vadd.f32 1.0, %v3325_v48 }
0x1bd0   :  { %3326 = vrcp.f32 %v2137_v2 }
0x1bd1   :  { %3328 = vrcp.f32 %v2175_v3 }
0x1bdd   :  { %v3327_v4 = vpop.eup %3326 }
0x1bde   :  { %v3329_v8 = vpop.eup %3328  ;;  %v2150_v36 = vsub.f32 1.0, %v3327_v4 }
0x1c2c   :  { %v2141_v5 = vpop.permute.xlu0 %2140 }
0x1c2d   :  { %v2143_v6 = vmul.f32 %v3327_v4, %v2141_v5 }
0x1c2e   :  { %v2182_v11 = vpop.permute.xlu1 %2181 }
0x1c2f   :  { %v2184_v34 = vmul.f32 %v3329_v8, %v2182_v11  ;;  %2145 = vrot.lane.b32.xlu0 %v2143_v6, %s3648_s0 }
0x1c31   :  { %2186 = vrot.lane.b32.xlu1 %v2184_v34, %s3648_s0 }
0x1c33   :  { %2197 = vrot.lane.b32.xlu0 %v2054_v51, %s3649_s21 }
0x1c37   :  { %2157 = vrot.lane.b32.xlu0 %v2156_v33, %s3650_s22 }
0x1ca1   :  { %v2146_v35 = vpop.permute.xlu0 %2145 }
0x1ca2   :  { %v2148_v15 = vadd.f32 %v2146_v35, %v4257_v47 }
0x1ca3   :  { %v2187_v17 = vpop.permute.xlu1 %2186 }
0x1ca4   :  { %v2189_v19 = vadd.f32 %v2187_v17, %v4275_v56 }
0x1ca5   :  { %v2198_v53 = vpop.permute.xlu0 %2197 }
0x1ca6   :  { %3330 = vtanh.f32 %v2189_v19 }
0x1ca7   :  { %3332 = vtanh.f32 %v2148_v15 }
0x1ca8   :  { %3334 = vpow2.f32 %v2173_v32 }
0x1ca9   :  { %v2158_v28 = vpop.permute.xlu0 %2157 }
0x1caa   :  { %v2160_v62 = vmul.f32 %v3327_v4, %v2158_v28 }
0x1cb3   :  { %v3331_v49 = vpop.eup %3330 }
0x1cb4   :  { %2193 = vrot.lane.b32.xlu1 %v3331_v49, %s3649_s21  ;;  %v3333_v50 = vpop.eup %3332 }
0x1cb5   :  { %v3335_v20 = vpop.eup %3334 }
0x1cb6   :  { %v2176_v1 = vadd.f32 1.0, %v3335_v20 }
0x1cb8   :  { %2152 = vrot.lane.b32.xlu1 %v3333_v50, %s3649_s21  ;;  %3336 = vrcp.f32 %v2176_v1 }
0x1cc5   :  { %v3337_v21 = vpop.eup %3336 }
0x1cc6   :  { %v2191_v51 = vsub.f32 1.0, %v3337_v21  ;;  %v2200_v44 = vmul.f32 %v3337_v21, %v2198_v53 }
0x1d26   :  { %v2194_v22 = vpop.permute.xlu1 %2193 }
0x1d27   :  { %v2196_v27 = vmul.f32 %v2194_v22, %v2191_v51 }
0x1d29   :  { %v2201_v31 = vadd.f32 %v2200_v44, %v2196_v27 }
0x1d2a   :  { %v2153_v40 = vpop.permute.xlu1 %2152 }
0x1d2b   :  { %v2207_v43 = vrot.slane %v2201_v31, 6  ;;  %v2155_v25 = vmul.f32 %v2153_v40, %v2150_v36 }
0x1d2d   :  { %v2161_v39 = vadd.f32 %v2160_v62, %v2155_v25  ;;  %2208 = vrot.lane.b32.xlu0 %v2207_v43, %s3650_s22 }
0x1d2f   :  { %2203 = vrot.lane.b32.xlu1 %v2161_v39, %s3649_s21 }
0x1d9f   :  { %v2209_v42 = vpop.permute.xlu0 %2208 }
0x1da1   :  { %v2204_v45 = vpop.permute.xlu1 %2203 }
0x1da2   :  { %v2211_v38 = vsel %vm424_vm3, %v2204_v45, %v2209_v42 }
0x1da3   :  { %v2213_v46 = vrot.slane %v2211_v38, 4  ;;  %v2313_v1 = vrot.slane %v2211_v38, 6 }
0x1da5   :  { %3111 = vmatmul.mubr.msk.f32.vlgmr.msra.gmra.mxu0 %vm273_vm4, %v2213_v46 }
0x1da6   :  { %2539 = vmatpush1.msra.mxu0 %v4111_v58  ;;  %2586 = vmatprep.mubr.f32.mxu0 %v3647_v0 }
0x1da7   :  { %2540 = vmatprep.subr.mxu0 %v4113_v54 }
0x1da8   :  { %2541 = vmatpush1.msra.mxu0 %v4116_v59 }
0x1da9   :  { %2542 = vmatprep.subr.mxu0 %v4119_v60 }
0x1daa   :  { %2543 = vmatpush1.msra.mxu0 %v4122_v61 }
0x1dab   :  { %2544 = vmatprep.subr.mxu0 %v4125_v63 }
0x1dac   :  { %2545 = vmatpush1.msra.mxu0 %v4128_v7 }
0x1dad   :  { %2546 = vmatprep.subr.mxu0 %v4131_v9 }
0x1dae   :  { %2547 = vmatpush1.msra.mxu0 %v4134_v10 }
0x1daf   :  { %2548 = vmatprep.subr.mxu0 %v4137_v12 }
0x1db0   :  { %2549 = vmatpush1.msra.mxu0 %v4140_v14 }
0x1db1   :  { %2550 = vmatprep.subr.mxu0 %v4143_v18 }
0x1db2   :  { %2551 = vmatpush1.msra.mxu0 %v4146_v24 }
0x1db3   :  { %2552 = vmatprep.subr.mxu0 %v4149_v26 }
0x1db4   :  { %2553 = vmatpush1.msra.mxu0 %v4152_v23 }
0x1db5   :  { %2853 = vmatprep.subr.mxu0 %v4109_v57 }
0x1e65   :  { %v2282_v48 = vpop.f32.mrf.mxu0 }
0x1e66   :  { %v2283_v2 = vadd.f32 %v2282_v48, %v4187_v13 }
0x1e67   :  { %v2284_v3 = vpop.f32.mrf.mxu0 }
0x1e68   :  { %v2288_v4 = vrot.slane %v2283_v2, 2  ;;  %v2285_v5 = vadd.f32 %v2284_v3, %v4242_v29  ;;  %v2319_v6 = vadd.f32 %v2283_v2, %v4265_v30 }
0x1e6a   :  { %2334 = vrot.lane.b32.xlu1 %v2285_v5, %s3648_s0  ;;  %2297 = vrot.lane.b32.xlu0 %v2288_v4, %s3648_s0  ;;  %v2290_v8 = vadd.f32 %v2288_v4, %v4257_v47  ;;  %v2321_v11 = vsub.f32 0.0, %v2319_v6  ;;  %v2320_v28 = vadd.f32 %v2285_v5, %v4275_v56 }
0x1e6c   :  { %v2291_v34 = vsub.f32 0.0, %v2290_v8  ;;  %v2323_v33 = vmul.f32 1.442695, %v2321_v11  ;;  %v2322_v31 = vsub.f32 0.0, %v2320_v28 }
0x1e6e   :  { %v2292_v35 = vmul.f32 1.442695, %v2291_v34  ;;  %3338 = vpow2.f32 %v2323_v33  ;;  %v2325_v36 = vmul.f32 1.442695, %v2322_v31 }
0x1e70   :  { %3340 = vpow2.f32 %v2292_v35 }
0x1e7b   :  { %v3339_v57 = vpop.eup %3338 }
0x1e7c   :  { %v2327_v19 = vadd.f32 1.0, %v3339_v57 }
0x1e7d   :  { %v3341_v17 = vpop.eup %3340 }
0x1e7e   :  { %v2294_v15 = vadd.f32 1.0, %v3341_v17  ;;  %3342 = vrcp.f32 %v2327_v19 }
0x1e80   :  { %3344 = vrcp.f32 %v2294_v15 }
0x1e8b   :  { %v3343_v49 = vpop.eup %3342 }
0x1e8d   :  { %v3345_v50 = vpop.eup %3344 }
0x1e8e   :  { %v2307_v2 = vsub.f32 1.0, %v3345_v50 }
0x1edc   :  { %v2335_v37 = vpop.permute.xlu1 %2334  ;;  %v2298_v52 = vpop.permute.xlu0 %2297 }
0x1edd   :  { %v2337_v32 = vmul.f32 %v3343_v49, %v2335_v37  ;;  %v2300_v20 = vmul.f32 %v3345_v50, %v2298_v52  ;;  %v1702_v37 = vadd.f32 %v4262_v16, %v4254_v41 }
0x1edf   :  { %2339 = vrot.lane.b32.xlu1 %v2337_v32, %s3648_s0  ;;  %2302 = vrot.lane.b32.xlu0 %v2300_v20, %s3648_s0  ;;  %v4424_v52 = vadd.f32 %v4272_v55, %v1702_v37 }
0x1ee3   :  { %2350 = vrot.lane.b32.xlu0 %v2213_v46, %s3649_s21 }
0x1ee7   :  { %2314 = vrot.lane.b32.xlu0 %v2313_v1, %s3650_s22 }
0x1f51   :  { %v2340_v21 = vpop.permute.xlu1 %2339  ;;  %v2303_v53 = vpop.permute.xlu0 %2302 }
0x1f52   :  { %v2342_v51 = vadd.f32 %v2340_v21, %v4275_v56  ;;  %v2305_v22 = vadd.f32 %v2303_v53, %v4257_v47 }
0x1f54   :  { %3346 = vtanh.f32 %v2342_v51 }
0x1f55   :  { %3348 = vtanh.f32 %v2305_v22  ;;  %v2351_v25 = vpop.permute.xlu0 %2350 }
0x1f56   :  { %3350 = vpow2.f32 %v2325_v36 }
0x1f59   :  { %v2315_v46 = vpop.permute.xlu0 %2314 }
0x1f5a   :  { %v2317_v4 = vmul.f32 %v3345_v50, %v2315_v46 }
0x1f61   :  { %v3347_v44 = vpop.eup %3346 }
0x1f62   :  { %2346 = vrot.lane.b32.xlu1 %v3347_v44, %s3649_s21  ;;  %v3349_v27 = vpop.eup %3348 }
0x1f63   :  { %v3351_v40 = vpop.eup %3350 }
0x1f64   :  { %v2328_v62 = vadd.f32 1.0, %v3351_v40 }
0x1f66   :  { %2309 = vrot.lane.b32.xlu1 %v3349_v27, %s3649_s21  ;;  %3352 = vrcp.f32 %v2328_v62 }
0x1f73   :  { %v3353_v43 = vpop.eup %3352 }
0x1f74   :  { %v2344_v39 = vsub.f32 1.0, %v3353_v43  ;;  %v2353_v45 = vmul.f32 %v3353_v43, %v2351_v25 }
0x1fd4   :  { %v2347_v42 = vpop.permute.xlu1 %2346 }
0x1fd5   :  { %v2349_v38 = vmul.f32 %v2347_v42, %v2344_v39 }
0x1fd7   :  { %v2354_v48 = vadd.f32 %v2353_v45, %v2349_v38 }
0x1fd8   :  { %v2310_v3 = vpop.permute.xlu1 %2309 }
0x1fd9   :  { %v2360_v6 = vrot.slane %v2354_v48, 2  ;;  %v2312_v8 = vmul.f32 %v2310_v3, %v2307_v2 }
0x1fdb   :  { %v2318_v56 = vadd.f32 %v2317_v4, %v2312_v8  ;;  %2361 = vrot.lane.b32.xlu0 %v2360_v6, %s3650_s22  ;;  %v3430_v6 = vld [vmem:[#allocation15 + $0x70] sm:$0xff]  ;;  %v3431_v8 = vld [vmem:[#allocation15 + $0x68] sm:$0xff] }
0x1fdd   :  { %2356 = vrot.lane.b32.xlu1 %v2318_v56, %s3649_s21  ;;  %v3432_v56 = vld [vmem:[#allocation15 + $0x60] sm:$0xff] }
0x204d   :  { %v2362_v5 = vpop.permute.xlu0 %2361 }
0x204f   :  { %v2357_v11 = vpop.permute.xlu1 %2356 }
0x2050   :  { %v2364_v34 = vsel %vm424_vm3, %v2357_v11, %v2362_v5  ;;  %v3433_v5 = vld [vmem:[#allocation15 + $0x58] sm:$0xff]  ;;  %v3434_v11 = vld [vmem:[#allocation15 + $0x50] sm:$0xff] }
0x2051   :  { %v2366_v33 = vrot.slane %v2364_v34, 6 }
0x2053   :  { %3112 = vmatmul.mubr.msk.f32.vlgmr.msra.gmra.mxu1 %vm273_vm4, %v2366_v33 }
0x2054   :  { %2697 = vmatpush1.msra.mxu1 %v4111_v58  ;;  %2744 = vmatprep.mubr.f32.mxu1 %v3647_v0 }
0x2055   :  { %2698 = vmatprep.subr.mxu1 %v4113_v54 }
0x2056   :  { %2699 = vmatpush1.msra.mxu1 %v4116_v59 }
0x2057   :  { %2700 = vmatprep.subr.mxu1 %v4119_v60 }
0x2058   :  { %2701 = vmatpush1.msra.mxu1 %v4122_v61 }
0x2059   :  { %2702 = vmatprep.subr.mxu1 %v4125_v63 }
0x205a   :  { %2703 = vmatpush1.msra.mxu1 %v4128_v7 }
0x205b   :  { %2704 = vmatprep.subr.mxu1 %v4131_v9 }
0x205c   :  { %2705 = vmatpush1.msra.mxu1 %v4134_v10 }
0x205d   :  { %2706 = vmatprep.subr.mxu1 %v4137_v12 }
0x205e   :  { %2707 = vmatpush1.msra.mxu1 %v4140_v14 }
0x205f   :  { %2708 = vmatprep.subr.mxu1 %v4143_v18 }
0x2060   :  { %2709 = vmatpush1.msra.mxu1 %v4146_v24 }
0x2061   :  { %2710 = vmatprep.subr.mxu1 %v4149_v26 }
0x2062   :  { %2711 = vmatpush1.msra.mxu1 %v4152_v23 }
0x2063   :  { %3127 = vmatprep.subr.mxu1 %v3647_v0 }
0x2113   :  { %v2435_v58 = vpop.f32.mrf.mxu1 }
0x2114   :  { %v2436_v54 = vadd.f32 %v2435_v58, %v4187_v13  ;;  %v3437_v58 = vld [vmem:[#allocation15 + $0x38] sm:$0xff] }
0x2115   :  { %v2437_v59 = vpop.f32.mrf.mxu1 }
0x2116   :  { %v2438_v60 = vadd.f32 %v2437_v59, %v4242_v29  ;;  %2448 = vrot.lane.b32.xlu0 %v2436_v54, %s3648_s0  ;;  %v2440_v63 = vadd.f32 %v2436_v54, %v4265_v30  ;;  %v2470_v7 = vrot.slane %v2436_v54, 2  ;;  %v3438_v54 = vld [vmem:[#allocation15 + $0x30] sm:$0xff]  ;;  %v3439_v59 = vld [vmem:[#allocation15 + $0x28] sm:$0xff] }
0x2118   :  { %v2471_v61 = vrot.slane %v2438_v60, 2  ;;  %v2441_v9 = vsub.f32 0.0, %v2440_v63  ;;  %v2474_v10 = vadd.f32 %v2470_v7, %v4257_v47  ;;  %v3440_v60 = vld [vmem:[#allocation15 + $0x20] sm:$0xff]  ;;  %v3442_v63 = vld [vmem:[#allocation15 + $0x10] sm:$0xff]  ;;  %v3443_v7 = vld [vmem:[#allocation15 + $0x8] sm:$0xff] }
0x211a   :  { %2488 = vrot.lane.b32.xlu1 %v2471_v61, %s3648_s0  ;;  %v2442_v12 = vmul.f32 1.442695, %v2441_v9  ;;  %v2476_v14 = vsub.f32 0.0, %v2474_v10  ;;  %v2475_v22 = vadd.f32 %v2471_v61, %v4424_v52  ;;  %v3441_v61 = vld [vmem:[#allocation15 + $0x18] sm:$0xff]  ;;  %v3444_v9 = vld [vmem:[#allocation15] sm:$0xff] }
0x211c   :  { %3354 = vpow2.f32 %v2442_v12  ;;  %v2478_v18 = vmul.f32 1.442695, %v2476_v14  ;;  %v2477_v41 = vsub.f32 0.0, %v2475_v22 }
0x211e   :  { %3356 = vpow2.f32 %v2478_v18  ;;  %v2480_v16 = vmul.f32 1.442695, %v2477_v41 }
0x2129   :  { %v3355_v24 = vpop.eup %3354 }
0x212a   :  { %v2444_v26 = vadd.f32 1.0, %v3355_v24 }
0x212b   :  { %v3357_v23 = vpop.eup %3356 }
0x212c   :  { %3358 = vrcp.f32 %v2444_v26  ;;  %v2482_v35 = vadd.f32 1.0, %v3357_v23 }
0x212e   :  { %3360 = vrcp.f32 %v2482_v35 }
0x2139   :  { %v3359_v57 = vpop.eup %3358 }
0x213a   :  { %v2458_v39 = vsub.f32 1.0, %v3359_v57 }
0x213b   :  { %v3361_v15 = vpop.eup %3360 }
0x2188   :  { %v2449_v17 = vpop.permute.xlu0 %2448 }
0x2189   :  { %v2451_v19 = vmul.f32 %v3359_v57, %v2449_v17 }
0x218b   :  { %2453 = vrot.lane.b32.xlu0 %v2451_v19, %s3648_s0 }
0x218c   :  { %v2489_v49 = vpop.permute.xlu1 %2488 }
0x218d   :  { %v2491_v50 = vmul.f32 %v3361_v15, %v2489_v49 }
0x218f   :  { %2493 = vrot.lane.b32.xlu1 %v2491_v50, %s3648_s0  ;;  %2504 = vrot.lane.b32.xlu0 %v2364_v34, %s3649_s21  ;;  %v3435_v34 = vld [vmem:[#allocation15 + $0x48] sm:$0xff] }
0x2193   :  { %2464 = vrot.lane.b32.xlu0 %v2366_v33, %s3650_s22  ;;  %v3436_v33 = vld [vmem:[#allocation15 + $0x40] sm:$0xff] }
0x21fd   :  { %v2454_v32 = vpop.permute.xlu0 %2453 }
0x21fe   :  { %v2456_v21 = vadd.f32 %v2454_v32, %v4265_v30 }
0x2201   :  { %v2494_v20 = vpop.permute.xlu1 %2493  ;;  %v2505_v28 = vpop.permute.xlu0 %2504 }
0x2202   :  { %v2496_v1 = vadd.f32 %v2494_v20, %v4424_v52 }
0x2204   :  { %3362 = vtanh.f32 %v2496_v1 }
0x2205   :  { %3364 = vtanh.f32 %v2456_v21  ;;  %v2465_v43 = vpop.permute.xlu0 %2464 }
0x2206   :  { %3366 = vpow2.f32 %v2480_v16  ;;  %v2467_v45 = vmul.f32 %v3359_v57, %v2465_v43 }
0x2211   :  { %v3363_v53 = vpop.eup %3362 }
0x2212   :  { %2500 = vrot.lane.b32.xlu1 %v3363_v53, %s3649_s21  ;;  %v3365_v51 = vpop.eup %3364 }
0x2213   :  { %v3367_v55 = vpop.eup %3366 }
0x2214   :  { %v2483_v44 = vadd.f32 1.0, %v3367_v55 }
0x2216   :  { %2460 = vrot.lane.b32.xlu1 %v3365_v51, %s3649_s21  ;;  %3368 = vrcp.f32 %v2483_v44 }
0x2223   :  { %v3369_v27 = vpop.eup %3368 }
0x2224   :  { %v2498_v31 = vsub.f32 1.0, %v3369_v27  ;;  %v2507_v40 = vmul.f32 %v3369_v27, %v2505_v28 }
0x2284   :  { %v2501_v36 = vpop.permute.xlu1 %2500 }
0x2285   :  { %v2503_v62 = vmul.f32 %v2501_v36, %v2498_v31 }
0x2287   :  { %v2508_v25 = vadd.f32 %v2507_v40, %v2503_v62 }
0x2288   :  { %v2461_v42 = vpop.permute.xlu1 %2460 }
0x2289   :  { %v2514_v38 = vrot.slane %v2508_v25, 6  ;;  %v2463_v46 = vmul.f32 %v2461_v42, %v2458_v39 }
0x228b   :  { %v2468_v48 = vadd.f32 %v2467_v45, %v2463_v46  ;;  %2515 = vrot.lane.b32.xlu0 %v2514_v38, %s3650_s22 }
0x228d   :  { %2510 = vrot.lane.b32.xlu1 %v2468_v48, %s3649_s21 }
0x22fd   :  { %v2516_v2 = vpop.permute.xlu0 %2515 }
0x22ff   :  { %v2511_v3 = vpop.permute.xlu1 %2510 }
0x2300   :  { %v4434_v4 = vsel %vm424_vm3, %v2511_v3, %v2516_v2 }
0x2301   :  { %3113 = vmatmul.mubr.msk.f32.vlgmr.msra.gmra.mxu0 %vm273_vm4, %v4434_v4  ;;  %v2660_v16 = vrot.slane %v4434_v4, 4  ;;  %v2619_v55 = vrot.slane %v4434_v4, 6 }
0x2302   :  { %2854 = vmatpush1.msra.mxu0 %v3430_v6  ;;  %2901 = vmatprep.mubr.f32.mxu0 %v3647_v0 }
0x2303   :  { %2855 = vmatprep.subr.mxu0 %v3431_v8 }
0x2304   :  { %2856 = vmatpush1.msra.mxu0 %v3432_v56 }
0x2305   :  { %2857 = vmatprep.subr.mxu0 %v3433_v5 }
0x2306   :  { %2858 = vmatpush1.msra.mxu0 %v3434_v11 }
0x2307   :  { %2859 = vmatprep.subr.mxu0 %v3435_v34 }
0x2308   :  { %2860 = vmatpush1.msra.mxu0 %v3436_v33 }
0x2309   :  { %2861 = vmatprep.subr.mxu0 %v3437_v58 }
0x230a   :  { %2862 = vmatpush1.msra.mxu0 %v3438_v54 }
0x230b   :  { %2863 = vmatprep.subr.mxu0 %v3439_v59 }
0x230c   :  { %2864 = vmatpush1.msra.mxu0 %v3440_v60 }
0x230d   :  { %2865 = vmatprep.subr.mxu0 %v3441_v61 }
0x230e   :  { %2866 = vmatpush1.msra.mxu0 %v3442_v63 }
0x230f   :  { %2867 = vmatprep.subr.mxu0 %v3443_v7 }
0x2310   :  { %2868 = vmatpush1.msra.mxu0 %v3444_v9 }
0x23c1   :  { %v2588_v10 = vpop.f32.mrf.mxu0 }
0x23c2   :  { %v2589_v12 = vadd.f32 %v2588_v10, %v4187_v13 }
0x23c3   :  { %v2590_v14 = vpop.f32.mrf.mxu0 }
0x23c4   :  { %v2594_v18 = vrot.slane %v2589_v12, 6  ;;  %v2591_v24 = vadd.f32 %v2590_v14, %v4242_v29  ;;  %v2626_v23 = vrot.slane %v2589_v12, 4 }
0x23c6   :  { %v2627_v26 = vrot.slane %v2591_v24, 4  ;;  %2603 = vrot.lane.b32.xlu0 %v2594_v18, %s3648_s0  ;;  %v2596_v35 = vadd.f32 %v2594_v18, %v4265_v30  ;;  %v2630_v57 = vadd.f32 %v2626_v23, %v4257_v47 }
0x23c8   :  { %2644 = vrot.lane.b32.xlu1 %v2627_v26, %s3648_s0  ;;  %v2597_v17 = vsub.f32 0.0, %v2596_v35  ;;  %v2632_v19 = vsub.f32 0.0, %v2630_v57  ;;  %v2631_v62 = vadd.f32 %v2627_v26, %v4424_v52 }
0x23ca   :  { %v2598_v15 = vmul.f32 1.442695, %v2597_v17  ;;  %v2634_v49 = vmul.f32 1.442695, %v2632_v19  ;;  %v2633_v43 = vsub.f32 0.0, %v2631_v62 }
0x23cc   :  { %3370 = vpow2.f32 %v2598_v15  ;;  %v2636_v25 = vmul.f32 1.442695, %v2633_v43 }
0x23cd   :  { %3372 = vpow2.f32 %v2634_v49 }
0x23d9   :  { %v3371_v50 = vpop.eup %3370 }
0x23da   :  { %v3373_v37 = vpop.eup %3372  ;;  %v2600_v32 = vadd.f32 1.0, %v3371_v50 }
0x23db   :  { %v2638_v20 = vadd.f32 1.0, %v3373_v37 }
0x23dc   :  { %3374 = vrcp.f32 %v2600_v32 }
0x23dd   :  { %3376 = vrcp.f32 %v2638_v20 }
0x23e9   :  { %v3375_v1 = vpop.eup %3374 }
0x23ea   :  { %v3377_v51 = vpop.eup %3376  ;;  %v2613_v8 = vsub.f32 1.0, %v3375_v1 }
0x2438   :  { %v2604_v21 = vpop.permute.xlu0 %2603 }
0x2439   :  { %v2606_v53 = vmul.f32 %v3375_v1, %v2604_v21 }
0x243a   :  { %v2645_v22 = vpop.permute.xlu1 %2644 }
0x243b   :  { %v2647_v41 = vmul.f32 %v3377_v51, %v2645_v22  ;;  %2608 = vrot.lane.b32.xlu0 %v2606_v53, %s3648_s0 }
0x243d   :  { %2649 = vrot.lane.b32.xlu1 %v2647_v41, %s3648_s0 }
0x243f   :  { %2661 = vrot.lane.b32.xlu0 %v2660_v16, %s3649_s21 }
0x2443   :  { %2620 = vrot.lane.b32.xlu0 %v2619_v55, %s3650_s22 }
0x24ad   :  { %v2609_v44 = vpop.permute.xlu0 %2608 }
0x24ae   :  { %v2611_v31 = vadd.f32 %v2609_v44, %v4265_v30 }
0x24af   :  { %v2650_v27 = vpop.permute.xlu1 %2649 }
0x24b0   :  { %v2652_v28 = vadd.f32 %v2650_v27, %v4424_v52 }
0x24b1   :  { %v2662_v38 = vpop.permute.xlu0 %2661 }
0x24b2   :  { %3378 = vtanh.f32 %v2652_v28 }
0x24b3   :  { %3380 = vtanh.f32 %v2611_v31 }
0x24b4   :  { %3382 = vpow2.f32 %v2636_v25 }
0x24b5   :  { %v2621_v4 = vpop.permute.xlu0 %2620 }
0x24b6   :  { %v2623_v5 = vmul.f32 %v3375_v1, %v2621_v4 }
0x24bf   :  { %v3379_v36 = vpop.eup %3378 }
0x24c0   :  { %2656 = vrot.lane.b32.xlu1 %v3379_v36, %s3649_s21  ;;  %v3381_v40 = vpop.eup %3380 }
0x24c1   :  { %v3383_v39 = vpop.eup %3382 }
0x24c2   :  { %v2639_v42 = vadd.f32 1.0, %v3383_v39 }
0x24c4   :  { %2615 = vrot.lane.b32.xlu1 %v3381_v40, %s3649_s21  ;;  %3384 = vrcp.f32 %v2639_v42 }
0x24d1   :  { %v3385_v45 = vpop.eup %3384 }
0x24d2   :  { %v2654_v46 = vsub.f32 1.0, %v3385_v45  ;;  %v2664_v2 = vmul.f32 %v3385_v45, %v2662_v38 }
0x2532   :  { %v2657_v48 = vpop.permute.xlu1 %2656 }
0x2533   :  { %v2659_v3 = vmul.f32 %v2657_v48, %v2654_v46 }
0x2535   :  { %v2665_v6 = vadd.f32 %v2664_v2, %v2659_v3 }
0x2536   :  { %v2616_v56 = vpop.permute.xlu1 %2615 }
0x2537   :  { %v2671_v11 = vrot.slane %v2665_v6, 2  ;;  %v2618_v34 = vmul.f32 %v2616_v56, %v2613_v8 }
0x2539   :  { %v2624_v33 = vadd.f32 %v2623_v5, %v2618_v34  ;;  %2672 = vrot.lane.b32.xlu0 %v2671_v11, %s3650_s22 }
0x253b   :  { %2667 = vrot.lane.b32.xlu1 %v2624_v33, %s3649_s21 }
0x25ab   :  { %v2673_v58 = vpop.permute.xlu0 %2672 }
0x25ad   :  { %v2668_v54 = vpop.permute.xlu1 %2667 }
0x25ae   :  { %v2675_v59 = vsel %vm424_vm3, %v2668_v54, %v2673_v58 }
0x25af   :  { %v2677_v60 = vrot.slane %v2675_v59, 2  ;;  %v2777_v53 = vrot.slane %v2675_v59, 6 }
0x25b1   :  { %3114 = vmatmul.mubr.msk.f32.vlgmr.msra.gmra.mxu1 %vm273_vm4, %v2677_v60 }
0x25b2   :  { %3143 = vmatprep.mubr.msk.f32.mxu1 %vm3651_vm7, %v3647_v0 }
0x2671   :  { %v2746_v61 = vpop.f32.mrf.mxu1 }
0x2672   :  { %v2747_v63 = vadd.f32 %v2746_v61, %v4187_v13 }
0x2673   :  { %v2748_v7 = vpop.f32.mrf.mxu1 }
0x2674   :  { %v2752_v9 = vrot.slane %v2747_v63, 4  ;;  %v2749_v10 = vadd.f32 %v2748_v7, %v4242_v29  ;;  %v2784_v14 = vrot.slane %v2747_v63, 6 }
0x2676   :  { %v2785_v12 = vrot.slane %v2749_v10, 6  ;;  %2761 = vrot.lane.b32.xlu0 %v2752_v9, %s3648_s0  ;;  %v2754_v18 = vadd.f32 %v2752_v9, %v4265_v30  ;;  %v2788_v24 = vadd.f32 %v2784_v14, %v4257_v47 }
0x2678   :  { %2802 = vrot.lane.b32.xlu1 %v2785_v12, %s3648_s0  ;;  %v2755_v26 = vsub.f32 0.0, %v2754_v18  ;;  %v2790_v23 = vsub.f32 0.0, %v2788_v24  ;;  %v2789_v27 = vadd.f32 %v2785_v12, %v4424_v52 }
0x267a   :  { %v2756_v35 = vmul.f32 1.442695, %v2755_v26  ;;  %v2792_v57 = vmul.f32 1.442695, %v2790_v23  ;;  %v2791_v28 = vsub.f32 0.0, %v2789_v27 }
0x267c   :  { %3386 = vpow2.f32 %v2756_v35  ;;  %v2794_v31 = vmul.f32 1.442695, %v2791_v28 }
0x267d   :  { %3388 = vpow2.f32 %v2792_v57 }
0x2689   :  { %v3387_v17 = vpop.eup %3386 }
0x268a   :  { %v3389_v19 = vpop.eup %3388  ;;  %v2758_v15 = vadd.f32 1.0, %v3387_v17 }
0x268b   :  { %v2796_v49 = vadd.f32 1.0, %v3389_v19 }
0x268c   :  { %3390 = vrcp.f32 %v2758_v15 }
0x268d   :  { %3392 = vrcp.f32 %v2796_v49 }
0x2699   :  { %v3391_v50 = vpop.eup %3390 }
0x269a   :  { %v3393_v20 = vpop.eup %3392  ;;  %v2771_v48 = vsub.f32 1.0, %v3391_v50 }
0x26e8   :  { %v2762_v37 = vpop.permute.xlu0 %2761 }
0x26e9   :  { %v2764_v32 = vmul.f32 %v3391_v50, %v2762_v37  ;;  %v2993_v37 = vld [vmem:[%s4551_s10 + $0x38] sm:$0xff] }
0x26ea   :  { %v2803_v1 = vpop.permute.xlu1 %2802  ;;  %3128 = vmatpush3.msra.mxu1 %v2993_v37 }
0x26eb   :  { %v2805_v21 = vmul.f32 %v3393_v20, %v2803_v1  ;;  %2766 = vrot.lane.b32.xlu0 %v2764_v32, %s3648_s0  ;;  %v2992_v32 = vld [vmem:[%s4551_s10 + $0x30] sm:$0xff]  ;;  %3129 = vmatprep.subr.mxu1 %v3647_v0  ;;  %v2991_v20 = vld [vmem:[%s4551_s10 + $0x28] sm:$0xff] }
0x26ec   :  { %3130 = vmatpush3.msra.mxu1 %v2992_v32 }
0x26ed   :  { %2807 = vrot.lane.b32.xlu1 %v2805_v21, %s3648_s0  ;;  %3131 = vmatprep.subr.mxu1 %v3647_v0  ;;  %v2989_v21 = vld [vmem:[%s4551_s10 + $0x18] sm:$0xff] }
0x26ee   :  { %3132 = vmatpush3.msra.mxu1 %v2991_v20 }
0x26ef   :  { %2818 = vrot.lane.b32.xlu0 %v2675_v59, %s3649_s21  ;;  %3133 = vmatprep.subr.mxu1 %v3647_v0 }
0x26f3   :  { %2778 = vrot.lane.b32.xlu0 %v2777_v53, %s3650_s22 }
0x275d   :  { %v2767_v51 = vpop.permute.xlu0 %2766 }
0x275e   :  { %v2769_v16 = vadd.f32 %v2767_v51, %v4265_v30 }
0x275f   :  { %v2808_v22 = vpop.permute.xlu1 %2807 }
0x2760   :  { %v2810_v41 = vadd.f32 %v2808_v22, %v4424_v52 }
0x2761   :  { %v2819_v43 = vpop.permute.xlu0 %2818 }
0x2762   :  { %3394 = vtanh.f32 %v2810_v41 }
0x2763   :  { %3396 = vtanh.f32 %v2769_v16 }
0x2764   :  { %3398 = vpow2.f32 %v2794_v31  ;;  %v2987_v31 = vld [vmem:[%s4551_s10 + $0x8] sm:$0xff] }
0x2765   :  { %v2779_v38 = vpop.permute.xlu0 %2778 }
0x2766   :  { %v2781_v3 = vmul.f32 %v3391_v50, %v2779_v38 }
0x276f   :  { %v3395_v55 = vpop.eup %3394 }
0x2770   :  { %2814 = vrot.lane.b32.xlu1 %v3395_v55, %s3649_s21  ;;  %v3397_v44 = vpop.eup %3396 }
0x2771   :  { %v3399_v36 = vpop.eup %3398 }
0x2772   :  { %v2797_v40 = vadd.f32 1.0, %v3399_v36 }
0x2774   :  { %2773 = vrot.lane.b32.xlu1 %v3397_v44, %s3649_s21  ;;  %3400 = vrcp.f32 %v2797_v40  ;;  %v2988_v44 = vld [vmem:[%s4551_s10 + $0x10] sm:$0xff] }
0x2781   :  { %v3401_v62 = vpop.eup %3400 }
0x2782   :  { %v2812_v25 = vsub.f32 1.0, %v3401_v62  ;;  %v2821_v42 = vmul.f32 %v3401_v62, %v2819_v43 }
0x27e2   :  { %v2815_v39 = vpop.permute.xlu1 %2814 }
0x27e3   :  { %v2817_v45 = vmul.f32 %v2815_v39, %v2812_v25 }
0x27e5   :  { %v2822_v46 = vadd.f32 %v2821_v42, %v2817_v45 }
0x27e6   :  { %v2774_v2 = vpop.permute.xlu1 %2773 }
0x27e7   :  { %v2828_v4 = vrot.slane %v2822_v46, 6  ;;  %v2776_v6 = vmul.f32 %v2774_v2, %v2771_v48 }
0x27e9   :  { %v2782_v8 = vadd.f32 %v2781_v3, %v2776_v6  ;;  %2829 = vrot.lane.b32.xlu0 %v2828_v4, %s3650_s22 }
0x27eb   :  { %2824 = vrot.lane.b32.xlu1 %v2782_v8, %s3649_s21  ;;  %v3116_v8 = vld [vmem:[%s4552_s11] ss:$0 sm:$0xff] }
0x285b   :  { %v2830_v56 = vpop.permute.xlu0 %2829 }
0x285d   :  { %v2825_v5 = vpop.permute.xlu1 %2824 }
0x285e   :  { %v2832_v11 = vsel %vm424_vm3, %v2825_v5, %v2830_v56 }
0x285f   :  { %v2834_v34 = vrot.slane %v2832_v11, 4  ;;  %v2934_v17 = vrot.slane %v2832_v11, 6 }
0x2861   :  { %3115 = vmatmul.mubr.msk.f32.vlgmr.msra.gmra.mxu0 %vm273_vm4, %v2834_v34 }
0x2921   :  { %v2903_v33 = vpop.f32.mrf.mxu0 }
0x2922   :  { %v2904_v58 = vadd.f32 %v2903_v33, %v4187_v13 }
0x2923   :  { %v2905_v54 = vpop.f32.mrf.mxu0 }
0x2924   :  { %v2909_v59 = vrot.slane %v2904_v58, 2  ;;  %v2906_v60 = vadd.f32 %v2905_v54, %v4242_v29  ;;  %v2940_v61 = vadd.f32 %v2904_v58, %v4257_v47 }
0x2926   :  { %2955 = vrot.lane.b32.xlu1 %v2906_v60, %s3648_s0  ;;  %2918 = vrot.lane.b32.xlu0 %v2909_v59, %s3648_s0  ;;  %v2911_v63 = vadd.f32 %v2909_v59, %v4265_v30  ;;  %v2942_v7 = vsub.f32 0.0, %v2940_v61  ;;  %v2941_v51 = vadd.f32 %v2906_v60, %v4424_v52 }
0x2928   :  { %v2912_v9 = vsub.f32 0.0, %v2911_v63  ;;  %v2944_v10 = vmul.f32 1.442695, %v2942_v7  ;;  %v2943_v22 = vsub.f32 0.0, %v2941_v51 }
0x292a   :  { %v2913_v12 = vmul.f32 1.442695, %v2912_v9  ;;  %3402 = vpow2.f32 %v2944_v10  ;;  %v2946_v41 = vmul.f32 1.442695, %v2943_v22 }
0x292c   :  { %3404 = vpow2.f32 %v2913_v12 }
0x2937   :  { %v3403_v14 = vpop.eup %3402 }
0x2938   :  { %v2948_v18 = vadd.f32 1.0, %v3403_v14 }
0x2939   :  { %v3405_v13 = vpop.eup %3404 }
0x293a   :  { %v2915_v24 = vadd.f32 1.0, %v3405_v13  ;;  %3406 = vrcp.f32 %v2948_v18 }
0x293c   :  { %3408 = vrcp.f32 %v2915_v24 }
0x2947   :  { %v3407_v29 = vpop.eup %3406 }
0x2949   :  { %v4485_v26 = vpop.eup %3408 }
0x294a   :  { %v2928_v42 = vsub.f32 1.0, %v4485_v26 }
0x2998   :  { %v2956_v23 = vpop.permute.xlu1 %2955  ;;  %v2919_v35 = vpop.permute.xlu0 %2918 }
0x2999   :  { %v2958_v47 = vmul.f32 %v3407_v29, %v2956_v23  ;;  %v2921_v57 = vmul.f32 %v4485_v26, %v2919_v35 }
0x299b   :  { %2960 = vrot.lane.b32.xlu1 %v2958_v47, %s3648_s0  ;;  %2923 = vrot.lane.b32.xlu0 %v2921_v57, %s3648_s0 }
0x299f   :  { %2971 = vrot.lane.b32.xlu0 %v2834_v34, %s3649_s21 }
0x29a3   :  { %2935 = vrot.lane.b32.xlu0 %v2934_v17, %s3650_s22 }
0x2a0d   :  { %v2961_v19 = vpop.permute.xlu1 %2960  ;;  %v2924_v15 = vpop.permute.xlu0 %2923 }
0x2a0e   :  { %v2963_v49 = vadd.f32 %v2961_v19, %v4424_v52  ;;  %v2926_v50 = vadd.f32 %v2924_v15, %v4265_v30  ;;  %v2990_v30 = vld [vmem:[%s4551_s10 + $0x20] sm:$0xff] }
0x2a0f   :  { %3134 = vmatpush3.msra.mxu1 %v2990_v30  ;;  %v2986_v52 = vld [vmem:[%s4551_s10] sm:$0xff] }
0x2a10   :  { %3410 = vtanh.f32 %v2963_v49  ;;  %3135 = vmatprep.subr.mxu1 %v3647_v0 }
0x2a11   :  { %3412 = vtanh.f32 %v2926_v50  ;;  %3136 = vmatpush3.msra.mxu1 %v2989_v21  ;;  %v2972_v28 = vpop.permute.xlu0 %2971 }
0x2a12   :  { %3137 = vmatprep.subr.mxu1 %v3647_v0  ;;  %3414 = vpow2.f32 %v2946_v41 }
0x2a13   :  { %3138 = vmatpush3.msra.mxu1 %v2988_v44 }
0x2a14   :  { %3139 = vmatprep.subr.mxu1 %v3647_v0 }
0x2a15   :  { %3140 = vmatpush3.msra.mxu1 %v2987_v31  ;;  %v2936_v25 = vpop.permute.xlu0 %2935 }
0x2a16   :  { %3141 = vmatprep.subr.mxu1 %v3647_v0  ;;  %v2938_v38 = vmul.f32 %v4485_v26, %v2936_v25 }
0x2a17   :  { %3142 = vmatpush3.msra.mxu1 %v2986_v52 }
0x2a1d   :  { %v3411_v1 = vpop.eup %3410 }
0x2a1e   :  { %2967 = vrot.lane.b32.xlu1 %v3411_v1, %s3649_s21  ;;  %v3413_v53 = vpop.eup %3412 }
0x2a1f   :  { %v3415_v16 = vpop.eup %3414 }
0x2a20   :  { %v2949_v55 = vadd.f32 1.0, %v3415_v16 }
0x2a22   :  { %2930 = vrot.lane.b32.xlu1 %v3413_v53, %s3649_s21  ;;  %3416 = vrcp.f32 %v2949_v55 }
0x2a2f   :  { %v3417_v27 = vpop.eup %3416 }
0x2a30   :  { %v2965_v36 = vsub.f32 1.0, %v3417_v27  ;;  %v2974_v62 = vmul.f32 %v3417_v27, %v2972_v28 }
0x2a90   :  { %v2968_v40 = vpop.permute.xlu1 %2967 }
0x2a91   :  { %v2970_v43 = vmul.f32 %v2968_v40, %v2965_v36 }
0x2a93   :  { %v2975_v39 = vadd.f32 %v2974_v62, %v2970_v43 }
0x2a94   :  { %v2931_v45 = vpop.permute.xlu1 %2930 }
0x2a95   :  { %v2981_v46 = vrot.slane %v2975_v39, 2  ;;  %v2933_v48 = vmul.f32 %v2931_v45, %v2928_v42 }
0x2a97   :  { %v2939_v2 = vadd.f32 %v2938_v38, %v2933_v48  ;;  %2982 = vrot.lane.b32.xlu0 %v2981_v46, %s3650_s22 }
0x2a99   :  { %2977 = vrot.lane.b32.xlu1 %v2939_v2, %s3649_s21  ;;  %s3605_s21 = scalar_lea.vmem %s3084_s29, 32 }
0x2a9a   :  { %p3606_p12 = scmp.ne.s32.totalorder %s3084_s29, %s3605_s21  ;;  %p3611_p0 = scmp.lt.s32.totalorder %s3605_s21, %s3605_s21 }
0x2a9c   :  { %p3612_p1 = por %p3611_p0, %p3610_p13 }
0x2a9e   :  { %p3613_p2 = pnand %p3612_p1, %p3606_p12 }
0x2b09   :  { %v2983_v0 = vpop.permute.xlu0 %2982 }
0x2b0b   :  { %v2978_v3 = vpop.permute.xlu1 %2977 }
0x2b0c   :  { %v2985_v4 = vsel %vm424_vm3, %v2978_v3, %v2983_v0 }
0x2b0d   :  { %v3002_v6 = vrot.slane %v2985_v4, 6 }
0x2b0f   :  { %3144 = vmatmul.mubr.msk.f32.vlgmr.msra.gmra.mxu1 %vm273_vm4, %v3002_v6 }
0x2bcf   :  { %v3071_v56 = vpop.f32.mrf.mxu1 }
0x2bd0   :  { %v3072_v5 = vadd.f32 %v3116_v8, %v3071_v56 }
0x2bd1   :  { %v3145_v11 = vpop.f32.mrf.mxu1 }
0x2bd2   :  { %3076 = vst.msk [vmem:[#allocation18] sm:$0x3] %vm3075_vm8, %v3072_v5 }
0x2bd3   :  { %3616 = shalt.err (!%p3613_p2)
}
0x2bd4   :  { %3086 = dma.vmem_to_hbm [thread:$0]  %s3084_s29, 32, %s4553_s12, [#allocation6]  }
0x2bd5   :  { %3635 = dma.done.wait [#allocation6], 32  }
0x2bd6   :  { %3636 = vsyncadd [#allocation6], 4294967264 }
0x2bd7   :  { %3090 = vsyncpa [#allocation5], 1 }
0x2bd8   :  { %3091 = vsyncpa [#allocation8], 1 }
0x2bd9   :  { %3092 = vsyncpa [#allocation11], 1 }
0x2bda   :  { %3093 = vsyncpa [#allocation14], 1 }
0x2bdb   :  { %3094 = vsyncpa [#allocation17], 1 }
0x2bdc   :  { %3095 = vsyncpa [#allocation6], 1 }

</bundles_post_ra>
